<compile_context>
chip_gen: v6e
topology: v6e:2x2x1
jax: 0.10.0
libtpu: 0.0.40
codegen_flags: <defaults>
</compile_context>

<pallas_src>
import functools

import jax
import jax.numpy as jnp
from jax.experimental import pallas as pl
from jax.experimental.pallas import tpu as pltpu


# ---------------------------------------------------------------------------
# Fused kernel (one image per grid step)
# ---------------------------------------------------------------------------

def spatial_attention_kernel(x_ref, w_ref, b_ref, o_ref,
                             avg_pad, max_pad, sum_sc, max_sc, gate_sc,
                             *, C, H, W, K):
    """x_ref/o_ref: (C, H*W) VMEM (lane-dense).  w_ref: (2*K*K,) SMEM taps in
    (c, dy, dx) order with 1/C pre-folded into the avg taps.  b_ref: (1,) SMEM.
    avg_pad/max_pad: (H+2p, W+2p) VMEM padded pooled maps.
    sum_sc/max_sc/gate_sc: (1, H*W) VMEM staging for flat<->2D conversion."""
    HW = H * W
    pad = K // 2
    Hp, Wp = H + 2 * pad, W + 2 * pad

    # ---- channel pooling (sum & max) in lane-dense (C, H*W) layout --------
    def pool_body(c, carry):
        s, m = carry
        row = x_ref[pl.ds(c, 1), :].astype(jnp.float32)        # (1, HW)
        return s + row, jnp.maximum(m, row)

    sum_flat, max_flat = jax.lax.fori_loop(
        0, C, pool_body,
        (jnp.zeros((1, HW), jnp.float32),
         jnp.full((1, HW), -jnp.inf, jnp.float32)),
        unroll=True)
    sum_sc[...] = sum_flat            # 1/C folded into the avg-map taps
    max_sc[...] = max_flat

    # ---- zero only the pad-wide border (interior rewritten every step) ----
    zr = jnp.zeros((pad, Wp), jnp.float32)
    zc = jnp.zeros((Hp, pad), jnp.float32)
    avg_pad[:pad, :] = zr
    avg_pad[pad + H:, :] = zr
    avg_pad[:, :pad] = zc
    avg_pad[:, pad + W:] = zc
    max_pad[:pad, :] = zr
    max_pad[pad + H:, :] = zr
    max_pad[:, :pad] = zc
    max_pad[:, pad + W:] = zc

    # ---- scatter pooled rows into the padded (H, W) maps ------------------
    for y in range(H):
        avg_pad[pad + y:pad + y + 1, pad:pad + W] = sum_sc[:, y * W:(y + 1) * W]
        max_pad[pad + y:pad + y + 1, pad:pad + W] = max_sc[:, y * W:(y + 1) * W]

    # ---- KxK conv (Cout=1) on the VPU; dx lane shifts hoisted -------------
    att = jnp.zeros((H, W), jnp.float32)
    for dx in range(K):
        a_col = avg_pad[:, dx:dx + W]          # (Hp, W): one lane shift per dx
        m_col = max_pad[:, dx:dx + W]
        for dy in range(K):
            att = att + w_ref[dy * K + dx] * a_col[dy:dy + H, :]
            att = att + w_ref[K * K + dy * K + dx] * m_col[dy:dy + H, :]

    gate_hw = jax.nn.sigmoid(att + b_ref[0])                   # (H, W)

    # flatten the gate back to lane-dense (1, H*W)
    for y in range(H):
        gate_sc[:, y * W:(y + 1) * W] = gate_hw[y:y + 1, :]

    # ---- gating multiply in lane-dense layout, channel loop ---------------
    gate = gate_sc[...].astype(o_ref.dtype)    # broadcast/cast once

    @pl.loop(0, C)
    def _(c):
        o_ref[pl.ds(c, 1), :] = x_ref[pl.ds(c, 1), :] * gate


# ---------------------------------------------------------------------------
# Wrapper
# ---------------------------------------------------------------------------

def spatial_attention(x, w_oihw, b):
    """x: (B, C, H, W) NCHW, w_oihw: (1, 2, K, K), b: (1,). Returns (B, C, H, W)."""
    B, C, H, W = x.shape
    K = w_oihw.shape[-1]
    pad = K // 2
    HW = H * W
    Hp, Wp = H + 2 * pad, W + 2 * pad

    x3 = x.reshape(B, C, HW)                       # free lane-dense view
    w = jnp.asarray(w_oihw, jnp.float32)
    # taps: [avg taps (dy,dx) row-major, pre-scaled by 1/C | max taps]
    wflat = jnp.concatenate([(w[0, 0] / C).reshape(-1), w[0, 1].reshape(-1)])
    bflat = jnp.asarray(b, jnp.float32).reshape(1)

    def _rup(a, m):
        return (a + m - 1) // m * m

    itemsize = jnp.dtype(x.dtype).itemsize
    blk_bytes = _rup(C, 8) * _rup(HW, 128) * itemsize            # one (C,HW) tile
    scr_bytes = (2 * _rup(Hp, 8) * _rup(Wp, 128) + 3 * 8 * _rup(HW, 128)) * 4
    footprint = 4 * blk_bytes + scr_bytes        # dbl-buffered in + out + scratch
    vmem_limit = int(min(64 * 2 ** 20, max(16 * 2 ** 20, 2 * footprint)))

    cost = pl.CostEstimate(
        flops=int(B * HW * (3 * C + 4 * K * K + 1)),
        transcendentals=int(B * HW),
        bytes_accessed=int(2 * B * C * HW * itemsize + (2 * K * K + 1) * 4),
    )

    kernel = functools.partial(spatial_attention_kernel, C=C, H=H, W=W, K=K)
    out3 = pl.pallas_call(
        kernel,
        out_shape=jax.ShapeDtypeStruct((B, C, HW), x.dtype),
        grid=(B,),
        in_specs=[
            pl.BlockSpec((None, C, HW), lambda i: (i, 0, 0)),            # x
            pl.BlockSpec(memory_space=pltpu.MemorySpace.SMEM),           # taps
            pl.BlockSpec(memory_space=pltpu.MemorySpace.SMEM),           # bias
        ],
        out_specs=pl.BlockSpec((None, C, HW), lambda i: (i, 0, 0)),
        scratch_shapes=[
            pltpu.VMEM((Hp, Wp), jnp.float32),    # padded avg map
            pltpu.VMEM((Hp, Wp), jnp.float32),    # padded max map
            pltpu.VMEM((1, HW), jnp.float32),     # flat channel-sum staging
            pltpu.VMEM((1, HW), jnp.float32),     # flat channel-max staging
            pltpu.VMEM((1, HW), jnp.float32),     # flat gate
        ],
        compiler_params=pltpu.CompilerParams(
            dimension_semantics=("parallel",),
            vmem_limit_bytes=vmem_limit),
        cost_estimate=cost,
    )(x3, wflat, bflat)
    return out3.reshape(B, C, H, W)


# ---------------------------------------------------------------------------
# Pure-JAX reference (for verification)
# ---------------------------------------------------------------------------

def ref_forward(x, w_oihw, b):
    HI = jax.lax.Precision.HIGHEST
    K = w_oihw.shape[-1]
    pad = K // 2
    avg = jnp.mean(x, axis=1, keepdims=True)
    mx = jnp.max(x, axis=1, keepdims=True)
    concat = jnp.concatenate([avg, mx], axis=1)            # (B, 2, H, W)
    att = jax.lax.conv_general_dilated(
        concat, w_oihw, window_strides=(1, 1),
        padding=[(pad, pad), (pad, pad)],
        dimension_numbers=('NCHW', 'OIHW', 'NCHW'), precision=HI)
    att = att + b.reshape(1, 1, 1, 1)
    return jax.nn.sigmoid(att) * x


# ---------------------------------------------------------------------------

if __name__ == "__main__":
    key = jax.random.PRNGKey(0)
    kx, kw, kb = jax.random.split(key, 3)

    B, C, H, W, K = 2, 4, 16, 16, 7
    x = jax.random.normal(kx, (B, C, H, W), jnp.float32)

    # PyTorch nn.Conv2d(2, 1, 7) default init bounds: U(-1/sqrt(fan_in), +).
    fan_in = 2 * K * K
    bound = 1.0 / float(fan_in) ** 0.5
    w = jax.random.uniform(kw, (1, 2, K, K), jnp.float32, -bound, bound)
    b = jax.random.uniform(kb, (1,), jnp.float32, -bound, bound)

    out = jax.jit(spatial_attention)(x, w, b)
    out = jax.block_until_ready(out)

    ref = ref_forward(x, w, b)
    if not bool(jnp.allclose(out, ref, rtol=1e-3, atol=1e-3)):
        raise SystemExit(
            f"mismatch: max|diff|={float(jnp.max(jnp.abs(out - ref)))}")
    print("KERNEL_OK")
</pallas_src>

<mosaic_0001>
module attributes {stable_mosaic.version = 11 : i64} {
  func.func @spatial_attention_kernel(%arg0: i32, %arg1: memref<1x4x256xf32, #tpu.memory_space<vmem>>, %arg2: memref<98xf32, #tpu.memory_space<smem>>, %arg3: memref<1xf32, #tpu.memory_space<smem>>, %arg4: memref<1x4x256xf32, #tpu.memory_space<vmem>>, %arg5: memref<22x22xf32, #tpu.memory_space<vmem>>, %arg6: memref<22x22xf32, #tpu.memory_space<vmem>>, %arg7: memref<1x256xf32, #tpu.memory_space<vmem>>, %arg8: memref<1x256xf32, #tpu.memory_space<vmem>>, %arg9: memref<1x256xf32, #tpu.memory_space<vmem>>) attributes {dimension_semantics = [#tpu.dimension_semantics<parallel>], iteration_bounds = array<i64: 2>, scalar_prefetch = 0 : i64, scratch_operands = 5 : i64, tpu.core_type = #tpu.core_type<tc>, window_params = [{transform_indices = @transform_0, window_bounds = array<i64: 1, 4, 256>}, {transform_indices = @transform_1, window_bounds = array<i64: 98>}, {transform_indices = @transform_2, window_bounds = array<i64: 1>}, {transform_indices = @transform_3, window_bounds = array<i64: 1, 4, 256>}]} {
    %cst = arith.constant 0.000000e+00 : f32
    %0 = vector.broadcast %cst : f32 to vector<1x256xf32>
    %cst_0 = arith.constant 0xFF800000 : f32
    %1 = vector.broadcast %cst_0 : f32 to vector<1x256xf32>
    %c0_i32 = arith.constant 0 : i32
    %c0 = arith.constant 0 : index
    %2 = arith.index_cast %c0_i32 : i32 to index
    %c0_1 = arith.constant 0 : index
    %3 = vector.load %arg1[%c0, %2, %c0_1] : memref<1x4x256xf32, #tpu.memory_space<vmem>>, vector<1x1x256xf32>
    %4 = vector.shape_cast %3 : vector<1x1x256xf32> to vector<1x256xf32>
    %5 = arith.addf %0, %4 : vector<1x256xf32>
    %6 = arith.maximumf %1, %4 : vector<1x256xf32>
    %c1_i32 = arith.constant 1 : i32
    %c0_2 = arith.constant 0 : index
    %7 = arith.index_cast %c1_i32 : i32 to index
    %c0_3 = arith.constant 0 : index
    %8 = vector.load %arg1[%c0_2, %7, %c0_3] : memref<1x4x256xf32, #tpu.memory_space<vmem>>, vector<1x1x256xf32>
    %9 = vector.shape_cast %8 : vector<1x1x256xf32> to vector<1x256xf32>
    %10 = arith.addf %5, %9 : vector<1x256xf32>
    %11 = arith.maximumf %6, %9 : vector<1x256xf32>
    %c2_i32 = arith.constant 2 : i32
    %c0_4 = arith.constant 0 : index
    %12 = arith.index_cast %c2_i32 : i32 to index
    %c0_5 = arith.constant 0 : index
    %13 = vector.load %arg1[%c0_4, %12, %c0_5] : memref<1x4x256xf32, #tpu.memory_space<vmem>>, vector<1x1x256xf32>
    %14 = vector.shape_cast %13 : vector<1x1x256xf32> to vector<1x256xf32>
    %15 = arith.addf %10, %14 : vector<1x256xf32>
    %16 = arith.maximumf %11, %14 : vector<1x256xf32>
    %c3_i32 = arith.constant 3 : i32
    %c0_6 = arith.constant 0 : index
    %17 = arith.index_cast %c3_i32 : i32 to index
    %c0_7 = arith.constant 0 : index
    %18 = vector.load %arg1[%c0_6, %17, %c0_7] : memref<1x4x256xf32, #tpu.memory_space<vmem>>, vector<1x1x256xf32>
    %19 = vector.shape_cast %18 : vector<1x1x256xf32> to vector<1x256xf32>
    %20 = arith.addf %15, %19 : vector<1x256xf32>
    %21 = arith.maximumf %16, %19 : vector<1x256xf32>
    %c4_i32 = arith.constant 4 : i32
    %c0_8 = arith.constant 0 : index
    %c0_9 = arith.constant 0 : index
    %22 = vector.load %arg7[%c0_8, %c0_9] : memref<1x256xf32, #tpu.memory_space<vmem>>, vector<1x256xf32>
    tpu.vector_store %arg7[%c0_8, %c0_9], %20 {strides = array<i32>} : memref<1x256xf32, #tpu.memory_space<vmem>>, vector<1x256xf32>,
    %c0_10 = arith.constant 0 : index
    %c0_11 = arith.constant 0 : index
    %23 = vector.load %arg8[%c0_10, %c0_11] : memref<1x256xf32, #tpu.memory_space<vmem>>, vector<1x256xf32>
    tpu.vector_store %arg8[%c0_10, %c0_11], %21 {strides = array<i32>} : memref<1x256xf32, #tpu.memory_space<vmem>>, vector<1x256xf32>,
    %cst_12 = arith.constant 0.000000e+00 : f32
    %24 = vector.broadcast %cst_12 : f32 to vector<3x22xf32>
    %cst_13 = arith.constant 0.000000e+00 : f32
    %25 = vector.broadcast %cst_13 : f32 to vector<22x3xf32>
    %c0_14 = arith.constant 0 : index
    %c0_15 = arith.constant 0 : index
    %26 = vector.load %arg5[%c0_14, %c0_15] : memref<22x22xf32, #tpu.memory_space<vmem>>, vector<3x22xf32>
    tpu.vector_store %arg5[%c0_14, %c0_15], %24 {strides = array<i32>} : memref<22x22xf32, #tpu.memory_space<vmem>>, vector<3x22xf32>,
    %c19 = arith.constant 19 : index
    %c0_16 = arith.constant 0 : index
    %27 = vector.load %arg5[%c19, %c0_16] : memref<22x22xf32, #tpu.memory_space<vmem>>, vector<3x22xf32>
    tpu.vector_store %arg5[%c19, %c0_16], %24 {strides = array<i32>} : memref<22x22xf32, #tpu.memory_space<vmem>>, vector<3x22xf32>,
    %c0_17 = arith.constant 0 : index
    %c0_18 = arith.constant 0 : index
    %28 = vector.load %arg5[%c0_17, %c0_18] : memref<22x22xf32, #tpu.memory_space<vmem>>, vector<22x3xf32>
    tpu.vector_store %arg5[%c0_17, %c0_18], %25 {strides = array<i32>} : memref<22x22xf32, #tpu.memory_space<vmem>>, vector<22x3xf32>,
    %c0_19 = arith.constant 0 : index
    %c19_20 = arith.constant 19 : index
    %29 = vector.load %arg5[%c0_19, %c19_20] : memref<22x22xf32, #tpu.memory_space<vmem>>, vector<22x3xf32>
    tpu.vector_store %arg5[%c0_19, %c19_20], %25 {strides = array<i32>} : memref<22x22xf32, #tpu.memory_space<vmem>>, vector<22x3xf32>,
    %c0_21 = arith.constant 0 : index
    %c0_22 = arith.constant 0 : index
    %30 = vector.load %arg6[%c0_21, %c0_22] : memref<22x22xf32, #tpu.memory_space<vmem>>, vector<3x22xf32>
    tpu.vector_store %arg6[%c0_21, %c0_22], %24 {strides = array<i32>} : memref<22x22xf32, #tpu.memory_space<vmem>>, vector<3x22xf32>,
    %c19_23 = arith.constant 19 : index
    %c0_24 = arith.constant 0 : index
    %31 = vector.load %arg6[%c19_23, %c0_24] : memref<22x22xf32, #tpu.memory_space<vmem>>, vector<3x22xf32>
    tpu.vector_store %arg6[%c19_23, %c0_24], %24 {strides = array<i32>} : memref<22x22xf32, #tpu.memory_space<vmem>>, vector<3x22xf32>,
    %c0_25 = arith.constant 0 : index
    %c0_26 = arith.constant 0 : index
    %32 = vector.load %arg6[%c0_25, %c0_26] : memref<22x22xf32, #tpu.memory_space<vmem>>, vector<22x3xf32>
    tpu.vector_store %arg6[%c0_25, %c0_26], %25 {strides = array<i32>} : memref<22x22xf32, #tpu.memory_space<vmem>>, vector<22x3xf32>,
    %c0_27 = arith.constant 0 : index
    %c19_28 = arith.constant 19 : index
    %33 = vector.load %arg6[%c0_27, %c19_28] : memref<22x22xf32, #tpu.memory_space<vmem>>, vector<22x3xf32>
    tpu.vector_store %arg6[%c0_27, %c19_28], %25 {strides = array<i32>} : memref<22x22xf32, #tpu.memory_space<vmem>>, vector<22x3xf32>,
    %c0_29 = arith.constant 0 : index
    %c0_30 = arith.constant 0 : index
    %34 = vector.load %arg7[%c0_29, %c0_30] : memref<1x256xf32, #tpu.memory_space<vmem>>, vector<1x16xf32>
    %c3 = arith.constant 3 : index
    %c3_31 = arith.constant 3 : index
    %35 = vector.load %arg5[%c3, %c3_31] : memref<22x22xf32, #tpu.memory_space<vmem>>, vector<1x16xf32>
    tpu.vector_store %arg5[%c3, %c3_31], %34 {strides = array<i32>} : memref<22x22xf32, #tpu.memory_space<vmem>>, vector<1x16xf32>,
    %c0_32 = arith.constant 0 : index
    %c0_33 = arith.constant 0 : index
    %36 = vector.load %arg8[%c0_32, %c0_33] : memref<1x256xf32, #tpu.memory_space<vmem>>, vector<1x16xf32>
    %c3_34 = arith.constant 3 : index
    %c3_35 = arith.constant 3 : index
    %37 = vector.load %arg6[%c3_34, %c3_35] : memref<22x22xf32, #tpu.memory_space<vmem>>, vector<1x16xf32>
    tpu.vector_store %arg6[%c3_34, %c3_35], %36 {strides = array<i32>} : memref<22x22xf32, #tpu.memory_space<vmem>>, vector<1x16xf32>,
    %c0_36 = arith.constant 0 : index
    %c16 = arith.constant 16 : index
    %38 = vector.load %arg7[%c0_36, %c16] : memref<1x256xf32, #tpu.memory_space<vmem>>, vector<1x16xf32>
    %c4 = arith.constant 4 : index
    %c3_37 = arith.constant 3 : index
    %39 = vector.load %arg5[%c4, %c3_37] : memref<22x22xf32, #tpu.memory_space<vmem>>, vector<1x16xf32>
    tpu.vector_store %arg5[%c4, %c3_37], %38 {strides = array<i32>} : memref<22x22xf32, #tpu.memory_space<vmem>>, vector<1x16xf32>,
    %c0_38 = arith.constant 0 : index
    %c16_39 = arith.constant 16 : index
    %40 = vector.load %arg8[%c0_38, %c16_39] : memref<1x256xf32, #tpu.memory_space<vmem>>, vector<1x16xf32>
    %c4_40 = arith.constant 4 : index
    %c3_41 = arith.constant 3 : index
    %41 = vector.load %arg6[%c4_40, %c3_41] : memref<22x22xf32, #tpu.memory_space<vmem>>, vector<1x16xf32>
    tpu.vector_store %arg6[%c4_40, %c3_41], %40 {strides = array<i32>} : memref<22x22xf32, #tpu.memory_space<vmem>>, vector<1x16xf32>,
    %c0_42 = arith.constant 0 : index
    %c32 = arith.constant 32 : index
    %42 = vector.load %arg7[%c0_42, %c32] : memref<1x256xf32, #tpu.memory_space<vmem>>, vector<1x16xf32>
    %c5 = arith.constant 5 : index
    %c3_43 = arith.constant 3 : index
    %43 = vector.load %arg5[%c5, %c3_43] : memref<22x22xf32, #tpu.memory_space<vmem>>, vector<1x16xf32>
    tpu.vector_store %arg5[%c5, %c3_43], %42 {strides = array<i32>} : memref<22x22xf32, #tpu.memory_space<vmem>>, vector<1x16xf32>,
    %c0_44 = arith.constant 0 : index
    %c32_45 = arith.constant 32 : index
    %44 = vector.load %arg8[%c0_44, %c32_45] : memref<1x256xf32, #tpu.memory_space<vmem>>, vector<1x16xf32>
    %c5_46 = arith.constant 5 : index
    %c3_47 = arith.constant 3 : index
    %45 = vector.load %arg6[%c5_46, %c3_47] : memref<22x22xf32, #tpu.memory_space<vmem>>, vector<1x16xf32>
    tpu.vector_store %arg6[%c5_46, %c3_47], %44 {strides = array<i32>} : memref<22x22xf32, #tpu.memory_space<vmem>>, vector<1x16xf32>,
    %c0_48 = arith.constant 0 : index
    %c48 = arith.constant 48 : index
    %46 = vector.load %arg7[%c0_48, %c48] : memref<1x256xf32, #tpu.memory_space<vmem>>, vector<1x16xf32>
    %c6 = arith.constant 6 : index
    %c3_49 = arith.constant 3 : index
    %47 = vector.load %arg5[%c6, %c3_49] : memref<22x22xf32, #tpu.memory_space<vmem>>, vector<1x16xf32>
    tpu.vector_store %arg5[%c6, %c3_49], %46 {strides = array<i32>} : memref<22x22xf32, #tpu.memory_space<vmem>>, vector<1x16xf32>,
    %c0_50 = arith.constant 0 : index
    %c48_51 = arith.constant 48 : index
    %48 = vector.load %arg8[%c0_50, %c48_51] : memref<1x256xf32, #tpu.memory_space<vmem>>, vector<1x16xf32>
    %c6_52 = arith.constant 6 : index
    %c3_53 = arith.constant 3 : index
    %49 = vector.load %arg6[%c6_52, %c3_53] : memref<22x22xf32, #tpu.memory_space<vmem>>, vector<1x16xf32>
    tpu.vector_store %arg6[%c6_52, %c3_53], %48 {strides = array<i32>} : memref<22x22xf32, #tpu.memory_space<vmem>>, vector<1x16xf32>,
    %c0_54 = arith.constant 0 : index
    %c64 = arith.constant 64 : index
    %50 = vector.load %arg7[%c0_54, %c64] : memref<1x256xf32, #tpu.memory_space<vmem>>, vector<1x16xf32>
    %c7 = arith.constant 7 : index
    %c3_55 = arith.constant 3 : index
    %51 = vector.load %arg5[%c7, %c3_55] : memref<22x22xf32, #tpu.memory_space<vmem>>, vector<1x16xf32>
    tpu.vector_store %arg5[%c7, %c3_55], %50 {strides = array<i32>} : memref<22x22xf32, #tpu.memory_space<vmem>>, vector<1x16xf32>,
    %c0_56 = arith.constant 0 : index
    %c64_57 = arith.constant 64 : index
    %52 = vector.load %arg8[%c0_56, %c64_57] : memref<1x256xf32, #tpu.memory_space<vmem>>, vector<1x16xf32>
    %c7_58 = arith.constant 7 : index
    %c3_59 = arith.constant 3 : index
    %53 = vector.load %arg6[%c7_58, %c3_59] : memref<22x22xf32, #tpu.memory_space<vmem>>, vector<1x16xf32>
    tpu.vector_store %arg6[%c7_58, %c3_59], %52 {strides = array<i32>} : memref<22x22xf32, #tpu.memory_space<vmem>>, vector<1x16xf32>,
    %c0_60 = arith.constant 0 : index
    %c80 = arith.constant 80 : index
    %54 = vector.load %arg7[%c0_60, %c80] : memref<1x256xf32, #tpu.memory_space<vmem>>, vector<1x16xf32>
    %c8 = arith.constant 8 : index
    %c3_61 = arith.constant 3 : index
    %55 = vector.load %arg5[%c8, %c3_61] : memref<22x22xf32, #tpu.memory_space<vmem>>, vector<1x16xf32>
    tpu.vector_store %arg5[%c8, %c3_61], %54 {strides = array<i32>} : memref<22x22xf32, #tpu.memory_space<vmem>>, vector<1x16xf32>,
    %c0_62 = arith.constant 0 : index
    %c80_63 = arith.constant 80 : index
    %56 = vector.load %arg8[%c0_62, %c80_63] : memref<1x256xf32, #tpu.memory_space<vmem>>, vector<1x16xf32>
    %c8_64 = arith.constant 8 : index
    %c3_65 = arith.constant 3 : index
    %57 = vector.load %arg6[%c8_64, %c3_65] : memref<22x22xf32, #tpu.memory_space<vmem>>, vector<1x16xf32>
    tpu.vector_store %arg6[%c8_64, %c3_65], %56 {strides = array<i32>} : memref<22x22xf32, #tpu.memory_space<vmem>>, vector<1x16xf32>,
    %c0_66 = arith.constant 0 : index
    %c96 = arith.constant 96 : index
    %58 = vector.load %arg7[%c0_66, %c96] : memref<1x256xf32, #tpu.memory_space<vmem>>, vector<1x16xf32>
    %c9 = arith.constant 9 : index
    %c3_67 = arith.constant 3 : index
    %59 = vector.load %arg5[%c9, %c3_67] : memref<22x22xf32, #tpu.memory_space<vmem>>, vector<1x16xf32>
    tpu.vector_store %arg5[%c9, %c3_67], %58 {strides = array<i32>} : memref<22x22xf32, #tpu.memory_space<vmem>>, vector<1x16xf32>,
    %c0_68 = arith.constant 0 : index
    %c96_69 = arith.constant 96 : index
    %60 = vector.load %arg8[%c0_68, %c96_69] : memref<1x256xf32, #tpu.memory_space<vmem>>, vector<1x16xf32>
    %c9_70 = arith.constant 9 : index
    %c3_71 = arith.constant 3 : index
    %61 = vector.load %arg6[%c9_70, %c3_71] : memref<22x22xf32, #tpu.memory_space<vmem>>, vector<1x16xf32>
    tpu.vector_store %arg6[%c9_70, %c3_71], %60 {strides = array<i32>} : memref<22x22xf32, #tpu.memory_space<vmem>>, vector<1x16xf32>,
    %c0_72 = arith.constant 0 : index
    %c112 = arith.constant 112 : index
    %62 = vector.load %arg7[%c0_72, %c112] : memref<1x256xf32, #tpu.memory_space<vmem>>, vector<1x16xf32>
    %c10 = arith.constant 10 : index
    %c3_73 = arith.constant 3 : index
    %63 = vector.load %arg5[%c10, %c3_73] : memref<22x22xf32, #tpu.memory_space<vmem>>, vector<1x16xf32>
    tpu.vector_store %arg5[%c10, %c3_73], %62 {strides = array<i32>} : memref<22x22xf32, #tpu.memory_space<vmem>>, vector<1x16xf32>,
    %c0_74 = arith.constant 0 : index
    %c112_75 = arith.constant 112 : index
    %64 = vector.load %arg8[%c0_74, %c112_75] : memref<1x256xf32, #tpu.memory_space<vmem>>, vector<1x16xf32>
    %c10_76 = arith.constant 10 : index
    %c3_77 = arith.constant 3 : index
    %65 = vector.load %arg6[%c10_76, %c3_77] : memref<22x22xf32, #tpu.memory_space<vmem>>, vector<1x16xf32>
    tpu.vector_store %arg6[%c10_76, %c3_77], %64 {strides = array<i32>} : memref<22x22xf32, #tpu.memory_space<vmem>>, vector<1x16xf32>,
    %c0_78 = arith.constant 0 : index
    %c128 = arith.constant 128 : index
    %66 = vector.load %arg7[%c0_78, %c128] : memref<1x256xf32, #tpu.memory_space<vmem>>, vector<1x16xf32>
    %c11 = arith.constant 11 : index
    %c3_79 = arith.constant 3 : index
    %67 = vector.load %arg5[%c11, %c3_79] : memref<22x22xf32, #tpu.memory_space<vmem>>, vector<1x16xf32>
    tpu.vector_store %arg5[%c11, %c3_79], %66 {strides = array<i32>} : memref<22x22xf32, #tpu.memory_space<vmem>>, vector<1x16xf32>,
    %c0_80 = arith.constant 0 : index
    %c128_81 = arith.constant 128 : index
    %68 = vector.load %arg8[%c0_80, %c128_81] : memref<1x256xf32, #tpu.memory_space<vmem>>, vector<1x16xf32>
    %c11_82 = arith.constant 11 : index
    %c3_83 = arith.constant 3 : index
    %69 = vector.load %arg6[%c11_82, %c3_83] : memref<22x22xf32, #tpu.memory_space<vmem>>, vector<1x16xf32>
    tpu.vector_store %arg6[%c11_82, %c3_83], %68 {strides = array<i32>} : memref<22x22xf32, #tpu.memory_space<vmem>>, vector<1x16xf32>,
    %c0_84 = arith.constant 0 : index
    %c144 = arith.constant 144 : index
    %70 = vector.load %arg7[%c0_84, %c144] : memref<1x256xf32, #tpu.memory_space<vmem>>, vector<1x16xf32>
    %c12 = arith.constant 12 : index
    %c3_85 = arith.constant 3 : index
    %71 = vector.load %arg5[%c12, %c3_85] : memref<22x22xf32, #tpu.memory_space<vmem>>, vector<1x16xf32>
    tpu.vector_store %arg5[%c12, %c3_85], %70 {strides = array<i32>} : memref<22x22xf32, #tpu.memory_space<vmem>>, vector<1x16xf32>,
    %c0_86 = arith.constant 0 : index
    %c144_87 = arith.constant 144 : index
    %72 = vector.load %arg8[%c0_86, %c144_87] : memref<1x256xf32, #tpu.memory_space<vmem>>, vector<1x16xf32>
    %c12_88 = arith.constant 12 : index
    %c3_89 = arith.constant 3 : index
    %73 = vector.load %arg6[%c12_88, %c3_89] : memref<22x22xf32, #tpu.memory_space<vmem>>, vector<1x16xf32>
    tpu.vector_store %arg6[%c12_88, %c3_89], %72 {strides = array<i32>} : memref<22x22xf32, #tpu.memory_space<vmem>>, vector<1x16xf32>,
    %c0_90 = arith.constant 0 : index
    %c160 = arith.constant 160 : index
    %74 = vector.load %arg7[%c0_90, %c160] : memref<1x256xf32, #tpu.memory_space<vmem>>, vector<1x16xf32>
    %c13 = arith.constant 13 : index
    %c3_91 = arith.constant 3 : index
    %75 = vector.load %arg5[%c13, %c3_91] : memref<22x22xf32, #tpu.memory_space<vmem>>, vector<1x16xf32>
    tpu.vector_store %arg5[%c13, %c3_91], %74 {strides = array<i32>} : memref<22x22xf32, #tpu.memory_space<vmem>>, vector<1x16xf32>,
    %c0_92 = arith.constant 0 : index
    %c160_93 = arith.constant 160 : index
    %76 = vector.load %arg8[%c0_92, %c160_93] : memref<1x256xf32, #tpu.memory_space<vmem>>, vector<1x16xf32>
    %c13_94 = arith.constant 13 : index
    %c3_95 = arith.constant 3 : index
    %77 = vector.load %arg6[%c13_94, %c3_95] : memref<22x22xf32, #tpu.memory_space<vmem>>, vector<1x16xf32>
    tpu.vector_store %arg6[%c13_94, %c3_95], %76 {strides = array<i32>} : memref<22x22xf32, #tpu.memory_space<vmem>>, vector<1x16xf32>,
    %c0_96 = arith.constant 0 : index
    %c176 = arith.constant 176 : index
    %78 = vector.load %arg7[%c0_96, %c176] : memref<1x256xf32, #tpu.memory_space<vmem>>, vector<1x16xf32>
    %c14 = arith.constant 14 : index
    %c3_97 = arith.constant 3 : index
    %79 = vector.load %arg5[%c14, %c3_97] : memref<22x22xf32, #tpu.memory_space<vmem>>, vector<1x16xf32>
    tpu.vector_store %arg5[%c14, %c3_97], %78 {strides = array<i32>} : memref<22x22xf32, #tpu.memory_space<vmem>>, vector<1x16xf32>,
    %c0_98 = arith.constant 0 : index
    %c176_99 = arith.constant 176 : index
    %80 = vector.load %arg8[%c0_98, %c176_99] : memref<1x256xf32, #tpu.memory_space<vmem>>, vector<1x16xf32>
    %c14_100 = arith.constant 14 : index
    %c3_101 = arith.constant 3 : index
    %81 = vector.load %arg6[%c14_100, %c3_101] : memref<22x22xf32, #tpu.memory_space<vmem>>, vector<1x16xf32>
    tpu.vector_store %arg6[%c14_100, %c3_101], %80 {strides = array<i32>} : memref<22x22xf32, #tpu.memory_space<vmem>>, vector<1x16xf32>,
    %c0_102 = arith.constant 0 : index
    %c192 = arith.constant 192 : index
    %82 = vector.load %arg7[%c0_102, %c192] : memref<1x256xf32, #tpu.memory_space<vmem>>, vector<1x16xf32>
    %c15 = arith.constant 15 : index
    %c3_103 = arith.constant 3 : index
    %83 = vector.load %arg5[%c15, %c3_103] : memref<22x22xf32, #tpu.memory_space<vmem>>, vector<1x16xf32>
    tpu.vector_store %arg5[%c15, %c3_103], %82 {strides = array<i32>} : memref<22x22xf32, #tpu.memory_space<vmem>>, vector<1x16xf32>,
    %c0_104 = arith.constant 0 : index
    %c192_105 = arith.constant 192 : index
    %84 = vector.load %arg8[%c0_104, %c192_105] : memref<1x256xf32, #tpu.memory_space<vmem>>, vector<1x16xf32>
    %c15_106 = arith.constant 15 : index
    %c3_107 = arith.constant 3 : index
    %85 = vector.load %arg6[%c15_106, %c3_107] : memref<22x22xf32, #tpu.memory_space<vmem>>, vector<1x16xf32>
    tpu.vector_store %arg6[%c15_106, %c3_107], %84 {strides = array<i32>} : memref<22x22xf32, #tpu.memory_space<vmem>>, vector<1x16xf32>,
    %c0_108 = arith.constant 0 : index
    %c208 = arith.constant 208 : index
    %86 = vector.load %arg7[%c0_108, %c208] : memref<1x256xf32, #tpu.memory_space<vmem>>, vector<1x16xf32>
    %c16_109 = arith.constant 16 : index
    %c3_110 = arith.constant 3 : index
    %87 = vector.load %arg5[%c16_109, %c3_110] : memref<22x22xf32, #tpu.memory_space<vmem>>, vector<1x16xf32>
    tpu.vector_store %arg5[%c16_109, %c3_110], %86 {strides = array<i32>} : memref<22x22xf32, #tpu.memory_space<vmem>>, vector<1x16xf32>,
    %c0_111 = arith.constant 0 : index
    %c208_112 = arith.constant 208 : index
    %88 = vector.load %arg8[%c0_111, %c208_112] : memref<1x256xf32, #tpu.memory_space<vmem>>, vector<1x16xf32>
    %c16_113 = arith.constant 16 : index
    %c3_114 = arith.constant 3 : index
    %89 = vector.load %arg6[%c16_113, %c3_114] : memref<22x22xf32, #tpu.memory_space<vmem>>, vector<1x16xf32>
    tpu.vector_store %arg6[%c16_113, %c3_114], %88 {strides = array<i32>} : memref<22x22xf32, #tpu.memory_space<vmem>>, vector<1x16xf32>,
    %c0_115 = arith.constant 0 : index
    %c224 = arith.constant 224 : index
    %90 = vector.load %arg7[%c0_115, %c224] : memref<1x256xf32, #tpu.memory_space<vmem>>, vector<1x16xf32>
    %c17 = arith.constant 17 : index
    %c3_116 = arith.constant 3 : index
    %91 = vector.load %arg5[%c17, %c3_116] : memref<22x22xf32, #tpu.memory_space<vmem>>, vector<1x16xf32>
    tpu.vector_store %arg5[%c17, %c3_116], %90 {strides = array<i32>} : memref<22x22xf32, #tpu.memory_space<vmem>>, vector<1x16xf32>,
    %c0_117 = arith.constant 0 : index
    %c224_118 = arith.constant 224 : index
    %92 = vector.load %arg8[%c0_117, %c224_118] : memref<1x256xf32, #tpu.memory_space<vmem>>, vector<1x16xf32>
    %c17_119 = arith.constant 17 : index
    %c3_120 = arith.constant 3 : index
    %93 = vector.load %arg6[%c17_119, %c3_120] : memref<22x22xf32, #tpu.memory_space<vmem>>, vector<1x16xf32>
    tpu.vector_store %arg6[%c17_119, %c3_120], %92 {strides = array<i32>} : memref<22x22xf32, #tpu.memory_space<vmem>>, vector<1x16xf32>,
    %c0_121 = arith.constant 0 : index
    %c240 = arith.constant 240 : index
    %94 = vector.load %arg7[%c0_121, %c240] : memref<1x256xf32, #tpu.memory_space<vmem>>, vector<1x16xf32>
    %c18 = arith.constant 18 : index
    %c3_122 = arith.constant 3 : index
    %95 = vector.load %arg5[%c18, %c3_122] : memref<22x22xf32, #tpu.memory_space<vmem>>, vector<1x16xf32>
    tpu.vector_store %arg5[%c18, %c3_122], %94 {strides = array<i32>} : memref<22x22xf32, #tpu.memory_space<vmem>>, vector<1x16xf32>,
    %c0_123 = arith.constant 0 : index
    %c240_124 = arith.constant 240 : index
    %96 = vector.load %arg8[%c0_123, %c240_124] : memref<1x256xf32, #tpu.memory_space<vmem>>, vector<1x16xf32>
    %c18_125 = arith.constant 18 : index
    %c3_126 = arith.constant 3 : index
    %97 = vector.load %arg6[%c18_125, %c3_126] : memref<22x22xf32, #tpu.memory_space<vmem>>, vector<1x16xf32>
    tpu.vector_store %arg6[%c18_125, %c3_126], %96 {strides = array<i32>} : memref<22x22xf32, #tpu.memory_space<vmem>>, vector<1x16xf32>,
    %cst_127 = arith.constant 0.000000e+00 : f32
    %98 = vector.broadcast %cst_127 : f32 to vector<16x16xf32>
    %c0_128 = arith.constant 0 : index
    %c0_129 = arith.constant 0 : index
    %99 = vector.load %arg5[%c0_128, %c0_129] : memref<22x22xf32, #tpu.memory_space<vmem>>, vector<22x16xf32>
    %c0_130 = arith.constant 0 : index
    %c0_131 = arith.constant 0 : index
    %100 = vector.load %arg6[%c0_130, %c0_131] : memref<22x22xf32, #tpu.memory_space<vmem>>, vector<22x16xf32>
    %c0_132 = arith.constant 0 : index
    %101 = memref.load %arg2[%c0_132] : memref<98xf32, #tpu.memory_space<smem>>
    %102 = vector.extract_strided_slice %99 {offsets = [0, 0], sizes = [16, 16], strides = [1, 1]} : vector<22x16xf32> to vector<16x16xf32>
    %103 = vector.broadcast %101 : f32 to vector<16x16xf32>
    %104 = arith.mulf %103, %102 : vector<16x16xf32>
    %105 = arith.addf %98, %104 : vector<16x16xf32>
    %c49 = arith.constant 49 : index
    %106 = memref.load %arg2[%c49] : memref<98xf32, #tpu.memory_space<smem>>
    %107 = vector.extract_strided_slice %100 {offsets = [0, 0], sizes = [16, 16], strides = [1, 1]} : vector<22x16xf32> to vector<16x16xf32>
    %108 = vector.broadcast %106 : f32 to vector<16x16xf32>
    %109 = arith.mulf %108, %107 : vector<16x16xf32>
    %110 = arith.addf %105, %109 : vector<16x16xf32>
    %c7_133 = arith.constant 7 : index
    %111 = memref.load %arg2[%c7_133] : memref<98xf32, #tpu.memory_space<smem>>
    %112 = vector.extract_strided_slice %99 {offsets = [1, 0], sizes = [16, 16], strides = [1, 1]} : vector<22x16xf32> to vector<16x16xf32>
    %113 = vector.broadcast %111 : f32 to vector<16x16xf32>
    %114 = arith.mulf %113, %112 : vector<16x16xf32>
    %115 = arith.addf %110, %114 : vector<16x16xf32>
    %c56 = arith.constant 56 : index
    %116 = memref.load %arg2[%c56] : memref<98xf32, #tpu.memory_space<smem>>
    %117 = vector.extract_strided_slice %100 {offsets = [1, 0], sizes = [16, 16], strides = [1, 1]} : vector<22x16xf32> to vector<16x16xf32>
    %118 = vector.broadcast %116 : f32 to vector<16x16xf32>
    %119 = arith.mulf %118, %117 : vector<16x16xf32>
    %120 = arith.addf %115, %119 : vector<16x16xf32>
    %c14_134 = arith.constant 14 : index
    %121 = memref.load %arg2[%c14_134] : memref<98xf32, #tpu.memory_space<smem>>
    %122 = vector.extract_strided_slice %99 {offsets = [2, 0], sizes = [16, 16], strides = [1, 1]} : vector<22x16xf32> to vector<16x16xf32>
    %123 = vector.broadcast %121 : f32 to vector<16x16xf32>
    %124 = arith.mulf %123, %122 : vector<16x16xf32>
    %125 = arith.addf %120, %124 : vector<16x16xf32>
    %c63 = arith.constant 63 : index
    %126 = memref.load %arg2[%c63] : memref<98xf32, #tpu.memory_space<smem>>
    %127 = vector.extract_strided_slice %100 {offsets = [2, 0], sizes = [16, 16], strides = [1, 1]} : vector<22x16xf32> to vector<16x16xf32>
    %128 = vector.broadcast %126 : f32 to vector<16x16xf32>
    %129 = arith.mulf %128, %127 : vector<16x16xf32>
    %130 = arith.addf %125, %129 : vector<16x16xf32>
    %c21 = arith.constant 21 : index
    %131 = memref.load %arg2[%c21] : memref<98xf32, #tpu.memory_space<smem>>
    %132 = vector.extract_strided_slice %99 {offsets = [3, 0], sizes = [16, 16], strides = [1, 1]} : vector<22x16xf32> to vector<16x16xf32>
    %133 = vector.broadcast %131 : f32 to vector<16x16xf32>
    %134 = arith.mulf %133, %132 : vector<16x16xf32>
    %135 = arith.addf %130, %134 : vector<16x16xf32>
    %c70 = arith.constant 70 : index
    %136 = memref.load %arg2[%c70] : memref<98xf32, #tpu.memory_space<smem>>
    %137 = vector.extract_strided_slice %100 {offsets = [3, 0], sizes = [16, 16], strides = [1, 1]} : vector<22x16xf32> to vector<16x16xf32>
    %138 = vector.broadcast %136 : f32 to vector<16x16xf32>
    %139 = arith.mulf %138, %137 : vector<16x16xf32>
    %140 = arith.addf %135, %139 : vector<16x16xf32>
    %c28 = arith.constant 28 : index
    %141 = memref.load %arg2[%c28] : memref<98xf32, #tpu.memory_space<smem>>
    %142 = vector.extract_strided_slice %99 {offsets = [4, 0], sizes = [16, 16], strides = [1, 1]} : vector<22x16xf32> to vector<16x16xf32>
    %143 = vector.broadcast %141 : f32 to vector<16x16xf32>
    %144 = arith.mulf %143, %142 : vector<16x16xf32>
    %145 = arith.addf %140, %144 : vector<16x16xf32>
    %c77 = arith.constant 77 : index
    %146 = memref.load %arg2[%c77] : memref<98xf32, #tpu.memory_space<smem>>
    %147 = vector.extract_strided_slice %100 {offsets = [4, 0], sizes = [16, 16], strides = [1, 1]} : vector<22x16xf32> to vector<16x16xf32>
    %148 = vector.broadcast %146 : f32 to vector<16x16xf32>
    %149 = arith.mulf %148, %147 : vector<16x16xf32>
    %150 = arith.addf %145, %149 : vector<16x16xf32>
    %c35 = arith.constant 35 : index
    %151 = memref.load %arg2[%c35] : memref<98xf32, #tpu.memory_space<smem>>
    %152 = vector.extract_strided_slice %99 {offsets = [5, 0], sizes = [16, 16], strides = [1, 1]} : vector<22x16xf32> to vector<16x16xf32>
    %153 = vector.broadcast %151 : f32 to vector<16x16xf32>
    %154 = arith.mulf %153, %152 : vector<16x16xf32>
    %155 = arith.addf %150, %154 : vector<16x16xf32>
    %c84 = arith.constant 84 : index
    %156 = memref.load %arg2[%c84] : memref<98xf32, #tpu.memory_space<smem>>
    %157 = vector.extract_strided_slice %100 {offsets = [5, 0], sizes = [16, 16], strides = [1, 1]} : vector<22x16xf32> to vector<16x16xf32>
    %158 = vector.broadcast %156 : f32 to vector<16x16xf32>
    %159 = arith.mulf %158, %157 : vector<16x16xf32>
    %160 = arith.addf %155, %159 : vector<16x16xf32>
    %c42 = arith.constant 42 : index
    %161 = memref.load %arg2[%c42] : memref<98xf32, #tpu.memory_space<smem>>
    %162 = vector.extract_strided_slice %99 {offsets = [6, 0], sizes = [16, 16], strides = [1, 1]} : vector<22x16xf32> to vector<16x16xf32>
    %163 = vector.broadcast %161 : f32 to vector<16x16xf32>
    %164 = arith.mulf %163, %162 : vector<16x16xf32>
    %165 = arith.addf %160, %164 : vector<16x16xf32>
    %c91 = arith.constant 91 : index
    %166 = memref.load %arg2[%c91] : memref<98xf32, #tpu.memory_space<smem>>
    %167 = vector.extract_strided_slice %100 {offsets = [6, 0], sizes = [16, 16], strides = [1, 1]} : vector<22x16xf32> to vector<16x16xf32>
    %168 = vector.broadcast %166 : f32 to vector<16x16xf32>
    %169 = arith.mulf %168, %167 : vector<16x16xf32>
    %170 = arith.addf %165, %169 : vector<16x16xf32>
    %c0_135 = arith.constant 0 : index
    %c1 = arith.constant 1 : index
    %171 = vector.load %arg5[%c0_135, %c1] : memref<22x22xf32, #tpu.memory_space<vmem>>, vector<22x16xf32>
    %c0_136 = arith.constant 0 : index
    %c1_137 = arith.constant 1 : index
    %172 = vector.load %arg6[%c0_136, %c1_137] : memref<22x22xf32, #tpu.memory_space<vmem>>, vector<22x16xf32>
    %c1_138 = arith.constant 1 : index
    %173 = memref.load %arg2[%c1_138] : memref<98xf32, #tpu.memory_space<smem>>
    %174 = vector.extract_strided_slice %171 {offsets = [0, 0], sizes = [16, 16], strides = [1, 1]} : vector<22x16xf32> to vector<16x16xf32>
    %175 = vector.broadcast %173 : f32 to vector<16x16xf32>
    %176 = arith.mulf %175, %174 : vector<16x16xf32>
    %177 = arith.addf %170, %176 : vector<16x16xf32>
    %c50 = arith.constant 50 : index
    %178 = memref.load %arg2[%c50] : memref<98xf32, #tpu.memory_space<smem>>
    %179 = vector.extract_strided_slice %172 {offsets = [0, 0], sizes = [16, 16], strides = [1, 1]} : vector<22x16xf32> to vector<16x16xf32>
    %180 = vector.broadcast %178 : f32 to vector<16x16xf32>
    %181 = arith.mulf %180, %179 : vector<16x16xf32>
    %182 = arith.addf %177, %181 : vector<16x16xf32>
    %c8_139 = arith.constant 8 : index
    %183 = memref.load %arg2[%c8_139] : memref<98xf32, #tpu.memory_space<smem>>
    %184 = vector.extract_strided_slice %171 {offsets = [1, 0], sizes = [16, 16], strides = [1, 1]} : vector<22x16xf32> to vector<16x16xf32>
    %185 = vector.broadcast %183 : f32 to vector<16x16xf32>
    %186 = arith.mulf %185, %184 : vector<16x16xf32>
    %187 = arith.addf %182, %186 : vector<16x16xf32>
    %c57 = arith.constant 57 : index
    %188 = memref.load %arg2[%c57] : memref<98xf32, #tpu.memory_space<smem>>
    %189 = vector.extract_strided_slice %172 {offsets = [1, 0], sizes = [16, 16], strides = [1, 1]} : vector<22x16xf32> to vector<16x16xf32>
    %190 = vector.broadcast %188 : f32 to vector<16x16xf32>
    %191 = arith.mulf %190, %189 : vector<16x16xf32>
    %192 = arith.addf %187, %191 : vector<16x16xf32>
    %c15_140 = arith.constant 15 : index
    %193 = memref.load %arg2[%c15_140] : memref<98xf32, #tpu.memory_space<smem>>
    %194 = vector.extract_strided_slice %171 {offsets = [2, 0], sizes = [16, 16], strides = [1, 1]} : vector<22x16xf32> to vector<16x16xf32>
    %195 = vector.broadcast %193 : f32 to vector<16x16xf32>
    %196 = arith.mulf %195, %194 : vector<16x16xf32>
    %197 = arith.addf %192, %196 : vector<16x16xf32>
    %c64_141 = arith.constant 64 : index
    %198 = memref.load %arg2[%c64_141] : memref<98xf32, #tpu.memory_space<smem>>
    %199 = vector.extract_strided_slice %172 {offsets = [2, 0], sizes = [16, 16], strides = [1, 1]} : vector<22x16xf32> to vector<16x16xf32>
    %200 = vector.broadcast %198 : f32 to vector<16x16xf32>
    %201 = arith.mulf %200, %199 : vector<16x16xf32>
    %202 = arith.addf %197, %201 : vector<16x16xf32>
    %c22 = arith.constant 22 : index
    %203 = memref.load %arg2[%c22] : memref<98xf32, #tpu.memory_space<smem>>
    %204 = vector.extract_strided_slice %171 {offsets = [3, 0], sizes = [16, 16], strides = [1, 1]} : vector<22x16xf32> to vector<16x16xf32>
    %205 = vector.broadcast %203 : f32 to vector<16x16xf32>
    %206 = arith.mulf %205, %204 : vector<16x16xf32>
    %207 = arith.addf %202, %206 : vector<16x16xf32>
    %c71 = arith.constant 71 : index
    %208 = memref.load %arg2[%c71] : memref<98xf32, #tpu.memory_space<smem>>
    %209 = vector.extract_strided_slice %172 {offsets = [3, 0], sizes = [16, 16], strides = [1, 1]} : vector<22x16xf32> to vector<16x16xf32>
    %210 = vector.broadcast %208 : f32 to vector<16x16xf32>
    %211 = arith.mulf %210, %209 : vector<16x16xf32>
    %212 = arith.addf %207, %211 : vector<16x16xf32>
    %c29 = arith.constant 29 : index
    %213 = memref.load %arg2[%c29] : memref<98xf32, #tpu.memory_space<smem>>
    %214 = vector.extract_strided_slice %171 {offsets = [4, 0], sizes = [16, 16], strides = [1, 1]} : vector<22x16xf32> to vector<16x16xf32>
    %215 = vector.broadcast %213 : f32 to vector<16x16xf32>
    %216 = arith.mulf %215, %214 : vector<16x16xf32>
    %217 = arith.addf %212, %216 : vector<16x16xf32>
    %c78 = arith.constant 78 : index
    %218 = memref.load %arg2[%c78] : memref<98xf32, #tpu.memory_space<smem>>
    %219 = vector.extract_strided_slice %172 {offsets = [4, 0], sizes = [16, 16], strides = [1, 1]} : vector<22x16xf32> to vector<16x16xf32>
    %220 = vector.broadcast %218 : f32 to vector<16x16xf32>
    %221 = arith.mulf %220, %219 : vector<16x16xf32>
    %222 = arith.addf %217, %221 : vector<16x16xf32>
    %c36 = arith.constant 36 : index
    %223 = memref.load %arg2[%c36] : memref<98xf32, #tpu.memory_space<smem>>
    %224 = vector.extract_strided_slice %171 {offsets = [5, 0], sizes = [16, 16], strides = [1, 1]} : vector<22x16xf32> to vector<16x16xf32>
    %225 = vector.broadcast %223 : f32 to vector<16x16xf32>
    %226 = arith.mulf %225, %224 : vector<16x16xf32>
    %227 = arith.addf %222, %226 : vector<16x16xf32>
    %c85 = arith.constant 85 : index
    %228 = memref.load %arg2[%c85] : memref<98xf32, #tpu.memory_space<smem>>
    %229 = vector.extract_strided_slice %172 {offsets = [5, 0], sizes = [16, 16], strides = [1, 1]} : vector<22x16xf32> to vector<16x16xf32>
    %230 = vector.broadcast %228 : f32 to vector<16x16xf32>
    %231 = arith.mulf %230, %229 : vector<16x16xf32>
    %232 = arith.addf %227, %231 : vector<16x16xf32>
    %c43 = arith.constant 43 : index
    %233 = memref.load %arg2[%c43] : memref<98xf32, #tpu.memory_space<smem>>
    %234 = vector.extract_strided_slice %171 {offsets = [6, 0], sizes = [16, 16], strides = [1, 1]} : vector<22x16xf32> to vector<16x16xf32>
    %235 = vector.broadcast %233 : f32 to vector<16x16xf32>
    %236 = arith.mulf %235, %234 : vector<16x16xf32>
    %237 = arith.addf %232, %236 : vector<16x16xf32>
    %c92 = arith.constant 92 : index
    %238 = memref.load %arg2[%c92] : memref<98xf32, #tpu.memory_space<smem>>
    %239 = vector.extract_strided_slice %172 {offsets = [6, 0], sizes = [16, 16], strides = [1, 1]} : vector<22x16xf32> to vector<16x16xf32>
    %240 = vector.broadcast %238 : f32 to vector<16x16xf32>
    %241 = arith.mulf %240, %239 : vector<16x16xf32>
    %242 = arith.addf %237, %241 : vector<16x16xf32>
    %c0_142 = arith.constant 0 : index
    %c2 = arith.constant 2 : index
    %243 = vector.load %arg5[%c0_142, %c2] : memref<22x22xf32, #tpu.memory_space<vmem>>, vector<22x16xf32>
    %c0_143 = arith.constant 0 : index
    %c2_144 = arith.constant 2 : index
    %244 = vector.load %arg6[%c0_143, %c2_144] : memref<22x22xf32, #tpu.memory_space<vmem>>, vector<22x16xf32>
    %c2_145 = arith.constant 2 : index
    %245 = memref.load %arg2[%c2_145] : memref<98xf32, #tpu.memory_space<smem>>
    %246 = vector.extract_strided_slice %243 {offsets = [0, 0], sizes = [16, 16], strides = [1, 1]} : vector<22x16xf32> to vector<16x16xf32>
    %247 = vector.broadcast %245 : f32 to vector<16x16xf32>
    %248 = arith.mulf %247, %246 : vector<16x16xf32>
    %249 = arith.addf %242, %248 : vector<16x16xf32>
    %c51 = arith.constant 51 : index
    %250 = memref.load %arg2[%c51] : memref<98xf32, #tpu.memory_space<smem>>
    %251 = vector.extract_strided_slice %244 {offsets = [0, 0], sizes = [16, 16], strides = [1, 1]} : vector<22x16xf32> to vector<16x16xf32>
    %252 = vector.broadcast %250 : f32 to vector<16x16xf32>
    %253 = arith.mulf %252, %251 : vector<16x16xf32>
    %254 = arith.addf %249, %253 : vector<16x16xf32>
    %c9_146 = arith.constant 9 : index
    %255 = memref.load %arg2[%c9_146] : memref<98xf32, #tpu.memory_space<smem>>
    %256 = vector.extract_strided_slice %243 {offsets = [1, 0], sizes = [16, 16], strides = [1, 1]} : vector<22x16xf32> to vector<16x16xf32>
    %257 = vector.broadcast %255 : f32 to vector<16x16xf32>
    %258 = arith.mulf %257, %256 : vector<16x16xf32>
    %259 = arith.addf %254, %258 : vector<16x16xf32>
    %c58 = arith.constant 58 : index
    %260 = memref.load %arg2[%c58] : memref<98xf32, #tpu.memory_space<smem>>
    %261 = vector.extract_strided_slice %244 {offsets = [1, 0], sizes = [16, 16], strides = [1, 1]} : vector<22x16xf32> to vector<16x16xf32>
    %262 = vector.broadcast %260 : f32 to vector<16x16xf32>
    %263 = arith.mulf %262, %261 : vector<16x16xf32>
    %264 = arith.addf %259, %263 : vector<16x16xf32>
    %c16_147 = arith.constant 16 : index
    %265 = memref.load %arg2[%c16_147] : memref<98xf32, #tpu.memory_space<smem>>
    %266 = vector.extract_strided_slice %243 {offsets = [2, 0], sizes = [16, 16], strides = [1, 1]} : vector<22x16xf32> to vector<16x16xf32>
    %267 = vector.broadcast %265 : f32 to vector<16x16xf32>
    %268 = arith.mulf %267, %266 : vector<16x16xf32>
    %269 = arith.addf %264, %268 : vector<16x16xf32>
    %c65 = arith.constant 65 : index
    %270 = memref.load %arg2[%c65] : memref<98xf32, #tpu.memory_space<smem>>
    %271 = vector.extract_strided_slice %244 {offsets = [2, 0], sizes = [16, 16], strides = [1, 1]} : vector<22x16xf32> to vector<16x16xf32>
    %272 = vector.broadcast %270 : f32 to vector<16x16xf32>
    %273 = arith.mulf %272, %271 : vector<16x16xf32>
    %274 = arith.addf %269, %273 : vector<16x16xf32>
    %c23 = arith.constant 23 : index
    %275 = memref.load %arg2[%c23] : memref<98xf32, #tpu.memory_space<smem>>
    %276 = vector.extract_strided_slice %243 {offsets = [3, 0], sizes = [16, 16], strides = [1, 1]} : vector<22x16xf32> to vector<16x16xf32>
    %277 = vector.broadcast %275 : f32 to vector<16x16xf32>
    %278 = arith.mulf %277, %276 : vector<16x16xf32>
    %279 = arith.addf %274, %278 : vector<16x16xf32>
    %c72 = arith.constant 72 : index
    %280 = memref.load %arg2[%c72] : memref<98xf32, #tpu.memory_space<smem>>
    %281 = vector.extract_strided_slice %244 {offsets = [3, 0], sizes = [16, 16], strides = [1, 1]} : vector<22x16xf32> to vector<16x16xf32>
    %282 = vector.broadcast %280 : f32 to vector<16x16xf32>
    %283 = arith.mulf %282, %281 : vector<16x16xf32>
    %284 = arith.addf %279, %283 : vector<16x16xf32>
    %c30 = arith.constant 30 : index
    %285 = memref.load %arg2[%c30] : memref<98xf32, #tpu.memory_space<smem>>
    %286 = vector.extract_strided_slice %243 {offsets = [4, 0], sizes = [16, 16], strides = [1, 1]} : vector<22x16xf32> to vector<16x16xf32>
    %287 = vector.broadcast %285 : f32 to vector<16x16xf32>
    %288 = arith.mulf %287, %286 : vector<16x16xf32>
    %289 = arith.addf %284, %288 : vector<16x16xf32>
    %c79 = arith.constant 79 : index
    %290 = memref.load %arg2[%c79] : memref<98xf32, #tpu.memory_space<smem>>
    %291 = vector.extract_strided_slice %244 {offsets = [4, 0], sizes = [16, 16], strides = [1, 1]} : vector<22x16xf32> to vector<16x16xf32>
    %292 = vector.broadcast %290 : f32 to vector<16x16xf32>
    %293 = arith.mulf %292, %291 : vector<16x16xf32>
    %294 = arith.addf %289, %293 : vector<16x16xf32>
    %c37 = arith.constant 37 : index
    %295 = memref.load %arg2[%c37] : memref<98xf32, #tpu.memory_space<smem>>
    %296 = vector.extract_strided_slice %243 {offsets = [5, 0], sizes = [16, 16], strides = [1, 1]} : vector<22x16xf32> to vector<16x16xf32>
    %297 = vector.broadcast %295 : f32 to vector<16x16xf32>
    %298 = arith.mulf %297, %296 : vector<16x16xf32>
    %299 = arith.addf %294, %298 : vector<16x16xf32>
    %c86 = arith.constant 86 : index
    %300 = memref.load %arg2[%c86] : memref<98xf32, #tpu.memory_space<smem>>
    %301 = vector.extract_strided_slice %244 {offsets = [5, 0], sizes = [16, 16], strides = [1, 1]} : vector<22x16xf32> to vector<16x16xf32>
    %302 = vector.broadcast %300 : f32 to vector<16x16xf32>
    %303 = arith.mulf %302, %301 : vector<16x16xf32>
    %304 = arith.addf %299, %303 : vector<16x16xf32>
    %c44 = arith.constant 44 : index
    %305 = memref.load %arg2[%c44] : memref<98xf32, #tpu.memory_space<smem>>
    %306 = vector.extract_strided_slice %243 {offsets = [6, 0], sizes = [16, 16], strides = [1, 1]} : vector<22x16xf32> to vector<16x16xf32>
    %307 = vector.broadcast %305 : f32 to vector<16x16xf32>
    %308 = arith.mulf %307, %306 : vector<16x16xf32>
    %309 = arith.addf %304, %308 : vector<16x16xf32>
    %c93 = arith.constant 93 : index
    %310 = memref.load %arg2[%c93] : memref<98xf32, #tpu.memory_space<smem>>
    %311 = vector.extract_strided_slice %244 {offsets = [6, 0], sizes = [16, 16], strides = [1, 1]} : vector<22x16xf32> to vector<16x16xf32>
    %312 = vector.broadcast %310 : f32 to vector<16x16xf32>
    %313 = arith.mulf %312, %311 : vector<16x16xf32>
    %314 = arith.addf %309, %313 : vector<16x16xf32>
    %c0_148 = arith.constant 0 : index
    %c3_149 = arith.constant 3 : index
    %315 = vector.load %arg5[%c0_148, %c3_149] : memref<22x22xf32, #tpu.memory_space<vmem>>, vector<22x16xf32>
    %c0_150 = arith.constant 0 : index
    %c3_151 = arith.constant 3 : index
    %316 = vector.load %arg6[%c0_150, %c3_151] : memref<22x22xf32, #tpu.memory_space<vmem>>, vector<22x16xf32>
    %c3_152 = arith.constant 3 : index
    %317 = memref.load %arg2[%c3_152] : memref<98xf32, #tpu.memory_space<smem>>
    %318 = vector.extract_strided_slice %315 {offsets = [0, 0], sizes = [16, 16], strides = [1, 1]} : vector<22x16xf32> to vector<16x16xf32>
    %319 = vector.broadcast %317 : f32 to vector<16x16xf32>
    %320 = arith.mulf %319, %318 : vector<16x16xf32>
    %321 = arith.addf %314, %320 : vector<16x16xf32>
    %c52 = arith.constant 52 : index
    %322 = memref.load %arg2[%c52] : memref<98xf32, #tpu.memory_space<smem>>
    %323 = vector.extract_strided_slice %316 {offsets = [0, 0], sizes = [16, 16], strides = [1, 1]} : vector<22x16xf32> to vector<16x16xf32>
    %324 = vector.broadcast %322 : f32 to vector<16x16xf32>
    %325 = arith.mulf %324, %323 : vector<16x16xf32>
    %326 = arith.addf %321, %325 : vector<16x16xf32>
    %c10_153 = arith.constant 10 : index
    %327 = memref.load %arg2[%c10_153] : memref<98xf32, #tpu.memory_space<smem>>
    %328 = vector.extract_strided_slice %315 {offsets = [1, 0], sizes = [16, 16], strides = [1, 1]} : vector<22x16xf32> to vector<16x16xf32>
    %329 = vector.broadcast %327 : f32 to vector<16x16xf32>
    %330 = arith.mulf %329, %328 : vector<16x16xf32>
    %331 = arith.addf %326, %330 : vector<16x16xf32>
    %c59 = arith.constant 59 : index
    %332 = memref.load %arg2[%c59] : memref<98xf32, #tpu.memory_space<smem>>
    %333 = vector.extract_strided_slice %316 {offsets = [1, 0], sizes = [16, 16], strides = [1, 1]} : vector<22x16xf32> to vector<16x16xf32>
    %334 = vector.broadcast %332 : f32 to vector<16x16xf32>
    %335 = arith.mulf %334, %333 : vector<16x16xf32>
    %336 = arith.addf %331, %335 : vector<16x16xf32>
    %c17_154 = arith.constant 17 : index
    %337 = memref.load %arg2[%c17_154] : memref<98xf32, #tpu.memory_space<smem>>
    %338 = vector.extract_strided_slice %315 {offsets = [2, 0], sizes = [16, 16], strides = [1, 1]} : vector<22x16xf32> to vector<16x16xf32>
    %339 = vector.broadcast %337 : f32 to vector<16x16xf32>
    %340 = arith.mulf %339, %338 : vector<16x16xf32>
    %341 = arith.addf %336, %340 : vector<16x16xf32>
    %c66 = arith.constant 66 : index
    %342 = memref.load %arg2[%c66] : memref<98xf32, #tpu.memory_space<smem>>
    %343 = vector.extract_strided_slice %316 {offsets = [2, 0], sizes = [16, 16], strides = [1, 1]} : vector<22x16xf32> to vector<16x16xf32>
    %344 = vector.broadcast %342 : f32 to vector<16x16xf32>
    %345 = arith.mulf %344, %343 : vector<16x16xf32>
    %346 = arith.addf %341, %345 : vector<16x16xf32>
    %c24 = arith.constant 24 : index
    %347 = memref.load %arg2[%c24] : memref<98xf32, #tpu.memory_space<smem>>
    %348 = vector.extract_strided_slice %315 {offsets = [3, 0], sizes = [16, 16], strides = [1, 1]} : vector<22x16xf32> to vector<16x16xf32>
    %349 = vector.broadcast %347 : f32 to vector<16x16xf32>
    %350 = arith.mulf %349, %348 : vector<16x16xf32>
    %351 = arith.addf %346, %350 : vector<16x16xf32>
    %c73 = arith.constant 73 : index
    %352 = memref.load %arg2[%c73] : memref<98xf32, #tpu.memory_space<smem>>
    %353 = vector.extract_strided_slice %316 {offsets = [3, 0], sizes = [16, 16], strides = [1, 1]} : vector<22x16xf32> to vector<16x16xf32>
    %354 = vector.broadcast %352 : f32 to vector<16x16xf32>
    %355 = arith.mulf %354, %353 : vector<16x16xf32>
    %356 = arith.addf %351, %355 : vector<16x16xf32>
    %c31 = arith.constant 31 : index
    %357 = memref.load %arg2[%c31] : memref<98xf32, #tpu.memory_space<smem>>
    %358 = vector.extract_strided_slice %315 {offsets = [4, 0], sizes = [16, 16], strides = [1, 1]} : vector<22x16xf32> to vector<16x16xf32>
    %359 = vector.broadcast %357 : f32 to vector<16x16xf32>
    %360 = arith.mulf %359, %358 : vector<16x16xf32>
    %361 = arith.addf %356, %360 : vector<16x16xf32>
    %c80_155 = arith.constant 80 : index
    %362 = memref.load %arg2[%c80_155] : memref<98xf32, #tpu.memory_space<smem>>
    %363 = vector.extract_strided_slice %316 {offsets = [4, 0], sizes = [16, 16], strides = [1, 1]} : vector<22x16xf32> to vector<16x16xf32>
    %364 = vector.broadcast %362 : f32 to vector<16x16xf32>
    %365 = arith.mulf %364, %363 : vector<16x16xf32>
    %366 = arith.addf %361, %365 : vector<16x16xf32>
    %c38 = arith.constant 38 : index
    %367 = memref.load %arg2[%c38] : memref<98xf32, #tpu.memory_space<smem>>
    %368 = vector.extract_strided_slice %315 {offsets = [5, 0], sizes = [16, 16], strides = [1, 1]} : vector<22x16xf32> to vector<16x16xf32>
    %369 = vector.broadcast %367 : f32 to vector<16x16xf32>
    %370 = arith.mulf %369, %368 : vector<16x16xf32>
    %371 = arith.addf %366, %370 : vector<16x16xf32>
    %c87 = arith.constant 87 : index
    %372 = memref.load %arg2[%c87] : memref<98xf32, #tpu.memory_space<smem>>
    %373 = vector.extract_strided_slice %316 {offsets = [5, 0], sizes = [16, 16], strides = [1, 1]} : vector<22x16xf32> to vector<16x16xf32>
    %374 = vector.broadcast %372 : f32 to vector<16x16xf32>
    %375 = arith.mulf %374, %373 : vector<16x16xf32>
    %376 = arith.addf %371, %375 : vector<16x16xf32>
    %c45 = arith.constant 45 : index
    %377 = memref.load %arg2[%c45] : memref<98xf32, #tpu.memory_space<smem>>
    %378 = vector.extract_strided_slice %315 {offsets = [6, 0], sizes = [16, 16], strides = [1, 1]} : vector<22x16xf32> to vector<16x16xf32>
    %379 = vector.broadcast %377 : f32 to vector<16x16xf32>
    %380 = arith.mulf %379, %378 : vector<16x16xf32>
    %381 = arith.addf %376, %380 : vector<16x16xf32>
    %c94 = arith.constant 94 : index
    %382 = memref.load %arg2[%c94] : memref<98xf32, #tpu.memory_space<smem>>
    %383 = vector.extract_strided_slice %316 {offsets = [6, 0], sizes = [16, 16], strides = [1, 1]} : vector<22x16xf32> to vector<16x16xf32>
    %384 = vector.broadcast %382 : f32 to vector<16x16xf32>
    %385 = arith.mulf %384, %383 : vector<16x16xf32>
    %386 = arith.addf %381, %385 : vector<16x16xf32>
    %c0_156 = arith.constant 0 : index
    %c4_157 = arith.constant 4 : index
    %387 = vector.load %arg5[%c0_156, %c4_157] : memref<22x22xf32, #tpu.memory_space<vmem>>, vector<22x16xf32>
    %c0_158 = arith.constant 0 : index
    %c4_159 = arith.constant 4 : index
    %388 = vector.load %arg6[%c0_158, %c4_159] : memref<22x22xf32, #tpu.memory_space<vmem>>, vector<22x16xf32>
    %c4_160 = arith.constant 4 : index
    %389 = memref.load %arg2[%c4_160] : memref<98xf32, #tpu.memory_space<smem>>
    %390 = vector.extract_strided_slice %387 {offsets = [0, 0], sizes = [16, 16], strides = [1, 1]} : vector<22x16xf32> to vector<16x16xf32>
    %391 = vector.broadcast %389 : f32 to vector<16x16xf32>
    %392 = arith.mulf %391, %390 : vector<16x16xf32>
    %393 = arith.addf %386, %392 : vector<16x16xf32>
    %c53 = arith.constant 53 : index
    %394 = memref.load %arg2[%c53] : memref<98xf32, #tpu.memory_space<smem>>
    %395 = vector.extract_strided_slice %388 {offsets = [0, 0], sizes = [16, 16], strides = [1, 1]} : vector<22x16xf32> to vector<16x16xf32>
    %396 = vector.broadcast %394 : f32 to vector<16x16xf32>
    %397 = arith.mulf %396, %395 : vector<16x16xf32>
    %398 = arith.addf %393, %397 : vector<16x16xf32>
    %c11_161 = arith.constant 11 : index
    %399 = memref.load %arg2[%c11_161] : memref<98xf32, #tpu.memory_space<smem>>
    %400 = vector.extract_strided_slice %387 {offsets = [1, 0], sizes = [16, 16], strides = [1, 1]} : vector<22x16xf32> to vector<16x16xf32>
    %401 = vector.broadcast %399 : f32 to vector<16x16xf32>
    %402 = arith.mulf %401, %400 : vector<16x16xf32>
    %403 = arith.addf %398, %402 : vector<16x16xf32>
    %c60 = arith.constant 60 : index
    %404 = memref.load %arg2[%c60] : memref<98xf32, #tpu.memory_space<smem>>
    %405 = vector.extract_strided_slice %388 {offsets = [1, 0], sizes = [16, 16], strides = [1, 1]} : vector<22x16xf32> to vector<16x16xf32>
    %406 = vector.broadcast %404 : f32 to vector<16x16xf32>
    %407 = arith.mulf %406, %405 : vector<16x16xf32>
    %408 = arith.addf %403, %407 : vector<16x16xf32>
    %c18_162 = arith.constant 18 : index
    %409 = memref.load %arg2[%c18_162] : memref<98xf32, #tpu.memory_space<smem>>
    %410 = vector.extract_strided_slice %387 {offsets = [2, 0], sizes = [16, 16], strides = [1, 1]} : vector<22x16xf32> to vector<16x16xf32>
    %411 = vector.broadcast %409 : f32 to vector<16x16xf32>
    %412 = arith.mulf %411, %410 : vector<16x16xf32>
    %413 = arith.addf %408, %412 : vector<16x16xf32>
    %c67 = arith.constant 67 : index
    %414 = memref.load %arg2[%c67] : memref<98xf32, #tpu.memory_space<smem>>
    %415 = vector.extract_strided_slice %388 {offsets = [2, 0], sizes = [16, 16], strides = [1, 1]} : vector<22x16xf32> to vector<16x16xf32>
    %416 = vector.broadcast %414 : f32 to vector<16x16xf32>
    %417 = arith.mulf %416, %415 : vector<16x16xf32>
    %418 = arith.addf %413, %417 : vector<16x16xf32>
    %c25 = arith.constant 25 : index
    %419 = memref.load %arg2[%c25] : memref<98xf32, #tpu.memory_space<smem>>
    %420 = vector.extract_strided_slice %387 {offsets = [3, 0], sizes = [16, 16], strides = [1, 1]} : vector<22x16xf32> to vector<16x16xf32>
    %421 = vector.broadcast %419 : f32 to vector<16x16xf32>
    %422 = arith.mulf %421, %420 : vector<16x16xf32>
    %423 = arith.addf %418, %422 : vector<16x16xf32>
    %c74 = arith.constant 74 : index
    %424 = memref.load %arg2[%c74] : memref<98xf32, #tpu.memory_space<smem>>
    %425 = vector.extract_strided_slice %388 {offsets = [3, 0], sizes = [16, 16], strides = [1, 1]} : vector<22x16xf32> to vector<16x16xf32>
    %426 = vector.broadcast %424 : f32 to vector<16x16xf32>
    %427 = arith.mulf %426, %425 : vector<16x16xf32>
    %428 = arith.addf %423, %427 : vector<16x16xf32>
    %c32_163 = arith.constant 32 : index
    %429 = memref.load %arg2[%c32_163] : memref<98xf32, #tpu.memory_space<smem>>
    %430 = vector.extract_strided_slice %387 {offsets = [4, 0], sizes = [16, 16], strides = [1, 1]} : vector<22x16xf32> to vector<16x16xf32>
    %431 = vector.broadcast %429 : f32 to vector<16x16xf32>
    %432 = arith.mulf %431, %430 : vector<16x16xf32>
    %433 = arith.addf %428, %432 : vector<16x16xf32>
    %c81 = arith.constant 81 : index
    %434 = memref.load %arg2[%c81] : memref<98xf32, #tpu.memory_space<smem>>
    %435 = vector.extract_strided_slice %388 {offsets = [4, 0], sizes = [16, 16], strides = [1, 1]} : vector<22x16xf32> to vector<16x16xf32>
    %436 = vector.broadcast %434 : f32 to vector<16x16xf32>
    %437 = arith.mulf %436, %435 : vector<16x16xf32>
    %438 = arith.addf %433, %437 : vector<16x16xf32>
    %c39 = arith.constant 39 : index
    %439 = memref.load %arg2[%c39] : memref<98xf32, #tpu.memory_space<smem>>
    %440 = vector.extract_strided_slice %387 {offsets = [5, 0], sizes = [16, 16], strides = [1, 1]} : vector<22x16xf32> to vector<16x16xf32>
    %441 = vector.broadcast %439 : f32 to vector<16x16xf32>
    %442 = arith.mulf %441, %440 : vector<16x16xf32>
    %443 = arith.addf %438, %442 : vector<16x16xf32>
    %c88 = arith.constant 88 : index
    %444 = memref.load %arg2[%c88] : memref<98xf32, #tpu.memory_space<smem>>
    %445 = vector.extract_strided_slice %388 {offsets = [5, 0], sizes = [16, 16], strides = [1, 1]} : vector<22x16xf32> to vector<16x16xf32>
    %446 = vector.broadcast %444 : f32 to vector<16x16xf32>
    %447 = arith.mulf %446, %445 : vector<16x16xf32>
    %448 = arith.addf %443, %447 : vector<16x16xf32>
    %c46 = arith.constant 46 : index
    %449 = memref.load %arg2[%c46] : memref<98xf32, #tpu.memory_space<smem>>
    %450 = vector.extract_strided_slice %387 {offsets = [6, 0], sizes = [16, 16], strides = [1, 1]} : vector<22x16xf32> to vector<16x16xf32>
    %451 = vector.broadcast %449 : f32 to vector<16x16xf32>
    %452 = arith.mulf %451, %450 : vector<16x16xf32>
    %453 = arith.addf %448, %452 : vector<16x16xf32>
    %c95 = arith.constant 95 : index
    %454 = memref.load %arg2[%c95] : memref<98xf32, #tpu.memory_space<smem>>
    %455 = vector.extract_strided_slice %388 {offsets = [6, 0], sizes = [16, 16], strides = [1, 1]} : vector<22x16xf32> to vector<16x16xf32>
    %456 = vector.broadcast %454 : f32 to vector<16x16xf32>
    %457 = arith.mulf %456, %455 : vector<16x16xf32>
    %458 = arith.addf %453, %457 : vector<16x16xf32>
    %c0_164 = arith.constant 0 : index
    %c5_165 = arith.constant 5 : index
    %459 = vector.load %arg5[%c0_164, %c5_165] : memref<22x22xf32, #tpu.memory_space<vmem>>, vector<22x16xf32>
    %c0_166 = arith.constant 0 : index
    %c5_167 = arith.constant 5 : index
    %460 = vector.load %arg6[%c0_166, %c5_167] : memref<22x22xf32, #tpu.memory_space<vmem>>, vector<22x16xf32>
    %c5_168 = arith.constant 5 : index
    %461 = memref.load %arg2[%c5_168] : memref<98xf32, #tpu.memory_space<smem>>
    %462 = vector.extract_strided_slice %459 {offsets = [0, 0], sizes = [16, 16], strides = [1, 1]} : vector<22x16xf32> to vector<16x16xf32>
    %463 = vector.broadcast %461 : f32 to vector<16x16xf32>
    %464 = arith.mulf %463, %462 : vector<16x16xf32>
    %465 = arith.addf %458, %464 : vector<16x16xf32>
    %c54 = arith.constant 54 : index
    %466 = memref.load %arg2[%c54] : memref<98xf32, #tpu.memory_space<smem>>
    %467 = vector.extract_strided_slice %460 {offsets = [0, 0], sizes = [16, 16], strides = [1, 1]} : vector<22x16xf32> to vector<16x16xf32>
    %468 = vector.broadcast %466 : f32 to vector<16x16xf32>
    %469 = arith.mulf %468, %467 : vector<16x16xf32>
    %470 = arith.addf %465, %469 : vector<16x16xf32>
    %c12_169 = arith.constant 12 : index
    %471 = memref.load %arg2[%c12_169] : memref<98xf32, #tpu.memory_space<smem>>
    %472 = vector.extract_strided_slice %459 {offsets = [1, 0], sizes = [16, 16], strides = [1, 1]} : vector<22x16xf32> to vector<16x16xf32>
    %473 = vector.broadcast %471 : f32 to vector<16x16xf32>
    %474 = arith.mulf %473, %472 : vector<16x16xf32>
    %475 = arith.addf %470, %474 : vector<16x16xf32>
    %c61 = arith.constant 61 : index
    %476 = memref.load %arg2[%c61] : memref<98xf32, #tpu.memory_space<smem>>
    %477 = vector.extract_strided_slice %460 {offsets = [1, 0], sizes = [16, 16], strides = [1, 1]} : vector<22x16xf32> to vector<16x16xf32>
    %478 = vector.broadcast %476 : f32 to vector<16x16xf32>
    %479 = arith.mulf %478, %477 : vector<16x16xf32>
    %480 = arith.addf %475, %479 : vector<16x16xf32>
    %c19_170 = arith.constant 19 : index
    %481 = memref.load %arg2[%c19_170] : memref<98xf32, #tpu.memory_space<smem>>
    %482 = vector.extract_strided_slice %459 {offsets = [2, 0], sizes = [16, 16], strides = [1, 1]} : vector<22x16xf32> to vector<16x16xf32>
    %483 = vector.broadcast %481 : f32 to vector<16x16xf32>
    %484 = arith.mulf %483, %482 : vector<16x16xf32>
    %485 = arith.addf %480, %484 : vector<16x16xf32>
    %c68 = arith.constant 68 : index
    %486 = memref.load %arg2[%c68] : memref<98xf32, #tpu.memory_space<smem>>
    %487 = vector.extract_strided_slice %460 {offsets = [2, 0], sizes = [16, 16], strides = [1, 1]} : vector<22x16xf32> to vector<16x16xf32>
    %488 = vector.broadcast %486 : f32 to vector<16x16xf32>
    %489 = arith.mulf %488, %487 : vector<16x16xf32>
    %490 = arith.addf %485, %489 : vector<16x16xf32>
    %c26 = arith.constant 26 : index
    %491 = memref.load %arg2[%c26] : memref<98xf32, #tpu.memory_space<smem>>
    %492 = vector.extract_strided_slice %459 {offsets = [3, 0], sizes = [16, 16], strides = [1, 1]} : vector<22x16xf32> to vector<16x16xf32>
    %493 = vector.broadcast %491 : f32 to vector<16x16xf32>
    %494 = arith.mulf %493, %492 : vector<16x16xf32>
    %495 = arith.addf %490, %494 : vector<16x16xf32>
    %c75 = arith.constant 75 : index
    %496 = memref.load %arg2[%c75] : memref<98xf32, #tpu.memory_space<smem>>
    %497 = vector.extract_strided_slice %460 {offsets = [3, 0], sizes = [16, 16], strides = [1, 1]} : vector<22x16xf32> to vector<16x16xf32>
    %498 = vector.broadcast %496 : f32 to vector<16x16xf32>
    %499 = arith.mulf %498, %497 : vector<16x16xf32>
    %500 = arith.addf %495, %499 : vector<16x16xf32>
    %c33 = arith.constant 33 : index
    %501 = memref.load %arg2[%c33] : memref<98xf32, #tpu.memory_space<smem>>
    %502 = vector.extract_strided_slice %459 {offsets = [4, 0], sizes = [16, 16], strides = [1, 1]} : vector<22x16xf32> to vector<16x16xf32>
    %503 = vector.broadcast %501 : f32 to vector<16x16xf32>
    %504 = arith.mulf %503, %502 : vector<16x16xf32>
    %505 = arith.addf %500, %504 : vector<16x16xf32>
    %c82 = arith.constant 82 : index
    %506 = memref.load %arg2[%c82] : memref<98xf32, #tpu.memory_space<smem>>
    %507 = vector.extract_strided_slice %460 {offsets = [4, 0], sizes = [16, 16], strides = [1, 1]} : vector<22x16xf32> to vector<16x16xf32>
    %508 = vector.broadcast %506 : f32 to vector<16x16xf32>
    %509 = arith.mulf %508, %507 : vector<16x16xf32>
    %510 = arith.addf %505, %509 : vector<16x16xf32>
    %c40 = arith.constant 40 : index
    %511 = memref.load %arg2[%c40] : memref<98xf32, #tpu.memory_space<smem>>
    %512 = vector.extract_strided_slice %459 {offsets = [5, 0], sizes = [16, 16], strides = [1, 1]} : vector<22x16xf32> to vector<16x16xf32>
    %513 = vector.broadcast %511 : f32 to vector<16x16xf32>
    %514 = arith.mulf %513, %512 : vector<16x16xf32>
    %515 = arith.addf %510, %514 : vector<16x16xf32>
    %c89 = arith.constant 89 : index
    %516 = memref.load %arg2[%c89] : memref<98xf32, #tpu.memory_space<smem>>
    %517 = vector.extract_strided_slice %460 {offsets = [5, 0], sizes = [16, 16], strides = [1, 1]} : vector<22x16xf32> to vector<16x16xf32>
    %518 = vector.broadcast %516 : f32 to vector<16x16xf32>
    %519 = arith.mulf %518, %517 : vector<16x16xf32>
    %520 = arith.addf %515, %519 : vector<16x16xf32>
    %c47 = arith.constant 47 : index
    %521 = memref.load %arg2[%c47] : memref<98xf32, #tpu.memory_space<smem>>
    %522 = vector.extract_strided_slice %459 {offsets = [6, 0], sizes = [16, 16], strides = [1, 1]} : vector<22x16xf32> to vector<16x16xf32>
    %523 = vector.broadcast %521 : f32 to vector<16x16xf32>
    %524 = arith.mulf %523, %522 : vector<16x16xf32>
    %525 = arith.addf %520, %524 : vector<16x16xf32>
    %c96_171 = arith.constant 96 : index
    %526 = memref.load %arg2[%c96_171] : memref<98xf32, #tpu.memory_space<smem>>
    %527 = vector.extract_strided_slice %460 {offsets = [6, 0], sizes = [16, 16], strides = [1, 1]} : vector<22x16xf32> to vector<16x16xf32>
    %528 = vector.broadcast %526 : f32 to vector<16x16xf32>
    %529 = arith.mulf %528, %527 : vector<16x16xf32>
    %530 = arith.addf %525, %529 : vector<16x16xf32>
    %c0_172 = arith.constant 0 : index
    %c6_173 = arith.constant 6 : index
    %531 = vector.load %arg5[%c0_172, %c6_173] : memref<22x22xf32, #tpu.memory_space<vmem>>, vector<22x16xf32>
    %c0_174 = arith.constant 0 : index
    %c6_175 = arith.constant 6 : index
    %532 = vector.load %arg6[%c0_174, %c6_175] : memref<22x22xf32, #tpu.memory_space<vmem>>, vector<22x16xf32>
    %c6_176 = arith.constant 6 : index
    %533 = memref.load %arg2[%c6_176] : memref<98xf32, #tpu.memory_space<smem>>
    %534 = vector.extract_strided_slice %531 {offsets = [0, 0], sizes = [16, 16], strides = [1, 1]} : vector<22x16xf32> to vector<16x16xf32>
    %535 = vector.broadcast %533 : f32 to vector<16x16xf32>
    %536 = arith.mulf %535, %534 : vector<16x16xf32>
    %537 = arith.addf %530, %536 : vector<16x16xf32>
    %c55 = arith.constant 55 : index
    %538 = memref.load %arg2[%c55] : memref<98xf32, #tpu.memory_space<smem>>
    %539 = vector.extract_strided_slice %532 {offsets = [0, 0], sizes = [16, 16], strides = [1, 1]} : vector<22x16xf32> to vector<16x16xf32>
    %540 = vector.broadcast %538 : f32 to vector<16x16xf32>
    %541 = arith.mulf %540, %539 : vector<16x16xf32>
    %542 = arith.addf %537, %541 : vector<16x16xf32>
    %c13_177 = arith.constant 13 : index
    %543 = memref.load %arg2[%c13_177] : memref<98xf32, #tpu.memory_space<smem>>
    %544 = vector.extract_strided_slice %531 {offsets = [1, 0], sizes = [16, 16], strides = [1, 1]} : vector<22x16xf32> to vector<16x16xf32>
    %545 = vector.broadcast %543 : f32 to vector<16x16xf32>
    %546 = arith.mulf %545, %544 : vector<16x16xf32>
    %547 = arith.addf %542, %546 : vector<16x16xf32>
    %c62 = arith.constant 62 : index
    %548 = memref.load %arg2[%c62] : memref<98xf32, #tpu.memory_space<smem>>
    %549 = vector.extract_strided_slice %532 {offsets = [1, 0], sizes = [16, 16], strides = [1, 1]} : vector<22x16xf32> to vector<16x16xf32>
    %550 = vector.broadcast %548 : f32 to vector<16x16xf32>
    %551 = arith.mulf %550, %549 : vector<16x16xf32>
    %552 = arith.addf %547, %551 : vector<16x16xf32>
    %c20 = arith.constant 20 : index
    %553 = memref.load %arg2[%c20] : memref<98xf32, #tpu.memory_space<smem>>
    %554 = vector.extract_strided_slice %531 {offsets = [2, 0], sizes = [16, 16], strides = [1, 1]} : vector<22x16xf32> to vector<16x16xf32>
    %555 = vector.broadcast %553 : f32 to vector<16x16xf32>
    %556 = arith.mulf %555, %554 : vector<16x16xf32>
    %557 = arith.addf %552, %556 : vector<16x16xf32>
    %c69 = arith.constant 69 : index
    %558 = memref.load %arg2[%c69] : memref<98xf32, #tpu.memory_space<smem>>
    %559 = vector.extract_strided_slice %532 {offsets = [2, 0], sizes = [16, 16], strides = [1, 1]} : vector<22x16xf32> to vector<16x16xf32>
    %560 = vector.broadcast %558 : f32 to vector<16x16xf32>
    %561 = arith.mulf %560, %559 : vector<16x16xf32>
    %562 = arith.addf %557, %561 : vector<16x16xf32>
    %c27 = arith.constant 27 : index
    %563 = memref.load %arg2[%c27] : memref<98xf32, #tpu.memory_space<smem>>
    %564 = vector.extract_strided_slice %531 {offsets = [3, 0], sizes = [16, 16], strides = [1, 1]} : vector<22x16xf32> to vector<16x16xf32>
    %565 = vector.broadcast %563 : f32 to vector<16x16xf32>
    %566 = arith.mulf %565, %564 : vector<16x16xf32>
    %567 = arith.addf %562, %566 : vector<16x16xf32>
    %c76 = arith.constant 76 : index
    %568 = memref.load %arg2[%c76] : memref<98xf32, #tpu.memory_space<smem>>
    %569 = vector.extract_strided_slice %532 {offsets = [3, 0], sizes = [16, 16], strides = [1, 1]} : vector<22x16xf32> to vector<16x16xf32>
    %570 = vector.broadcast %568 : f32 to vector<16x16xf32>
    %571 = arith.mulf %570, %569 : vector<16x16xf32>
    %572 = arith.addf %567, %571 : vector<16x16xf32>
    %c34 = arith.constant 34 : index
    %573 = memref.load %arg2[%c34] : memref<98xf32, #tpu.memory_space<smem>>
    %574 = vector.extract_strided_slice %531 {offsets = [4, 0], sizes = [16, 16], strides = [1, 1]} : vector<22x16xf32> to vector<16x16xf32>
    %575 = vector.broadcast %573 : f32 to vector<16x16xf32>
    %576 = arith.mulf %575, %574 : vector<16x16xf32>
    %577 = arith.addf %572, %576 : vector<16x16xf32>
    %c83 = arith.constant 83 : index
    %578 = memref.load %arg2[%c83] : memref<98xf32, #tpu.memory_space<smem>>
    %579 = vector.extract_strided_slice %532 {offsets = [4, 0], sizes = [16, 16], strides = [1, 1]} : vector<22x16xf32> to vector<16x16xf32>
    %580 = vector.broadcast %578 : f32 to vector<16x16xf32>
    %581 = arith.mulf %580, %579 : vector<16x16xf32>
    %582 = arith.addf %577, %581 : vector<16x16xf32>
    %c41 = arith.constant 41 : index
    %583 = memref.load %arg2[%c41] : memref<98xf32, #tpu.memory_space<smem>>
    %584 = vector.extract_strided_slice %531 {offsets = [5, 0], sizes = [16, 16], strides = [1, 1]} : vector<22x16xf32> to vector<16x16xf32>
    %585 = vector.broadcast %583 : f32 to vector<16x16xf32>
    %586 = arith.mulf %585, %584 : vector<16x16xf32>
    %587 = arith.addf %582, %586 : vector<16x16xf32>
    %c90 = arith.constant 90 : index
    %588 = memref.load %arg2[%c90] : memref<98xf32, #tpu.memory_space<smem>>
    %589 = vector.extract_strided_slice %532 {offsets = [5, 0], sizes = [16, 16], strides = [1, 1]} : vector<22x16xf32> to vector<16x16xf32>
    %590 = vector.broadcast %588 : f32 to vector<16x16xf32>
    %591 = arith.mulf %590, %589 : vector<16x16xf32>
    %592 = arith.addf %587, %591 : vector<16x16xf32>
    %c48_178 = arith.constant 48 : index
    %593 = memref.load %arg2[%c48_178] : memref<98xf32, #tpu.memory_space<smem>>
    %594 = vector.extract_strided_slice %531 {offsets = [6, 0], sizes = [16, 16], strides = [1, 1]} : vector<22x16xf32> to vector<16x16xf32>
    %595 = vector.broadcast %593 : f32 to vector<16x16xf32>
    %596 = arith.mulf %595, %594 : vector<16x16xf32>
    %597 = arith.addf %592, %596 : vector<16x16xf32>
    %c97 = arith.constant 97 : index
    %598 = memref.load %arg2[%c97] : memref<98xf32, #tpu.memory_space<smem>>
    %599 = vector.extract_strided_slice %532 {offsets = [6, 0], sizes = [16, 16], strides = [1, 1]} : vector<22x16xf32> to vector<16x16xf32>
    %600 = vector.broadcast %598 : f32 to vector<16x16xf32>
    %601 = arith.mulf %600, %599 : vector<16x16xf32>
    %602 = arith.addf %597, %601 : vector<16x16xf32>
    %c0_179 = arith.constant 0 : index
    %603 = memref.load %arg3[%c0_179] : memref<1xf32, #tpu.memory_space<smem>>
    %604 = vector.broadcast %603 : f32 to vector<16x16xf32>
    %605 = arith.addf %602, %604 : vector<16x16xf32>
    %606 = arith.negf %605 : vector<16x16xf32>
    %607 = math.exp %606 : vector<16x16xf32>
    %cst_180 = arith.constant 1.000000e+00 : f32
    %608 = vector.broadcast %cst_180 : f32 to vector<16x16xf32>
    %609 = arith.addf %608, %607 : vector<16x16xf32>
    %610 = arith.divf %608, %609 : vector<16x16xf32>
    %611 = vector.extract_strided_slice %610 {offsets = [0, 0], sizes = [1, 16], strides = [1, 1]} : vector<16x16xf32> to vector<1x16xf32>
    %c0_181 = arith.constant 0 : index
    %c0_182 = arith.constant 0 : index
    %612 = vector.load %arg9[%c0_181, %c0_182] : memref<1x256xf32, #tpu.memory_space<vmem>>, vector<1x16xf32>
    tpu.vector_store %arg9[%c0_181, %c0_182], %611 {strides = array<i32>} : memref<1x256xf32, #tpu.memory_space<vmem>>, vector<1x16xf32>,
    %613 = vector.extract_strided_slice %610 {offsets = [1, 0], sizes = [1, 16], strides = [1, 1]} : vector<16x16xf32> to vector<1x16xf32>
    %c0_183 = arith.constant 0 : index
    %c16_184 = arith.constant 16 : index
    %614 = vector.load %arg9[%c0_183, %c16_184] : memref<1x256xf32, #tpu.memory_space<vmem>>, vector<1x16xf32>
    tpu.vector_store %arg9[%c0_183, %c16_184], %613 {strides = array<i32>} : memref<1x256xf32, #tpu.memory_space<vmem>>, vector<1x16xf32>,
    %615 = vector.extract_strided_slice %610 {offsets = [2, 0], sizes = [1, 16], strides = [1, 1]} : vector<16x16xf32> to vector<1x16xf32>
    %c0_185 = arith.constant 0 : index
    %c32_186 = arith.constant 32 : index
    %616 = vector.load %arg9[%c0_185, %c32_186] : memref<1x256xf32, #tpu.memory_space<vmem>>, vector<1x16xf32>
    tpu.vector_store %arg9[%c0_185, %c32_186], %615 {strides = array<i32>} : memref<1x256xf32, #tpu.memory_space<vmem>>, vector<1x16xf32>,
    %617 = vector.extract_strided_slice %610 {offsets = [3, 0], sizes = [1, 16], strides = [1, 1]} : vector<16x16xf32> to vector<1x16xf32>
    %c0_187 = arith.constant 0 : index
    %c48_188 = arith.constant 48 : index
    %618 = vector.load %arg9[%c0_187, %c48_188] : memref<1x256xf32, #tpu.memory_space<vmem>>, vector<1x16xf32>
    tpu.vector_store %arg9[%c0_187, %c48_188], %617 {strides = array<i32>} : memref<1x256xf32, #tpu.memory_space<vmem>>, vector<1x16xf32>,
    %619 = vector.extract_strided_slice %610 {offsets = [4, 0], sizes = [1, 16], strides = [1, 1]} : vector<16x16xf32> to vector<1x16xf32>
    %c0_189 = arith.constant 0 : index
    %c64_190 = arith.constant 64 : index
    %620 = vector.load %arg9[%c0_189, %c64_190] : memref<1x256xf32, #tpu.memory_space<vmem>>, vector<1x16xf32>
    tpu.vector_store %arg9[%c0_189, %c64_190], %619 {strides = array<i32>} : memref<1x256xf32, #tpu.memory_space<vmem>>, vector<1x16xf32>,
    %621 = vector.extract_strided_slice %610 {offsets = [5, 0], sizes = [1, 16], strides = [1, 1]} : vector<16x16xf32> to vector<1x16xf32>
    %c0_191 = arith.constant 0 : index
    %c80_192 = arith.constant 80 : index
    %622 = vector.load %arg9[%c0_191, %c80_192] : memref<1x256xf32, #tpu.memory_space<vmem>>, vector<1x16xf32>
    tpu.vector_store %arg9[%c0_191, %c80_192], %621 {strides = array<i32>} : memref<1x256xf32, #tpu.memory_space<vmem>>, vector<1x16xf32>,
    %623 = vector.extract_strided_slice %610 {offsets = [6, 0], sizes = [1, 16], strides = [1, 1]} : vector<16x16xf32> to vector<1x16xf32>
    %c0_193 = arith.constant 0 : index
    %c96_194 = arith.constant 96 : index
    %624 = vector.load %arg9[%c0_193, %c96_194] : memref<1x256xf32, #tpu.memory_space<vmem>>, vector<1x16xf32>
    tpu.vector_store %arg9[%c0_193, %c96_194], %623 {strides = array<i32>} : memref<1x256xf32, #tpu.memory_space<vmem>>, vector<1x16xf32>,
    %625 = vector.extract_strided_slice %610 {offsets = [7, 0], sizes = [1, 16], strides = [1, 1]} : vector<16x16xf32> to vector<1x16xf32>
    %c0_195 = arith.constant 0 : index
    %c112_196 = arith.constant 112 : index
    %626 = vector.load %arg9[%c0_195, %c112_196] : memref<1x256xf32, #tpu.memory_space<vmem>>, vector<1x16xf32>
    tpu.vector_store %arg9[%c0_195, %c112_196], %625 {strides = array<i32>} : memref<1x256xf32, #tpu.memory_space<vmem>>, vector<1x16xf32>,
    %627 = vector.extract_strided_slice %610 {offsets = [8, 0], sizes = [1, 16], strides = [1, 1]} : vector<16x16xf32> to vector<1x16xf32>
    %c0_197 = arith.constant 0 : index
    %c128_198 = arith.constant 128 : index
    %628 = vector.load %arg9[%c0_197, %c128_198] : memref<1x256xf32, #tpu.memory_space<vmem>>, vector<1x16xf32>
    tpu.vector_store %arg9[%c0_197, %c128_198], %627 {strides = array<i32>} : memref<1x256xf32, #tpu.memory_space<vmem>>, vector<1x16xf32>,
    %629 = vector.extract_strided_slice %610 {offsets = [9, 0], sizes = [1, 16], strides = [1, 1]} : vector<16x16xf32> to vector<1x16xf32>
    %c0_199 = arith.constant 0 : index
    %c144_200 = arith.constant 144 : index
    %630 = vector.load %arg9[%c0_199, %c144_200] : memref<1x256xf32, #tpu.memory_space<vmem>>, vector<1x16xf32>
    tpu.vector_store %arg9[%c0_199, %c144_200], %629 {strides = array<i32>} : memref<1x256xf32, #tpu.memory_space<vmem>>, vector<1x16xf32>,
    %631 = vector.extract_strided_slice %610 {offsets = [10, 0], sizes = [1, 16], strides = [1, 1]} : vector<16x16xf32> to vector<1x16xf32>
    %c0_201 = arith.constant 0 : index
    %c160_202 = arith.constant 160 : index
    %632 = vector.load %arg9[%c0_201, %c160_202] : memref<1x256xf32, #tpu.memory_space<vmem>>, vector<1x16xf32>
    tpu.vector_store %arg9[%c0_201, %c160_202], %631 {strides = array<i32>} : memref<1x256xf32, #tpu.memory_space<vmem>>, vector<1x16xf32>,
    %633 = vector.extract_strided_slice %610 {offsets = [11, 0], sizes = [1, 16], strides = [1, 1]} : vector<16x16xf32> to vector<1x16xf32>
    %c0_203 = arith.constant 0 : index
    %c176_204 = arith.constant 176 : index
    %634 = vector.load %arg9[%c0_203, %c176_204] : memref<1x256xf32, #tpu.memory_space<vmem>>, vector<1x16xf32>
    tpu.vector_store %arg9[%c0_203, %c176_204], %633 {strides = array<i32>} : memref<1x256xf32, #tpu.memory_space<vmem>>, vector<1x16xf32>,
    %635 = vector.extract_strided_slice %610 {offsets = [12, 0], sizes = [1, 16], strides = [1, 1]} : vector<16x16xf32> to vector<1x16xf32>
    %c0_205 = arith.constant 0 : index
    %c192_206 = arith.constant 192 : index
    %636 = vector.load %arg9[%c0_205, %c192_206] : memref<1x256xf32, #tpu.memory_space<vmem>>, vector<1x16xf32>
    tpu.vector_store %arg9[%c0_205, %c192_206], %635 {strides = array<i32>} : memref<1x256xf32, #tpu.memory_space<vmem>>, vector<1x16xf32>,
    %637 = vector.extract_strided_slice %610 {offsets = [13, 0], sizes = [1, 16], strides = [1, 1]} : vector<16x16xf32> to vector<1x16xf32>
    %c0_207 = arith.constant 0 : index
    %c208_208 = arith.constant 208 : index
    %638 = vector.load %arg9[%c0_207, %c208_208] : memref<1x256xf32, #tpu.memory_space<vmem>>, vector<1x16xf32>
    tpu.vector_store %arg9[%c0_207, %c208_208], %637 {strides = array<i32>} : memref<1x256xf32, #tpu.memory_space<vmem>>, vector<1x16xf32>,
    %639 = vector.extract_strided_slice %610 {offsets = [14, 0], sizes = [1, 16], strides = [1, 1]} : vector<16x16xf32> to vector<1x16xf32>
    %c0_209 = arith.constant 0 : index
    %c224_210 = arith.constant 224 : index
    %640 = vector.load %arg9[%c0_209, %c224_210] : memref<1x256xf32, #tpu.memory_space<vmem>>, vector<1x16xf32>
    tpu.vector_store %arg9[%c0_209, %c224_210], %639 {strides = array<i32>} : memref<1x256xf32, #tpu.memory_space<vmem>>, vector<1x16xf32>,
    %641 = vector.extract_strided_slice %610 {offsets = [15, 0], sizes = [1, 16], strides = [1, 1]} : vector<16x16xf32> to vector<1x16xf32>
    %c0_211 = arith.constant 0 : index
    %c240_212 = arith.constant 240 : index
    %642 = vector.load %arg9[%c0_211, %c240_212] : memref<1x256xf32, #tpu.memory_space<vmem>>, vector<1x16xf32>
    tpu.vector_store %arg9[%c0_211, %c240_212], %641 {strides = array<i32>} : memref<1x256xf32, #tpu.memory_space<vmem>>, vector<1x16xf32>,
    %c0_213 = arith.constant 0 : index
    %c0_214 = arith.constant 0 : index
    %643 = vector.load %arg9[%c0_213, %c0_214] : memref<1x256xf32, #tpu.memory_space<vmem>>, vector<1x256xf32>
    %c0_i32_215 = arith.constant 0 : i32
    %c4_i32_216 = arith.constant 4 : i32
    %644 = arith.addi %c0_i32_215, %c4_i32_216 : i32
    %c1_i32_217 = arith.constant 1 : i32
    scf.for %arg10 = %c0_i32_215 to %644 step %c1_i32_217  : i32 {
      %c1_i32_219 = arith.constant 1 : i32
      %645 = arith.muli %arg10, %c1_i32_219 : i32
      %c0_i32_220 = arith.constant 0 : i32
      %646 = arith.addi %c0_i32_220, %645 : i32
      %c0_221 = arith.constant 0 : index
      %647 = arith.index_cast %646 : i32 to index
      %c0_222 = arith.constant 0 : index
      %648 = vector.load %arg1[%c0_221, %647, %c0_222] : memref<1x4x256xf32, #tpu.memory_space<vmem>>, vector<1x1x256xf32>
      %649 = vector.shape_cast %648 : vector<1x1x256xf32> to vector<1x256xf32>
      %650 = arith.mulf %649, %643 : vector<1x256xf32>
      %c0_223 = arith.constant 0 : index
      %651 = arith.index_cast %646 : i32 to index
      %c0_224 = arith.constant 0 : index
      %652 = vector.load %arg4[%c0_223, %651, %c0_224] : memref<1x4x256xf32, #tpu.memory_space<vmem>>, vector<1x1x256xf32>
      %653 = vector.shape_cast %652 : vector<1x1x256xf32> to vector<1x256xf32>
      %654 = vector.shape_cast %650 : vector<1x256xf32> to vector<1x1x256xf32>
      tpu.vector_store %arg4[%c0_223, %651, %c0_224], %654 {strides = array<i32>} : memref<1x4x256xf32, #tpu.memory_space<vmem>>, vector<1x1x256xf32>,
    }
    %c4_i32_218 = arith.constant 4 : i32
    return
  }
  func.func @transform_0(%arg0: i32) -> (i32, i32, i32) {
    %c0_i32 = arith.constant 0 : i32
    %c0_i32_0 = arith.constant 0 : i32
    %c0_i32_1 = arith.constant 0 : i32
    return %arg0, %c0_i32, %c0_i32_0 : i32, i32, i32
  }
  func.func @transform_1(%arg0: i32) -> i32 {
    %c0_i32 = arith.constant 0 : i32
    %c0_i32_0 = arith.constant 0 : i32
    return %c0_i32 : i32
  }
  func.func @transform_2(%arg0: i32) -> i32 {
    %c0_i32 = arith.constant 0 : i32
    %c0_i32_0 = arith.constant 0 : i32
    return %c0_i32 : i32
  }
  func.func @transform_3(%arg0: i32) -> (i32, i32, i32) {
    %c0_i32 = arith.constant 0 : i32
    %c0_i32_0 = arith.constant 0 : i32
    %c0_i32_1 = arith.constant 0 : i32
    return %arg0, %c0_i32, %c0_i32_0 : i32, i32, i32
  }
}

</mosaic_0001>

<bundles_post_ra>
// kernel: spatial_attention.1
= control target key start
LH: loop header
LB: loop body
LE: loop exit
PB: predicated region body
PF: predicated region fallthrough
CT: control target
= control target key end

     0   :  { %s5112_s0 = inlined_call_operand.vmem [shape: f32[2,4,256], index: 0, kind: input, shape index: {}]   ;;  %s5113_s1 = inlined_call_operand.vmem [shape: f32[98], index: 1, kind: input, shape index: {}]   ;;  %s5114_s2 = inlined_call_operand.<no memory space> [shape: f32[1], index: 2, kind: input, shape index: {}]   ;;  %s5115_s3 = inlined_call_operand.vmem [shape: f32[2,4,256], index: 3, kind: output, shape index: {}]  }
   0x1   :  { %5137 = sst [smem:[#allocation25_spill]] %s5112_s0 }
   0x2   :  { %8 = sst [smem:[#allocation7]] %s5114_s2 }
   0x3   :  { %9 = vsyncpa [#allocation9], 0  ;;  %s3054_s14 = smov 0  }
   0x4 LB: > { %s3060_s15 = sadd.s32 4294967295, %s3001_s14   ;;  %p2752_p0 = scmp.ge.s32.totalorder %s3001_s14, 1  ;;  %s3001_s14 = sphi %s3054_s14, %s15_s14  }
   0x5   : > { %p114_p1 = scmp.lt.s32.totalorder %s3001_s14, 3  ;;  %s127_s2 = sshll.u32 %s5113_s1, 4  ;;  %s128_s2 = int_to_ptr.vmem [resolvable:$true] %s127_s2 }
   0x6   : > { %p2910_p3 = scmp.eq.s32.totalorder %s3060_s15, 0  ;;  %s2972_s19 = scalar_lea.vmem %s128_s2, 16 }
   0x7   : > { %p3067_p2 = pnand %p2752_p0, %p114_p1  ;;  %p2973_p6 = scmp.ne.s32.totalorder %s128_s2, %s2972_s19 }
   0x8   : > { %p2980_p10 = scmp.lt.s32.totalorder %s128_s2, %s128_s2  ;;  %p2981_p11 = scmp.lt.s32.totalorder %s2972_s19, %s2972_s19 }
   0x9   : > { %p2906_p4 = pneg %p3067_p2 }
   0xa   : > { %p2982_p12 = por %p2981_p11, %p2980_p10 }
   0xb   : > { %p2907_p5 = pnand %p2910_p3, %p2906_p4 }
   0xd   : > { %p2974_p7 = pneg %p2907_p5 }
   0xf   : > { %p2975_p8 = pnand %p2974_p7, %p2973_p6 }
  0x11   : > { %p2976_p9 = pneg %p2975_p8 }
  0x13   : > { %p2983_p13 = pnand %p2982_p12, %p2976_p9 }
  0x15   : > { %2986 = shalt.err (!%p2983_p13)
}
  0x16   : > { %s3007_s20 = smov [#allocation8]   ;;  %151 = sbr.rel (%p3067_p2) target bundleno = 880 (0x370), region = 32 }
  0x17   : > { %2909 = dma.vmem_to_smem (!%p2907_p5), %s128_s2, 16, %s3007_s20, [#allocation9]  }
  0x1b   : > { %2996 = dma.done.wait (%p2910_p3), [#allocation9], 16  }
  0x1c   : > { %2998 = vsyncadd (%p2910_p3), [#allocation9], 4294967280 }
  0x1d   : > { %157 = sfence }
  0x1e   : > { %p176_p0 = scmp.lt.s32.totalorder %s3060_s15, 1  ;;  %vm206_vm0 = vcmask 174080   ;;  %vm209_vm1 = vcmask 23552   ;;  %v3008_v0 = vmov 0.0   ;;  %vm214_vm2 = vcmask 179352   ;;  %s5139_s0 = sld [smem:[#allocation25_spill]] }
  0x1f   : > { %207 = vst.msk [vmem:[#allocation2] sm:$0x7] %vm206_vm0, %v3008_v0  ;;  %208 = vst.msk [vmem:[#allocation2 + $0x13] sm:$0x7] %vm206_vm0, %v3008_v0  ;;  %v5116_v3 = vlaneseq  ;;  %v5140_v10 = vmov 0  ;;  %s3009_s28 = smov 115  }
  0x20   : > { %211 = vst.msk [vmem:[#allocation2 + $0x8] sm:$0xff] %vm209_vm1, %v3008_v0  ;;  %222 = vst.msk [vmem:[#allocation3 + $0x8] sm:$0xff] %vm209_vm1, %v3008_v0  ;;  %s5246_s15 = smov (!%p176_p0, %s3060_s15), 1  ;;  %s3010_s29 = smov 3   ;;  %vm212_vm4 = vcmask 21504   ;;  %vm217_vm5 = vcmask 177304  }
  0x21   : > { %219 = vst.msk [vmem:[#allocation3] sm:$0x7] %vm206_vm0, %v3008_v0  ;;  %220 = vst.msk [vmem:[#allocation3 + $0x13] sm:$0x7] %vm206_vm0, %v3008_v0  ;;  %s2899_s21 = sshll.u32 %s5246_s15, 3  ;;  %vm3099_vm3 = vcmp.lt.s32.totalorder %v5116_v3, 256 }
  0x22   : > { %210 = vst.msk [vmem:[#allocation2] sm:$0xff] %vm209_vm1, %v3008_v0  ;;  %221 = vst.msk [vmem:[#allocation3] sm:$0xff] %vm209_vm1, %v3008_v0  ;;  %s3092_s27 = scalar_lea.vmem %s5115_s3, %s2899_s21  ;;  %v5141_v10 = vsel %vm3099_vm3, 4294967295, %v5140_v10  ;;  %s3011_s30 = smov 99   ;;  %vm236_vm6 = vcmask 147480   ;;  %vm574_vm7 = vcmask 1046528  }
  0x23   : > { %216 = vst.msk [vmem:[#allocation2 + $0x8] sm:$0xff] %vm214_vm2, %v3008_v0  ;;  %225 = vst.msk [vmem:[#allocation3 + $0x8] sm:$0xff] %vm214_vm2, %v3008_v0  ;;  %s3012_s4 = smov 83   ;;  %s3013_s5 = smov 67   ;;  %vm609_vm8 = vcmask 1045504   ;;  %vm644_vm9 = vcmask 1044480  }
  0x24   : > { %215 = vst.msk [vmem:[#allocation2] sm:$0xff] %vm214_vm2, %v3008_v0  ;;  %224 = vst.msk [vmem:[#allocation3] sm:$0xff] %vm214_vm2, %v3008_v0  ;;  %s3087_s24 = scalar_lea.vmem %s5139_s0, %s2899_s21  ;;  %s3014_s6 = smov 51   ;;  %vm679_vm10 = vcmask 1043456   ;;  %vm714_vm11 = vcmask 1042432   ;;  %vm749_vm12 = vcmask 1041408  }
  0x25   : > { %v186_v1 = vld [vmem:[%s3087_s24] ss:$4 sm:$0x3]  ;;  %v2761_v2 = vld [vmem:[%s3087_s24 + $0x1] ss:$4 sm:$0x3] }
  0x26   : > { %v190_v4 = vadd.f32 %v2761_v2, %v186_v1  ;;  %v2762_v5 = vld [vmem:[%s3087_s24 + $0x2] ss:$4 sm:$0x3]  ;;  %v191_v6 = vmax.f32 %v186_v1, %v2761_v2  ;;  %v2763_v7 = vld [vmem:[%s3087_s24 + $0x3] ss:$4 sm:$0x3] }
  0x27   : > { %5142 = vst [vmem:[#allocation11_spill] sm:$0xff] %v5141_v10  ;;  %213 = vst.msk [vmem:[#allocation2 + $0x10] sm:$0x3f] %vm212_vm4, %v3008_v0  ;;  %s3015_s7 = smov 19   ;;  %s3016_s8 = smov 35  }
  0x28   : > { %v194_v8 = vadd.f32 %v2762_v5, %v190_v4  ;;  %v195_v9 = vmax.f32 %v191_v6, %v2762_v5  ;;  %223 = vst.msk [vmem:[#allocation3 + $0x10] sm:$0x3f] %vm212_vm4, %v3008_v0  ;;  %s3135_s9 = sld [smem:[#allocation8 + $0x1]]  ;;  %s3017_s13 = smov 127  }
  0x29   : > { %218 = vst.msk [vmem:[#allocation2 + $0x10] sm:$0x3f] %vm217_vm5, %v3008_v0  ;;  %226 = vst.msk [vmem:[#allocation3 + $0x10] sm:$0x3f] %vm217_vm5, %v3008_v0  ;;  %s3139_s10 = sld [smem:[#allocation8 + $0x32]]  ;;  %s3018_s16 = smov 126  }
  0x2a   : > { %v198_v11 = vadd.f32 %v2763_v7, %v194_v8  ;;  %v199_v12 = vmax.f32 %v195_v9, %v2763_v7  ;;  %s3144_s11 = sld [smem:[#allocation8 + $0x2]] }
  0x2b   : > { %s3154_s12 = sld [smem:[#allocation8 + $0x33]] }
  0x2c   : > { %204 = vst.msk [vmem:[#allocation4] sm:$0x3] %vm3099_vm3, %v198_v11  ;;  %205 = vst.msk [vmem:[#allocation5] sm:$0x3] %vm3099_vm3, %v199_v12  ;;  %s2811_s15 = sld [smem:[#allocation8 + $0x8]] }
  0x2d   : > { %s2812_s17 = sld [smem:[#allocation8 + $0x39]] }
  0x2e   : > { %v777_v29 = vstv %s3135_s9  ;;  %s2813_s2 = sld [smem:[#allocation8 + $0xf]] }
  0x2f   : > { %v791_v35 = vstv %s3139_s10  ;;  %s2814_s18 = sld [smem:[#allocation8 + $0x40]] }
  0x30   : > { %v1057_v39 = vstv %s3144_s11  ;;  %s2815_s19 = sld [smem:[#allocation8 + $0x16]] }
  0x31   : > { %v1071_v43 = vstv %s3154_s12  ;;  %s2816_s20 = sld [smem:[#allocation8 + $0x47]] }
  0x32   : > { %v805_v49 = vstv %s2811_s15  ;;  %s2817_s21 = sld [smem:[#allocation8 + $0x1d]] }
  0x33   : > { %v2766_v13 = vld [vmem:[#allocation4] ss:$0 sm:$0xff]  ;;  %v2767_v14 = vld [vmem:[#allocation5] ss:$0 sm:$0xff]  ;;  %v2782_v15 = vld [vmem:[#allocation4 + $0x1] ss:$0 sm:$0xff]  ;;  %v826_v4 = vstv %s2812_s17 }
  0x34   : > { %254 = vrot.lane.b32.xlu1 %v2766_v13, %s3009_s28  ;;  %233 = vrot.lane.b32.xlu0 %v2766_v13, %s3010_s29  ;;  %v2783_v16 = vld [vmem:[#allocation5 + $0x1] ss:$0 sm:$0xff]  ;;  %v847_v7 = vstv %s2813_s2  ;;  %s2818_s22 = sld [smem:[#allocation8 + $0x4e]] }
  0x35   : > { %s2819_s23 = sld [smem:[#allocation8 + $0x24]] }
  0x36   : > { %s2820_s25 = sld [smem:[#allocation8 + $0x55]] }
  0x37   : > { %s2821_s26 = sld [smem:[#allocation8 + $0x2b]] }
  0x38   : > { %264 = vrot.lane.b32.xlu1 %v2767_v14, %s3009_s28  ;;  %244 = vrot.lane.b32.xlu0 %v2767_v14, %s3010_s29  ;;  %s2832_s9 = sld [smem:[#allocation8 + $0x4f]] }
  0x39   : > { %s2833_s10 = sld [smem:[#allocation8 + $0x25]] }
  0x3a   : > { %s2834_s11 = sld [smem:[#allocation8 + $0x56]] }
  0x3b   : > { %s2835_s12 = sld [smem:[#allocation8 + $0x2c]] }
  0x3c   : > { %284 = vrot.lane.b32.xlu1 %v2767_v14, %s3011_s30  ;;  %274 = vrot.lane.b32.xlu0 %v2766_v13, %s3011_s30  ;;  %s3419_s15 = sld [smem:[#allocation8]] }
  0x3d   : > { %s3424_s17 = sld [smem:[#allocation8 + $0x31]] }
  0x3e   : > { %s3428_s2 = sld [smem:[#allocation8 + $0x7]] }
  0x3f   : > { %s3559_s0 = sld [smem:[#allocation8 + $0x35]] }
  0x40   : > { %304 = vrot.lane.b32.xlu1 %v2767_v14, %s3012_s4  ;;  %294 = vrot.lane.b32.xlu0 %v2766_v13, %s3012_s4 }
  0x44   : > { %324 = vrot.lane.b32.xlu1 %v2767_v14, %s3013_s5  ;;  %314 = vrot.lane.b32.xlu0 %v2766_v13, %s3013_s5 }
  0x48   : > { %344 = vrot.lane.b32.xlu1 %v2767_v14, %s3014_s6  ;;  %334 = vrot.lane.b32.xlu0 %v2766_v13, %s3014_s6 }
  0x4c   : > { %374 = vrot.lane.b32.xlu1 %v2766_v13, %s3015_s7  ;;  %354 = vrot.lane.b32.xlu0 %v2766_v13, %s3016_s8 }
  0x50   : > { %414 = vrot.lane.b32.xlu1 %v2782_v15, %s3009_s28  ;;  %394 = vrot.lane.b32.xlu0 %v2782_v15, %s3010_s29 }
  0x54   : > { %454 = vrot.lane.b32.xlu1 %v2782_v15, %s3012_s4  ;;  %434 = vrot.lane.b32.xlu0 %v2782_v15, %s3011_s30 }
  0x58   : > { %494 = vrot.lane.b32.xlu1 %v2782_v15, %s3014_s6  ;;  %474 = vrot.lane.b32.xlu0 %v2782_v15, %s3013_s5 }
  0x5c   : > { %534 = vrot.lane.b32.xlu1 %v2782_v15, %s3015_s7  ;;  %514 = vrot.lane.b32.xlu0 %v2782_v15, %s3016_s8 }
  0x60   : > { %384 = vrot.lane.b32.xlu1 %v2767_v14, %s3015_s7  ;;  %364 = vrot.lane.b32.xlu0 %v2767_v14, %s3016_s8 }
  0x64   : > { %424 = vrot.lane.b32.xlu1 %v2783_v16, %s3009_s28  ;;  %404 = vrot.lane.b32.xlu0 %v2783_v16, %s3010_s29  ;;  %s2822_s28 = sld [smem:[#allocation8 + $0x5c]] }
  0x65   : > { %s2825_s29 = sld [smem:[#allocation8 + $0x9]] }
  0x68   : > { %464 = vrot.lane.b32.xlu1 %v2783_v16, %s3012_s4  ;;  %444 = vrot.lane.b32.xlu0 %v2783_v16, %s3011_s30  ;;  %s2826_s30 = sld [smem:[#allocation8 + $0x3a]] }
  0x69   : > { %s2827_s4 = sld [smem:[#allocation8 + $0x10]] }
  0x6c   : > { %504 = vrot.lane.b32.xlu1 %v2783_v16, %s3014_s6  ;;  %484 = vrot.lane.b32.xlu0 %v2783_v16, %s3013_s5  ;;  %s2828_s5 = sld [smem:[#allocation8 + $0x41]] }
  0x6d   : > { %s2829_s6 = sld [smem:[#allocation8 + $0x17]] }
  0x70   : > { %544 = vrot.lane.b32.xlu1 %v2783_v16, %s3015_s7  ;;  %524 = vrot.lane.b32.xlu0 %v2783_v16, %s3016_s8  ;;  %v868_v16 = vstv %s2814_s18  ;;  %s2830_s7 = sld [smem:[#allocation8 + $0x48]] }
  0x71   : > { %s2831_s8 = sld [smem:[#allocation8 + $0x1e]] }
  0x72   : > { %s3435_s18 = sld [smem:[#allocation8 + $0x3]] }
  0xa6   : > { %v255_v17 = vpop.permute.xlu1 %254  ;;  %v234_v18 = vpop.permute.xlu0 %233 }
  0xa7   : > { %257 = vst.msk [vmem:[#allocation2 + $0x4] sm:$0x1] %vm236_vm6, %v255_v17  ;;  %237 = vst.msk [vmem:[#allocation2 + $0x3] sm:$0x1] %vm236_vm6, %v234_v18 }
  0xaa   : > { %v265_v19 = vpop.permute.xlu1 %264  ;;  %v245_v20 = vpop.permute.xlu0 %244 }
  0xab   : > { %267 = vst.msk [vmem:[#allocation3 + $0x4] sm:$0x1] %vm236_vm6, %v265_v19  ;;  %247 = vst.msk [vmem:[#allocation3 + $0x3] sm:$0x1] %vm236_vm6, %v245_v20 }
  0xae   : > { %v285_v21 = vpop.permute.xlu1 %284  ;;  %v275_v22 = vpop.permute.xlu0 %274 }
  0xaf   : > { %287 = vst.msk [vmem:[#allocation3 + $0x5] sm:$0x1] %vm236_vm6, %v285_v21  ;;  %277 = vst.msk [vmem:[#allocation2 + $0x5] sm:$0x1] %vm236_vm6, %v275_v22 }
  0xb2   : > { %v305_v23 = vpop.permute.xlu1 %304  ;;  %v295_v24 = vpop.permute.xlu0 %294 }
  0xb3   : > { %307 = vst.msk [vmem:[#allocation3 + $0x6] sm:$0x1] %vm236_vm6, %v305_v23  ;;  %297 = vst.msk [vmem:[#allocation2 + $0x6] sm:$0x1] %vm236_vm6, %v295_v24 }
  0xb6   : > { %v325_v25 = vpop.permute.xlu1 %324  ;;  %v315_v26 = vpop.permute.xlu0 %314 }
  0xb7   : > { %327 = vst.msk [vmem:[#allocation3 + $0x7] sm:$0x1] %vm236_vm6, %v325_v25  ;;  %317 = vst.msk [vmem:[#allocation2 + $0x7] sm:$0x1] %vm236_vm6, %v315_v26  ;;  %v889_v25 = vstv %s2815_s19  ;;  %s3437_s19 = sld [smem:[#allocation8 + $0x38]] }
  0xba   : > { %v345_v27 = vpop.permute.xlu1 %344  ;;  %v335_v28 = vpop.permute.xlu0 %334 }
  0xbb   : > { %347 = vst.msk [vmem:[#allocation3 + $0x8] sm:$0x1] %vm236_vm6, %v345_v27  ;;  %337 = vst.msk [vmem:[#allocation2 + $0x8] sm:$0x1] %vm236_vm6, %v335_v28 }
  0xbe   : > { %v3146_v30 = vld [vmem:[#allocation2] sm:$0xff]  ;;  %v375_v31 = vpop.permute.xlu1 %374  ;;  %v355_v32 = vpop.permute.xlu0 %354  ;;  %v3151_v34 = vld [vmem:[#allocation3] sm:$0xff] }
  0xbf   : > { %377 = vst.msk [vmem:[#allocation2 + $0xa] sm:$0x1] %vm236_vm6, %v375_v31  ;;  %357 = vst.msk [vmem:[#allocation2 + $0x9] sm:$0x1] %vm236_vm6, %v355_v32  ;;  %v778_v33 = vmul.f32 %v777_v29, %v3146_v30  ;;  %v792_v38 = vmul.f32 %v791_v35, %v3151_v34  ;;  %v1058_v42 = vmul.f32 %v1057_v39, %v3146_v30 }
  0xc0   : > { %v1072_v46 = vmul.f32 %v1071_v43, %v3151_v34  ;;  %v806_v50 = vmul.f32 %v805_v49, %v3146_v30  ;;  %v827_v5 = vmul.f32 %v826_v4, %v3151_v34  ;;  %v848_v15 = vmul.f32 %v847_v7, %v3146_v30 }
  0xc1   : > { %782 = vrot.lane.b32.xlu0 %v778_v33, %s3017_s13  ;;  %v869_v24 = vmul.f32 %v868_v16, %v3151_v34 }
  0xc2   : > { %v415_v36 = vpop.permute.xlu1 %414  ;;  %v395_v37 = vpop.permute.xlu0 %394  ;;  %v812_v56 = vrot.slane %v806_v50, 1  ;;  %v833_v13 = vrot.slane %v827_v5, 1  ;;  %v854_v23 = vrot.slane %v848_v15, 2 }
  0xc3   : > { %417 = vst.msk [vmem:[#allocation2 + $0xc] sm:$0x1] %vm236_vm6, %v415_v36  ;;  %397 = vst.msk [vmem:[#allocation2 + $0xb] sm:$0x1] %vm236_vm6, %v395_v37  ;;  %v875_v33 = vrot.slane %v869_v24, 2  ;;  %v910_v36 = vstv %s2816_s20  ;;  %s3442_s20 = sld [smem:[#allocation8 + $0xe]] }
  0xc5   : > { %796 = vrot.lane.b32.xlu0 %v792_v38, %s3017_s13 }
  0xc6   : > { %v455_v40 = vpop.permute.xlu1 %454  ;;  %v435_v41 = vpop.permute.xlu0 %434 }
  0xc7   : > { %457 = vst.msk [vmem:[#allocation2 + $0xe] sm:$0x1] %vm236_vm6, %v455_v40  ;;  %437 = vst.msk [vmem:[#allocation2 + $0xd] sm:$0x1] %vm236_vm6, %v435_v41 }
  0xc9   : > { %1062 = vrot.lane.b32.xlu0 %v1058_v42, %s3018_s16 }
  0xca   : > { %v495_v44 = vpop.permute.xlu1 %494  ;;  %v475_v45 = vpop.permute.xlu0 %474 }
  0xcb   : > { %497 = vst.msk [vmem:[#allocation2 + $0x10] sm:$0x1] %vm236_vm6, %v495_v44  ;;  %477 = vst.msk [vmem:[#allocation2 + $0xf] sm:$0x1] %vm236_vm6, %v475_v45  ;;  %v911_v44 = vmul.f32 %v910_v36, %v3151_v34  ;;  %v931_v45 = vstv %s2817_s21  ;;  %s2839_s21 = sld [smem:[#allocation8 + $0xa]] }
  0xcd   : > { %1076 = vrot.lane.b32.xlu0 %v1072_v46, %s3018_s16 }
  0xce   : > { %v535_v47 = vpop.permute.xlu1 %534  ;;  %v515_v48 = vpop.permute.xlu0 %514 }
  0xcf   : > { %537 = vst.msk [vmem:[#allocation2 + $0x12] sm:$0x1] %vm236_vm6, %v535_v47  ;;  %517 = vst.msk [vmem:[#allocation2 + $0x11] sm:$0x1] %vm236_vm6, %v515_v48 }
  0xd2   : > { %v3180_v51 = vld [vmem:[#allocation2 + $0x8] sm:$0xff]  ;;  %v385_v52 = vpop.permute.xlu1 %384  ;;  %v365_v53 = vpop.permute.xlu0 %364 }
  0xd3   : > { %387 = vst.msk [vmem:[#allocation3 + $0xa] sm:$0x1] %vm236_vm6, %v385_v52  ;;  %367 = vst.msk [vmem:[#allocation3 + $0x9] sm:$0x1] %vm236_vm6, %v365_v53  ;;  %v779_v54 = vmul.f32 %v777_v29, %v3180_v51  ;;  %v3186_v55 = vmul.f32 %v805_v49, %v3180_v51  ;;  %v3210_v11 = vmul.f32 %v847_v7, %v3180_v51  ;;  %v917_v53 = vrot.slane %v911_v44, 3 }
  0xd4   : > { %v1059_v18 = vmul.f32 %v1057_v39, %v3180_v51  ;;  %v3236_v29 = vmul.f32 %v889_v25, %v3180_v51  ;;  %v3257_v48 = vmul.f32 %v931_v45, %v3180_v51 }
  0xd5   : > { %784 = vrot.lane.b32.xlu1 %v779_v54, %s3017_s13  ;;  %v813_v57 = vrot.slane %v3186_v55, 1  ;;  %v855_v19 = vrot.slane %v3210_v11, 2  ;;  %v932_v54 = vmul.f32 %v931_v45, %v3146_v30  ;;  %v952_v55 = vstv %s2818_s22  ;;  %s3448_s22 = sld [smem:[#allocation8 + $0x34]] }
  0xd6   : > { %v425_v58 = vpop.permute.xlu1 %424  ;;  %v405_v59 = vpop.permute.xlu0 %404  ;;  %v3212_v12 = vld [vmem:[#allocation2 + $0x10] sm:$0x3f]  ;;  %v897_v38 = vrot.slane %v3236_v29, 3 }
  0xd7   : > { %427 = vst.msk [vmem:[#allocation3 + $0xc] sm:$0x1] %vm236_vm6, %v425_v58  ;;  %407 = vst.msk [vmem:[#allocation3 + $0xb] sm:$0x1] %vm236_vm6, %v405_v59  ;;  %v814_v60 = vsel %vm574_vm7, %v812_v56, %v813_v57  ;;  %v808_v21 = vmul.f32 %v805_v49, %v3212_v12  ;;  %v856_v26 = vsel %vm609_vm8, %v854_v23, %v855_v19  ;;  %v1015_v23 = vstv %s2821_s26  ;;  %s2840_s26 = sld [smem:[#allocation8 + $0x3b]] }
  0xd8   : > { %817 = vrot.lane.b32.xlu0 %v814_v60, %s3017_s13  ;;  %v850_v42 = vmul.f32 %v847_v7, %v3212_v12 }
  0xd9   : > { %v815_v31 = vrot.slane %v808_v21, 1 }
  0xda   : > { %v465_v61 = vpop.permute.xlu1 %464  ;;  %v445_v62 = vpop.permute.xlu0 %444  ;;  %v857_v50 = vrot.slane %v850_v42, 2 }
  0xdb   : > { %467 = vst.msk [vmem:[#allocation3 + $0xe] sm:$0x1] %vm236_vm6, %v465_v61  ;;  %447 = vst.msk [vmem:[#allocation3 + $0xd] sm:$0x1] %vm236_vm6, %v445_v62  ;;  %v816_v40 = vsel %vm574_vm7, %v813_v57, %v815_v31  ;;  %v939_v57 = vrot.slane %v3257_v48, 4  ;;  %v892_v61 = vmul.f32 %v889_v25, %v3212_v12  ;;  %v938_v62 = vrot.slane %v932_v54, 4 }
  0xdc   : > { %v858_v59 = vsel %vm609_vm8, %v855_v19, %v857_v50  ;;  %v934_v19 = vmul.f32 %v931_v45, %v3212_v12 }
  0xdd   : > { %v899_v7 = vrot.slane %v892_v61, 3 }
  0xde   : > { %v505_v63 = vpop.permute.xlu1 %504  ;;  %v485_v0 = vpop.permute.xlu0 %484 }
  0xdf   : > { %507 = vst.msk [vmem:[#allocation3 + $0x10] sm:$0x1] %vm236_vm6, %v505_v63  ;;  %487 = vst.msk [vmem:[#allocation3 + $0xf] sm:$0x1] %vm236_vm6, %v485_v0  ;;  %v953_v63 = vmul.f32 %v952_v55, %v3151_v34  ;;  %v973_v0 = vstv %s2819_s23  ;;  %s3450_s23 = sld [smem:[#allocation8 + $0x3f]] }
  0xe0   : > { %v974_v11 = vmul.f32 %v973_v0, %v3146_v30 }
  0xe2   : > { %v545_v1 = vpop.permute.xlu1 %544  ;;  %v525_v2 = vpop.permute.xlu0 %524 }
  0xe3   : > { %547 = vst.msk [vmem:[#allocation3 + $0x12] sm:$0x1] %vm236_vm6, %v545_v1  ;;  %527 = vst.msk [vmem:[#allocation3 + $0x11] sm:$0x1] %vm236_vm6, %v525_v2  ;;  %v940_v1 = vsel %vm679_vm10, %v938_v62, %v939_v57  ;;  %v1127_v62 = vstv %s2827_s4  ;;  %s2841_s4 = sld [smem:[#allocation8 + $0x11]] }
  0xe6   : > { %v3203_v6 = vld [vmem:[#allocation3 + $0x8] sm:$0xff] }
  0xe7   : > { %v793_v8 = vmul.f32 %v791_v35, %v3203_v6  ;;  %v828_v9 = vmul.f32 %v826_v4, %v3203_v6  ;;  %v3222_v20 = vmul.f32 %v868_v16, %v3203_v6  ;;  %v1073_v27 = vmul.f32 %v1071_v43, %v3203_v6 }
  0xe8   : > { %v890_v35 = vmul.f32 %v889_v25, %v3146_v30  ;;  %v3245_v39 = vmul.f32 %v910_v36, %v3203_v6  ;;  %v3267_v58 = vmul.f32 %v952_v55, %v3203_v6 }
  0xe9   : > { %798 = vrot.lane.b32.xlu1 %v793_v8, %s3017_s13  ;;  %v834_v14 = vrot.slane %v828_v9, 1  ;;  %v876_v28 = vrot.slane %v3222_v20, 2  ;;  %v959_v9 = vrot.slane %v953_v63, 4  ;;  %v980_v20 = vrot.slane %v974_v11, 5 }
  0xea   : > { %v3226_v22 = vld [vmem:[#allocation3 + $0x10] sm:$0x3f]  ;;  %v896_v43 = vrot.slane %v890_v35, 3  ;;  %v918_v47 = vrot.slane %v3245_v39, 3  ;;  %v960_v2 = vrot.slane %v3267_v58, 4 }
  0xeb   : > { %v835_v17 = vsel %vm574_vm7, %v833_v13, %v834_v14  ;;  %v829_v32 = vmul.f32 %v826_v4, %v3226_v22  ;;  %v877_v37 = vsel %vm609_vm8, %v875_v33, %v876_v28  ;;  %v871_v52 = vmul.f32 %v868_v16, %v3226_v22 }
  0xec   : > { %838 = vrot.lane.b32.xlu0 %v835_v17, %s3017_s13  ;;  %v898_v46 = vsel %vm644_vm9, %v896_v43, %v897_v38  ;;  %v919_v56 = vsel %vm644_vm9, %v917_v53, %v918_v47  ;;  %v3277_v4 = vmul.f32 %v973_v0, %v3180_v51  ;;  %v913_v8 = vmul.f32 %v910_v36, %v3226_v22 }
  0xed   : > { %1064 = vrot.lane.b32.xlu1 %v1059_v18, %s3018_s16  ;;  %v836_v41 = vrot.slane %v829_v32, 1  ;;  %v878_v60 = vrot.slane %v871_v52, 2  ;;  %v994_v13 = vstv %s2820_s25  ;;  %v900_v17 = vsel %vm644_vm9, %v897_v38, %v899_v7  ;;  %s3455_s25 = sld [smem:[#allocation8 + $0x15]] }
  0xee   : > { %v981_v15 = vrot.slane %v3277_v4, 5  ;;  %v3287_v16 = vmul.f32 %v994_v13, %v3203_v6  ;;  %v920_v18 = vrot.slane %v913_v8, 3  ;;  %v995_v21 = vmul.f32 %v994_v13, %v3151_v34 }
  0xef   : > { %v837_v49 = vsel %vm574_vm7, %v834_v14, %v836_v41  ;;  %v879_v5 = vsel %vm609_vm8, %v876_v28, %v878_v60  ;;  %v961_v14 = vsel %vm679_vm10, %v959_v9, %v960_v2  ;;  %v941_v28 = vrot.slane %v934_v19, 4 }
  0xf0   : > { %859 = vrot.lane.b32.xlu0 %v856_v26, %s3017_s13  ;;  %v982_v24 = vsel %vm714_vm11, %v980_v20, %v981_v15  ;;  %v1002_v25 = vrot.slane %v3287_v16, 5  ;;  %v3297_v26 = vmul.f32 %v1015_v23, %v3180_v51  ;;  %v955_v29 = vmul.f32 %v952_v55, %v3226_v22 }
  0xf1   : > { %1078 = vrot.lane.b32.xlu1 %v1073_v27, %s3018_s16  ;;  %v921_v27 = vsel %vm644_vm9, %v918_v47, %v920_v18  ;;  %v1001_v31 = vrot.slane %v995_v21, 5  ;;  %v1016_v32 = vmul.f32 %v1015_v23, %v3146_v30  ;;  %v1036_v33 = vstv %s2822_s28  ;;  %s3458_s28 = sld [smem:[#allocation8 + $0x46]] }
  0xf2   : > { %v1023_v36 = vrot.slane %v3297_v26, 6  ;;  %v942_v38 = vsel %vm679_vm10, %v939_v57, %v941_v28  ;;  %v962_v39 = vrot.slane %v955_v29, 4  ;;  %v1037_v42 = vmul.f32 %v1036_v33, %v3151_v34 }
  0xf3   : > { %v1003_v35 = vsel %vm714_vm11, %v1001_v31, %v1002_v25  ;;  %v1022_v41 = vrot.slane %v1016_v32, 6  ;;  %v1085_v43 = vstv %s2825_s29  ;;  %v1106_v53 = vstv %s2826_s30  ;;  %s3462_s29 = sld [smem:[#allocation8 + $0x1c]] }
  0xf4   : > { %880 = vrot.lane.b32.xlu0 %v877_v37, %s3017_s13  ;;  %v3307_v37 = vmul.f32 %v1036_v33, %v3203_v6  ;;  %v963_v47 = vsel %vm679_vm10, %v960_v2, %v962_v39  ;;  %v1043_v50 = vrot.slane %v1037_v42, 6  ;;  %v1086_v52 = vmul.f32 %v1085_v43, %v3146_v30  ;;  %s3469_s30 = sld [smem:[#allocation8 + $0x4d]] }
  0xf5   : > { %819 = vrot.lane.b32.xlu1 %v816_v40, %s3017_s13  ;;  %v976_v40 = vmul.f32 %v973_v0, %v3212_v12  ;;  %v1024_v44 = vsel %vm749_vm12, %v1022_v41, %v1023_v36  ;;  %v1107_v61 = vmul.f32 %v1106_v53, %v3151_v34  ;;  %v1128_v8 = vmul.f32 %v1127_v62, %v3146_v30 }
  0xf6   : > { %v1044_v45 = vrot.slane %v3307_v37, 6  ;;  %v1092_v60 = vrot.slane %v1086_v52, 1  ;;  %v1148_v9 = vstv %s2828_s5  ;;  %v1169_v20 = vstv %s2829_s6  ;;  %s3473_s5 = sld [smem:[#allocation8 + $0x23]] }
  0xf7   : > { %v983_v48 = vrot.slane %v976_v40, 5  ;;  %v1113_v7 = vrot.slane %v1107_v61, 1  ;;  %v1134_v18 = vrot.slane %v1128_v8, 2  ;;  %v1149_v19 = vmul.f32 %v1148_v9, %v3151_v34  ;;  %s3479_s6 = sld [smem:[#allocation8 + $0x54]] }
  0xf8   : > { %901 = vrot.lane.b32.xlu0 %v898_v46, %s3017_s13  ;;  %v3317_v46 = vmul.f32 %v1085_v43, %v3180_v51  ;;  %v1045_v54 = vsel %vm749_vm12, %v1043_v50, %v1044_v45  ;;  %v1170_v29 = vmul.f32 %v1169_v20, %v3146_v30  ;;  %v1190_v31 = vstv %s2830_s7  ;;  %s3019_s7 = smov 125  }
  0xf9   : > { %840 = vrot.lane.b32.xlu1 %v837_v49, %s3017_s13  ;;  %v997_v49 = vmul.f32 %v994_v13, %v3226_v22  ;;  %v984_v57 = vsel %vm714_vm11, %v981_v15, %v983_v48  ;;  %v1155_v28 = vrot.slane %v1149_v19, 2  ;;  %v1191_v40 = vmul.f32 %v1190_v31, %v3151_v34 }
  0xfa   : > { %v1093_v55 = vrot.slane %v3317_v46, 1  ;;  %v1176_v39 = vrot.slane %v1170_v29, 3  ;;  %v1211_v41 = vstv %s2831_s8  ;;  %v1232_v50 = vstv %s2832_s9  ;;  %s3484_s8 = sld [smem:[#allocation8 + $0x2a]] }
  0xfb   : > { %v1004_v58 = vrot.slane %v997_v49, 5  ;;  %v1197_v48 = vrot.slane %v1191_v40, 3  ;;  %v1212_v49 = vmul.f32 %v1211_v41, %v3146_v30  ;;  %s2842_s9 = sld [smem:[#allocation8 + $0x42]] }
  0xfc   : > { %922 = vrot.lane.b32.xlu0 %v919_v56, %s3017_s13  ;;  %v3327_v56 = vmul.f32 %v1106_v53, %v3203_v6  ;;  %v1094_v63 = vsel %vm574_vm7, %v1092_v60, %v1093_v55  ;;  %v1253_v60 = vstv %s2833_s10  ;;  %s3493_s10 = sld [smem:[#allocation8 + $0x5b]] }
  0xfd   : > { %861 = vrot.lane.b32.xlu1 %v858_v59, %s3017_s13  ;;  %v1018_v59 = vmul.f32 %v1015_v23, %v3212_v12  ;;  %v1005_v2 = vsel %vm714_vm11, %v1002_v25, %v1004_v58  ;;  %v1218_v58 = vrot.slane %v1212_v49, 4 }
  0xfe   : > { %v1114_v0 = vrot.slane %v3327_v56, 1 }
  0xff   : > { %v1025_v4 = vrot.slane %v1018_v59, 6  ;;  %v1233_v59 = vmul.f32 %v1232_v50, %v3151_v34 }
 0x100   : > { %943 = vrot.lane.b32.xlu0 %v940_v1, %s3017_s13  ;;  %v3337_v1 = vmul.f32 %v1127_v62, %v3180_v51  ;;  %v1115_v11 = vsel %vm574_vm7, %v1113_v7, %v1114_v0  ;;  %v1274_v7 = vstv %s2834_s11  ;;  %s3501_s11 = sld [smem:[#allocation8 + $0x18]] }
 0x101   : > { %882 = vrot.lane.b32.xlu1 %v879_v5, %s3017_s13  ;;  %v1039_v5 = vmul.f32 %v1036_v33, %v3226_v22  ;;  %v1026_v15 = vsel %vm749_vm12, %v1023_v36, %v1025_v4  ;;  %v1239_v4 = vrot.slane %v1233_v59, 4 }
 0x102   : > { %v1135_v13 = vrot.slane %v3337_v1, 2 }
 0x103   : > { %v1046_v16 = vrot.slane %v1039_v5, 6  ;;  %v1254_v5 = vmul.f32 %v1253_v60, %v3146_v30 }
 0x104   : > { %964 = vrot.lane.b32.xlu0 %v961_v14, %s3017_s13  ;;  %v3347_v14 = vmul.f32 %v1148_v9, %v3203_v6  ;;  %v1136_v21 = vsel %vm609_vm8, %v1134_v18, %v1135_v13  ;;  %v1295_v18 = vstv %s2835_s12  ;;  %s3505_s12 = sld [smem:[#allocation8 + $0x49]] }
 0x105   : > { %903 = vrot.lane.b32.xlu1 %v900_v17, %s3017_s13  ;;  %v1088_v17 = vmul.f32 %v1085_v43, %v3212_v12  ;;  %v1047_v25 = vsel %vm749_vm12, %v1044_v45, %v1046_v16  ;;  %v1260_v16 = vrot.slane %v1254_v5, 5 }
 0x106   : > { %v1156_v23 = vrot.slane %v3347_v14, 2 }
 0x107   : > { %v1095_v26 = vrot.slane %v1088_v17, 1  ;;  %v1275_v17 = vmul.f32 %v1274_v7, %v3151_v34 }
 0x108   : > { %985 = vrot.lane.b32.xlu0 %v982_v24, %s3017_s13  ;;  %v3357_v24 = vmul.f32 %v1169_v20, %v3180_v51  ;;  %v1157_v32 = vsel %vm609_vm8, %v1155_v28, %v1156_v23 }
 0x109   : > { %924 = vrot.lane.b32.xlu1 %v921_v27, %s3017_s13  ;;  %v1109_v27 = vmul.f32 %v1106_v53, %v3226_v22  ;;  %v1096_v36 = vsel %vm574_vm7, %v1093_v55, %v1095_v26  ;;  %v1281_v26 = vrot.slane %v1275_v17, 5  ;;  %v3532_v17 = vstv %s2842_s9  ;;  %s3550_s9 = sld [smem:[#allocation8 + $0x4]] }
 0x10a   : > { %v1177_v33 = vrot.slane %v3357_v24, 3 }
 0x10b   : > { %v1116_v37 = vrot.slane %v1109_v27, 1  ;;  %v1296_v27 = vmul.f32 %v1295_v18, %v3146_v30 }
 0x10c   : > { %1006 = vrot.lane.b32.xlu0 %v1003_v35, %s3017_s13  ;;  %v3367_v35 = vmul.f32 %v1190_v31, %v3203_v6  ;;  %v1178_v42 = vsel %vm644_vm9, %v1176_v39, %v1177_v33 }
 0x10d   : > { %945 = vrot.lane.b32.xlu1 %v942_v38, %s3017_s13  ;;  %v1130_v38 = vmul.f32 %v1127_v62, %v3212_v12  ;;  %v1117_v45 = vsel %vm574_vm7, %v1114_v0, %v1116_v37  ;;  %v1302_v37 = vrot.slane %v1296_v27, 6 }
 0x10e   : > { %v1198_v43 = vrot.slane %v3367_v35, 3 }
 0x10f   : > { %v1137_v46 = vrot.slane %v1130_v38, 2 }
 0x110   : > { %1027 = vrot.lane.b32.xlu0 %v1024_v44, %s3017_s13  ;;  %v3377_v44 = vmul.f32 %v1211_v41, %v3180_v51  ;;  %v1199_v52 = vsel %vm644_vm9, %v1197_v48, %v1198_v43 }
 0x111   : > { %966 = vrot.lane.b32.xlu1 %v963_v47, %s3017_s13  ;;  %v1151_v47 = vmul.f32 %v1148_v9, %v3226_v22  ;;  %v1138_v55 = vsel %vm609_vm8, %v1135_v13, %v1137_v46  ;;  %v1337_v46 = vstv %s3435_s18  ;;  %s3519_s18 = sld [smem:[#allocation8 + $0x50]] }
 0x112   : > { %v1219_v53 = vrot.slane %v3377_v44, 4 }
 0x113   : > { %v1158_v56 = vrot.slane %v1151_v47, 2 }
 0x114   : > { %1048 = vrot.lane.b32.xlu0 %v1045_v54, %s3017_s13  ;;  %v3387_v54 = vmul.f32 %v1232_v50, %v3203_v6  ;;  %v1220_v61 = vsel %vm679_vm10, %v1218_v58, %v1219_v53 }
 0x115   : > { %987 = vrot.lane.b32.xlu1 %v984_v57, %s3017_s13  ;;  %v1172_v57 = vmul.f32 %v1169_v20, %v3212_v12  ;;  %v1159_v0 = vsel %vm609_vm8, %v1156_v23, %v1158_v56 }
 0x116   : > { %v1240_v62 = vrot.slane %v3387_v54, 4  ;;  %v1351_v54 = vstv %s3448_s22  ;;  %s3611_s22 = sld [smem:[#allocation8 + $0x43]] }
 0x117   : > { %v1179_v1 = vrot.slane %v1172_v57, 3 }
 0x118   : > { %1097 = vrot.lane.b32.xlu0 %v1094_v63, %s3018_s16  ;;  %v3397_v63 = vmul.f32 %v1253_v60, %v3180_v51  ;;  %v1241_v8 = vsel %vm679_vm10, %v1239_v4, %v1240_v62 }
 0x119   : > { %1008 = vrot.lane.b32.xlu1 %v1005_v2, %s3017_s13  ;;  %v1193_v2 = vmul.f32 %v1190_v31, %v3226_v22  ;;  %v1180_v13 = vsel %vm644_vm9, %v1177_v33, %v1179_v1 }
 0x11a   : > { %v1261_v9 = vrot.slane %v3397_v63, 5 }
 0x11b   : > { %v1200_v14 = vrot.slane %v1193_v2, 3 }
 0x11c   : > { %1118 = vrot.lane.b32.xlu0 %v1115_v11, %s3018_s16  ;;  %v3407_v11 = vmul.f32 %v1274_v7, %v3203_v6  ;;  %v1262_v19 = vsel %vm714_vm11, %v1260_v16, %v1261_v9 }
 0x11d   : > { %1029 = vrot.lane.b32.xlu1 %v1026_v15, %s3017_s13  ;;  %v1214_v15 = vmul.f32 %v1211_v41, %v3212_v12  ;;  %v1201_v23 = vsel %vm644_vm9, %v1198_v43, %v1200_v14  ;;  %v1277_v43 = vmul.f32 %v1274_v7, %v3226_v22  ;;  %v3507_v7 = vstv %s2841_s4  ;;  %s3534_s4 = sld [smem:[#allocation8 + $0x2d]] }
 0x11e   : > { %v1282_v20 = vrot.slane %v3407_v11, 5  ;;  %v3517_v11 = vmul.f32 %v3507_v7, %v3180_v51  ;;  %v1408_v16 = vmul.f32 %v3507_v7, %v3146_v30 }
 0x11f   : > { %v1221_v24 = vrot.slane %v1214_v15, 4  ;;  %v1284_v49 = vrot.slane %v1277_v43, 5 }
 0x120   : > { %1139 = vrot.lane.b32.xlu0 %v1136_v21, %s3018_s16  ;;  %v3417_v21 = vmul.f32 %v1295_v18, %v3180_v51  ;;  %v1283_v29 = vsel %vm714_vm11, %v1281_v26, %v1282_v20  ;;  %v3554_v26 = vstv %s3428_s2  ;;  %v1414_v27 = vrot.slane %v1408_v16, 2  ;;  %s3575_s2 = sld [smem:[#allocation8 + $0xb]] }
 0x121   : > { %1050 = vrot.lane.b32.xlu1 %v1047_v25, %s3017_s13  ;;  %s2836_s13 = sld [smem:[#allocation8 + $0x5d]]  ;;  %v1235_v25 = vmul.f32 %v1232_v50, %v3226_v22  ;;  %v1222_v33 = vsel %vm679_vm10, %v1219_v53, %v1221_v24  ;;  %v1298_v50 = vmul.f32 %v1295_v18, %v3212_v12  ;;  %v1365_v53 = vstv %s2839_s21 }
 0x122   : > { %v1303_v31 = vrot.slane %v3417_v21, 6  ;;  %v1285_v56 = vsel %vm714_vm11, %v1282_v20, %v1284_v49  ;;  %v1366_v59 = vmul.f32 %v1365_v53, %v3146_v30  ;;  %s3525_s21 = sld [smem:[#allocation8 + $0x26]]  ;;  %v1415_v20 = vrot.slane %v3517_v11, 2 }
 0x123   : > { %v1242_v35 = vrot.slane %v1235_v25, 4  ;;  %v1305_v57 = vrot.slane %v1298_v50, 6  ;;  %v3543_v21 = vmul.f32 %v3532_v17, %v3203_v6  ;;  %v1368_v24 = vmul.f32 %v1365_v53, %v3212_v12 }
 0x124   : > { %1160 = vrot.lane.b32.xlu0 %v1157_v32, %s3018_s16  ;;  %v1304_v39 = vsel %vm749_vm12, %v1302_v37, %v1303_v31  ;;  %v1372_v4 = vrot.slane %v1366_v59, 1  ;;  %v1416_v37 = vsel %vm609_vm8, %v1414_v27, %v1415_v20  ;;  %v3614_v50 = vstv %s3473_s5  ;;  %s4284_s5 = sld [smem:[#allocation8 + $0x5f]] }
 0x125   : > { %1099 = vrot.lane.b32.xlu1 %v1096_v36, %s3018_s16  ;;  %v1256_v36 = vmul.f32 %v1253_v60, %v3212_v12  ;;  %v1243_v41 = vsel %vm679_vm10, %v1240_v62, %v1242_v35  ;;  %v1386_v62 = vstv %s2840_s26  ;;  %v1306_v1 = vsel %vm749_vm12, %v1303_v31, %v1305_v57  ;;  %s3530_s26 = sld [smem:[#allocation8 + $0x57]] }
 0x126   : > { %v1387_v5 = vmul.f32 %v1386_v62, %v3151_v34  ;;  %v3565_v31 = vstv %s3442_s20  ;;  %v3573_v35 = vstv %s3501_s11  ;;  %v1375_v43 = vrot.slane %v1368_v24, 1  ;;  %s3600_s20 = sld [smem:[#allocation8 + $0x12]] }
 0x127   : > { %v1316_v28 = vstv %s2836_s13  ;;  %s3509_s13 = sld [smem:[#allocation8 + $0x1f]]  ;;  %v1450_v49 = vmul.f32 %v3573_v35, %v3146_v30  ;;  %v3630_v57 = vstv %s3493_s10  ;;  %v1452_v10 = vmul.f32 %v3573_v35, %v3212_v12 }
 0x128   : > { %1181 = vrot.lane.b32.xlu0 %v1178_v42, %s3018_s16  ;;  %v3433_v32 = vmul.f32 %v1316_v28, %v3203_v6  ;;  %v1317_v38 = vmul.f32 %v1316_v28, %v3151_v34  ;;  %v1263_v42 = vrot.slane %v1256_v36, 5  ;;  %v1319_v58 = vmul.f32 %v1316_v28, %v3226_v22  ;;  %s4381_s10 = sld [smem:[#allocation8 + $0x3d]] }
 0x129   : > { %1120 = vrot.lane.b32.xlu1 %v1117_v45, %s3018_s16  ;;  %v1393_v15 = vrot.slane %v1387_v5, 1  ;;  %v1429_v28 = vmul.f32 %v3532_v17, %v3151_v34  ;;  %v3658_v16 = vstv %s3525_s21  ;;  %s4401_s11 = sld [smem:[#allocation8 + $0x13]] }
 0x12a   : > { %v1324_v40 = vrot.slane %v3433_v32, 6  ;;  %v1323_v44 = vrot.slane %v1317_v38, 6  ;;  %v1264_v48 = vsel %vm714_vm11, %v1261_v9, %v1263_v42  ;;  %v1326_v2 = vrot.slane %v1319_v58, 6  ;;  %s4461_s21 = sld [smem:[#allocation8 + $0x4b]] }
 0x12b   : > { %v3568_v32 = vstv %s3450_s23  ;;  %v1353_v38 = vmul.f32 %v1351_v54, %v3203_v6  ;;  %v3596_v42 = vstv %s3458_s28  ;;  %s3627_s23 = sld [smem:[#allocation8 + $0x19]] }
 0x12c   : > { %1202 = vrot.lane.b32.xlu0 %v1199_v52, %s3018_s16  ;;  %v1325_v45 = vsel %vm749_vm12, %v1323_v44, %v1324_v40  ;;  %v1338_v52 = vmul.f32 %v1337_v46, %v3146_v30  ;;  %v1327_v14 = vsel %vm749_vm12, %v1324_v40, %v1326_v2  ;;  %v3588_v40 = vmul.f32 %v3573_v35, %v3180_v51  ;;  %s4187_s28 = sld [smem:[#allocation8 + $0x27]] }
 0x12d   : > { %1141 = vrot.lane.b32.xlu1 %v1138_v55, %s3018_s16  ;;  %v3477_v55 = vmul.f32 %v1365_v53, %v3180_v51  ;;  %v1389_v44 = vmul.f32 %v1386_v62, %v3226_v22  ;;  %v3620_v53 = vstv %s3484_s8  ;;  %v3649_v5 = vstv %s3509_s13  ;;  %s4367_s8 = sld [smem:[#allocation8 + $0x36]] }
 0x12e   : > { %s2870_s13 = sld [smem:[#allocation8 + $0x44]] }
 0x12f   : > { %v1373_v63 = vrot.slane %v3477_v55, 1  ;;  %v1396_v2 = vrot.slane %v1389_v44, 1 }
 0x130   : > { %1223 = vrot.lane.b32.xlu0 %v1220_v61, %s3018_s16  ;;  %v1352_v61 = vmul.f32 %v1351_v54, %v3151_v34 }
 0x131   : > { %1162 = vrot.lane.b32.xlu1 %v1159_v0, %s3018_s16  ;;  %v3497_v0 = vmul.f32 %v1386_v62, %v3203_v6 }
 0x133   : > { %v3464_v47 = vpop.permute.xlu0 %782  ;;  %v1394_v9 = vrot.slane %v3497_v0, 1 }
 0x134   : > { %1244 = vrot.lane.b32.xlu0 %v1241_v8, %s3018_s16  ;;  %v1374_v8 = vsel %vm574_vm7, %v1372_v4, %v1373_v63  ;;  %v1410_v4 = vmul.f32 %v3507_v7, %v3212_v12 }
 0x135   : > { %1183 = vrot.lane.b32.xlu1 %v1180_v13, %s3018_s16  ;;  %v1395_v18 = vsel %vm574_vm7, %v1393_v15, %v1394_v9  ;;  %v3655_v15 = vstv %s3519_s18  ;;  %s2871_s18 = sld [smem:[#allocation8 + $0x1a]] }
 0x136   : > { %v1417_v44 = vrot.slane %v1410_v4, 2  ;;  %v3710_v4 = vstv %s3611_s22  ;;  %s4698_s22 = sld [smem:[#allocation8 + $0xd]] }
 0x137   : > { %v3488_v60 = vpop.permute.xlu0 %796 }
 0x138   : > { %1265 = vrot.lane.b32.xlu0 %v1262_v19, %s3018_s16  ;;  %v1339_v19 = vmul.f32 %v1337_v46, %v3180_v51  ;;  %v3606_v46 = vstv %s3469_s30  ;;  %s4253_s30 = sld [smem:[#allocation8 + $0x2e]] }
 0x139   : > { %1204 = vrot.lane.b32.xlu1 %v1201_v23, %s3018_s16  ;;  %v5122_v23 = vstv %s3419_s15 }
 0x13b   : > { %v3521_v13 = vpop.permute.xlu0 %1062 }
 0x13c   : > { %1286 = vrot.lane.b32.xlu0 %v1283_v29, %s3018_s16  ;;  %5143 = vst [vmem:[#allocation12_spill] sm:$0xff] %v3521_v13  ;;  %v3562_v29 = vstv %s3437_s19  ;;  %s3590_s19 = sld [smem:[#allocation8 + $0x3c]]  ;;  %v1459_v13 = vrot.slane %v1452_v10, 3  ;;  %v3787_v10 = vmul.f32 %v3568_v32, %v3203_v6 }
 0x13d   : > { %1225 = vrot.lane.b32.xlu1 %v1222_v33, %s3018_s16 }
 0x13f   : > { %v3570_v33 = vpop.permute.xlu0 %1076 }
 0x140   : > { %1307 = vrot.lane.b32.xlu0 %v1304_v39, %s3018_s16  ;;  %5144 = vst [vmem:[#allocation13_spill] sm:$0xff] %v3570_v33  ;;  %v5119_v39 = vrot.slane %v3543_v21, 2 }
 0x141   : > { %1246 = vrot.lane.b32.xlu1 %v1243_v41, %s3018_s16  ;;  %v3593_v41 = vstv %s3455_s25  ;;  %s4120_s25 = sld [smem:[#allocation8 + $0x20]] }
 0x142   : > { %v3700_v0 = vstv %s3590_s19  ;;  %s4623_s19 = sld [smem:[#allocation8 + $0x60]] }
 0x144   : > { %1328 = vrot.lane.b32.xlu0 %v1325_v45, %s3018_s16  ;;  %v3603_v45 = vstv %s3462_s29  ;;  %s4222_s29 = sld [smem:[#allocation8 + $0x58]] }
 0x145   : > { %1267 = vrot.lane.b32.xlu1 %v1264_v48, %s3018_s16  ;;  %v1435_v48 = vrot.slane %v1429_v28, 2 }
 0x147   : > { %v3577_v36 = vpop.permute.xlu1 %784  ;;  %v1437_v59 = vsel %vm609_vm8, %v1435_v48, %v5119_v39  ;;  %v1431_v48 = vmul.f32 %v3532_v17, %v3226_v22  ;;  %v3707_v17 = vstv %s3600_s20  ;;  %v1418_v39 = vsel %vm609_vm8, %v1415_v20, %v1417_v44  ;;  %v3747_v20 = vld [vmem:[#allocation2] sm:$0xff]  ;;  %s4685_s20 = sld [smem:[#allocation8 + $0x6]] }
 0x148   : > { %1342 = vrot.lane.b32.xlu0 %v1338_v52, %s3019_s7  ;;  %5145 = vst [vmem:[#allocation14_spill] sm:$0xff] %v3577_v36  ;;  %v3617_v52 = vstv %s3479_s6  ;;  %v603_v35 = vmul.f32 %v3747_v20, %v3565_v31  ;;  %v3753_v44 = vmul.f32 %v3565_v31, %v3180_v51  ;;  %s4345_s6 = sld [smem:[#allocation8 + $0x5]] }
 0x149   : > { %1288 = vrot.lane.b32.xlu1 %v1285_v56, %s3018_s16  ;;  %v3625_v56 = vstv %s3505_s12  ;;  %v1438_v25 = vrot.slane %v1431_v48, 2  ;;  %s3021_s12 = smov 123  }
 0x14a   : > { %v3622_v54 = vpop.permute.xlu0 %817  ;;  %v3640_v62 = vmul.f32 %v3625_v56, %v3203_v6  ;;  %v610_v36 = vrot.slane %v603_v35, 2 }
 0x14c   : > { %1356 = vrot.lane.b32.xlu0 %v1352_v61, %s3019_s7  ;;  %v5118_v61 = vrot.slane %v3588_v40, 3  ;;  %v5121_v28 = vrot.slane %v3640_v62, 3 }
 0x14d   : > { %1309 = vrot.lane.b32.xlu1 %v1306_v1, %s3018_s16  ;;  %v1376_v1 = vsel %vm574_vm7, %v1373_v63, %v1375_v43  ;;  %v3663_v63 = vstv %s3530_s26  ;;  %v1397_v43 = vsel %vm574_vm7, %v1394_v9, %v1396_v2  ;;  %v568_v9 = vmul.f32 %v3554_v26, %v3146_v30  ;;  %s4482_s26 = sld [smem:[#allocation8 + $0x21]] }
 0x150   : > { %1377 = vrot.lane.b32.xlu0 %v1374_v8, %s3019_s7  ;;  %v1456_v8 = vrot.slane %v1450_v49, 3  ;;  %v3690_v49 = vstv %s3575_s2  ;;  %s4591_s2 = sld [smem:[#allocation8 + $0x2f]] }
 0x151   : > { %1330 = vrot.lane.b32.xlu1 %v1327_v14, %s3018_s16  ;;  %s3545_s16 = sld [smem:[#allocation8 + $0x5e]]  ;;  %v1471_v14 = vmul.f32 %v3625_v56, %v3151_v34 }
 0x152   : > { %v1458_v27 = vsel %vm644_vm9, %v1456_v8, %v5118_v61  ;;  %v1492_v8 = vmul.f32 %v3649_v5, %v3146_v30  ;;  %v556_v61 = vmul.f32 %v5122_v23, %v3146_v30  ;;  %v1513_v30 = vmul.f32 %v3655_v15, %v3151_v34 }
 0x153   : > { %v575_v23 = vrot.slane %v568_v9, 1 }
 0x154   : > { %1398 = vrot.lane.b32.xlu0 %v1395_v18, %s3019_s7  ;;  %v3666_v18 = vstv %s3534_s4  ;;  %s4505_s4 = sld [smem:[#allocation8 + $0x52]] }
 0x155   : > { %1344 = vrot.lane.b32.xlu1 %v1339_v19, %s3019_s7  ;;  %v3727_v19 = vmul.f32 %v3655_v15, %v3203_v6 }
 0x157   : > { %v3669_v7 = vstv %s3545_s16  ;;  %s4533_s16 = sld [smem:[#allocation8 + $0x28]] }
 0x158   : > { %1419 = vrot.lane.b32.xlu0 %v1416_v37, %s3019_s7  ;;  %v3680_v37 = vmul.f32 %v3649_v5, %v3180_v51 }
 0x159   : > { %1358 = vrot.lane.b32.xlu1 %v1353_v38, %s3019_s7  ;;  %v1498_v38 = vrot.slane %v1492_v8, 4 }
 0x15b   : > { %v3632_v58 = vpop.permute.xlu1 %798 }
 0x15c   : > { %5146 = vst [vmem:[#allocation15_spill] sm:$0xff] %v3632_v58  ;;  %1440 = vrot.lane.b32.xlu0 %v1437_v59, %s3019_s7  ;;  %v3694_v59 = vmul.f32 %v3554_v26, %v3180_v51  ;;  %v1534_v58 = vmul.f32 %v3747_v20, %v3658_v16 }
 0x15d   : > { %1379 = vrot.lane.b32.xlu1 %v1376_v1, %s3019_s7  ;;  %v1477_v1 = vrot.slane %v1471_v14, 3  ;;  %v3717_v14 = vmul.f32 %v3562_v29, %v3203_v6 }
 0x15e   : > { %v3660_v55 = vpop.permute.xlu0 %838 }
 0x15f   : > { %v3672_v24 = vpop.permute.xlu1 %1064  ;;  %v1479_v3 = vsel %vm644_vm9, %v1477_v1, %v5121_v28  ;;  %v586_v28 = vmul.f32 %v3562_v29, %v3151_v34  ;;  %v5151_v1 = vrot.slane %v3680_v37, 4 }
 0x160   : > { %5147 = vst [vmem:[#allocation16_spill] sm:$0xff] %v3672_v24  ;;  %1461 = vrot.lane.b32.xlu0 %v1458_v27, %s3019_s7  ;;  %v3713_v27 = vstv %s3627_s23  ;;  %s4707_s23 = sld [smem:[#allocation8 + $0x37]] }
 0x161   : > { %1400 = vrot.lane.b32.xlu1 %v1397_v43, %s3019_s7  ;;  %v592_v9 = vrot.slane %v586_v28, 1 }
 0x162   : > { %v3704_v2 = vpop.permute.xlu0 %859 }
 0x163   : > { %v3719_v43 = vpop.permute.xlu1 %1078 }
 0x164   : > { %5148 = vst [vmem:[#allocation17_spill] sm:$0xff] %v3719_v43  ;;  %1482 = vrot.lane.b32.xlu0 %v1479_v3, %s3019_s7  ;;  %v5149_v3 = vstv %s3424_s17  ;;  %v3768_v43 = vld [vmem:[#allocation3] sm:$0xff] }
 0x165   : > { %1421 = vrot.lane.b32.xlu1 %v1418_v39, %s3019_s7  ;;  %v562_v11 = vmul.f32 %v5149_v3, %v3151_v34  ;;  %v1500_v34 = vsel %vm679_vm10, %v1498_v38, %v5151_v1  ;;  %v3766_v3 = vmul.f32 %v3658_v16, %v3180_v51  ;;  %v621_v24 = vmul.f32 %v3768_v43, %v3568_v32 }
 0x166   : > { %v3755_v48 = vpop.permute.xlu0 %880  ;;  %v5152_v39 = vrot.slane %v3543_v21, 2  ;;  %v1473_v38 = vmul.f32 %v3625_v56, %v3226_v22  ;;  %v5153_v1 = vrot.slane %v3694_v59, 1  ;;  %v5155_v56 = vrot.slane %v3717_v14, 1 }
 0x167   : > { %v3758_v8 = vpop.permute.xlu1 %819  ;;  %v627_v21 = vrot.slane %v621_v24, 2 }
 0x168   : > { %5150 = vst [vmem:[#allocation18_spill] sm:$0xff] %v3758_v8  ;;  %1503 = vrot.lane.b32.xlu0 %v1500_v34, %s3019_s7  ;;  %v1439_v33 = vsel %vm609_vm8, %v5152_v39, %v1438_v25  ;;  %v577_v51 = vsel %vm574_vm7, %v575_v23, %v5153_v1  ;;  %v1519_v8 = vrot.slane %v1513_v30, 4  ;;  %v564_v34 = vadd.f32 %v562_v11, %v556_v61 }
 0x169   : > { %1442 = vrot.lane.b32.xlu1 %v1439_v33, %s3019_s7  ;;  %v594_v23 = vsel %vm574_vm7, %v592_v9, %v5155_v56  ;;  %v5157_v33 = vrot.slane %v3727_v19, 4  ;;  %v5123_v61 = vrot.slane %v3766_v3, 5  ;;  %v3802_v11 = vmul.f32 %v3663_v63, %v3203_v6 }
 0x16a   : > { %v3789_v25 = vpop.permute.xlu0 %901  ;;  %v582_v35 = vadd.f32 %v577_v51, %v564_v34  ;;  %v5158_v39 = vrot.slane %v3588_v40, 3  ;;  %v1480_v9 = vrot.slane %v1473_v38, 3  ;;  %v1494_v56 = vmul.f32 %v3649_v5, %v3212_v12 }
 0x16b   : > { %5154 = vst [vmem:[#allocation19_spill] sm:$0xff] %v3789_v25  ;;  %v3794_v28 = vpop.permute.xlu1 %840  ;;  %v1521_v30 = vsel %vm679_vm10, %v1519_v8, %v5157_v33  ;;  %v638_v8 = vmul.f32 %v3747_v20, %v3593_v41  ;;  %v1540_v33 = vrot.slane %v1534_v58, 5  ;;  %v1555_v51 = vmul.f32 %v3768_v43, %v3663_v63 }
 0x16c   : > { %5156 = vst [vmem:[#allocation20_spill] sm:$0xff] %v3794_v28  ;;  %1524 = vrot.lane.b32.xlu0 %v1521_v30, %s3019_s7  ;;  %v1460_v1 = vsel %vm644_vm9, %v5158_v39, %v1459_v13  ;;  %v599_v34 = vadd.f32 %v594_v23, %v582_v35  ;;  %v3815_v30 = vld [vmem:[#allocation2 + $0x8] sm:$0xff]  ;;  %v3823_v40 = vmul.f32 %v3768_v43, %v3596_v42  ;;  %v5162_v58 = vrot.slane %v3640_v62, 3 }
 0x16d   : > { %1463 = vrot.lane.b32.xlu1 %v1460_v1, %s3019_s7  ;;  %v3819_v13 = vmul.f32 %v3815_v30, %v3593_v41  ;;  %v3827_v5 = vmul.f32 %v3747_v20, %v3603_v45  ;;  %v1542_v23 = vsel %vm714_vm11, %v1540_v33, %v5123_v61  ;;  %v3840_v39 = vmul.f32 %v3815_v30, %v3666_v18 }
 0x16e   : > { %v3829_v24 = vpop.permute.xlu0 %922  ;;  %v5161_v1 = vrot.slane %v3753_v44, 2  ;;  %v1515_v33 = vmul.f32 %v3655_v15, %v3226_v22  ;;  %v570_v61 = vmul.f32 %v3554_v26, %v3212_v12  ;;  %v588_v35 = vmul.f32 %v3562_v29, %v3226_v22 }
 0x16f   : > { %5159 = vst [vmem:[#allocation21_spill] sm:$0xff] %v3829_v24  ;;  %v3832_v38 = vpop.permute.xlu1 %861  ;;  %v1501_v24 = vrot.slane %v1494_v56, 4  ;;  %v3861_v56 = vmul.f32 %v3596_v42, %v3203_v6  ;;  %v5163_v15 = vstv %s3424_s17  ;;  %v5165_v22 = vrot.slane %v3787_v10, 2  ;;  %s4069_s17 = sld [smem:[#allocation8 + $0x4a]] }
 0x170   : > { %5160 = vst [vmem:[#allocation22_spill] sm:$0xff] %v3832_v38  ;;  %v612_v28 = vsel %vm609_vm8, %v610_v36, %v5161_v1  ;;  %1545 = vrot.lane.b32.xlu0 %v1542_v23, %s3019_s7  ;;  %v1481_v38 = vsel %vm644_vm9, %v5162_v58, %v1480_v9  ;;  %v1561_v36 = vrot.slane %v1555_v51, 5  ;;  %v1576_v23 = vmul.f32 %v3747_v20, %v3666_v18 }
 0x171   : > { %1484 = vrot.lane.b32.xlu1 %v1481_v38, %s3019_s7  ;;  %v617_v62 = vadd.f32 %v612_v28, %v599_v34  ;;  %v563_v58 = vmul.f32 %v5163_v15, %v3203_v6  ;;  %v629_v29 = vsel %vm609_vm8, %v627_v21, %v5165_v22  ;;  %v5167_v38 = vrot.slane %v3802_v11, 5 }
 0x172   : > { %v3866_v26 = vpop.permute.xlu0 %943  ;;  %v3879_v1 = vmul.f32 %v3669_v7, %v3203_v6  ;;  %v5168_v9 = vstv %s3419_s15  ;;  %v1522_v22 = vrot.slane %v1515_v33, 4  ;;  %v1582_v34 = vrot.slane %v1576_v23, 6  ;;  %s3020_s15 = smov 124  }
 0x173   : > { %5164 = vst [vmem:[#allocation23_spill] sm:$0xff] %v3866_v26  ;;  %v3871_v51 = vpop.permute.xlu1 %882  ;;  %v1563_v28 = vsel %vm714_vm11, %v1561_v36, %v5167_v38  ;;  %v557_v15 = vmul.f32 %v3815_v30, %v5168_v9  ;;  %v5169_v26 = vrot.slane %v3680_v37, 4  ;;  %v578_v36 = vrot.slane %v570_v61, 1 }
 0x174   : > { %5166 = vst [vmem:[#allocation24_spill] sm:$0xff] %v3871_v51  ;;  %1566 = vrot.lane.b32.xlu0 %v1563_v28, %s3019_s7  ;;  %v1536_v51 = vmul.f32 %v3658_v16, %v3212_v12  ;;  %v595_v38 = vrot.slane %v588_v35, 1  ;;  %v1597_v6 = vmul.f32 %v3768_v43, %v3669_v7  ;;  %v634_v25 = vadd.f32 %v629_v29, %v617_v62  ;;  %v3903_v16 = vld [vmem:[#allocation2 + $0x10] sm:$0x3f] }
 0x175   : > { %v1502_v21 = vsel %vm679_vm10, %v5169_v26, %v1501_v24  ;;  %v645_v9 = vrot.slane %v638_v8, 3  ;;  %v3895_v28 = vmul.f32 %v3768_v43, %v3606_v46  ;;  %v565_v37 = vadd.f32 %v563_v58, %v557_v15 }
 0x176   : > { %1505 = vrot.lane.b32.xlu1 %v1502_v21, %s3019_s7  ;;  %v3897_v24 = vpop.permute.xlu0 %964  ;;  %v3901_v12 = vmul.f32 %v3815_v30, %v3603_v45  ;;  %v605_v61 = vmul.f32 %v3903_v16, %v3565_v31  ;;  %v5170_v8 = vrot.slane %v3840_v39, 6  ;;  %v5171_v62 = vrot.slane %v3819_v13, 3  ;;  %v3920_v31 = vld [vmem:[#allocation3 + $0x10] sm:$0x3f] }
 0x177   : > { %v3907_v35 = vpop.permute.xlu1 %903  ;;  %v5172_v26 = vrot.slane %v3727_v19, 4  ;;  %v1543_v15 = vrot.slane %v1536_v51, 5  ;;  %v1557_v21 = vmul.f32 %v3920_v31, %v3663_v63  ;;  %v1603_v19 = vrot.slane %v1597_v6, 6 }
 0x178   : > { %v1584_v33 = vsel %vm749_vm12, %v1582_v34, %v5170_v8  ;;  %v647_v58 = vsel %vm644_vm9, %v645_v9, %v5171_v62  ;;  %v5125_v34 = vrot.slane %v3861_v56, 3  ;;  %v5173_v8 = vrot.slane %v3694_v59, 1 }
 0x179   : > { %1587 = vrot.lane.b32.xlu0 %v1584_v33, %s3019_s7  ;;  %v1523_v29 = vsel %vm679_vm10, %v5172_v26, %v1522_v22  ;;  %v5174_v9 = vrot.slane %v3717_v14, 1  ;;  %v652_v22 = vadd.f32 %v647_v58, %v634_v25  ;;  %v3934_v51 = vmul.f32 %v3747_v20, %v3614_v50 }
 0x17a   : > { %v579_v23 = vsel %vm574_vm7, %v5173_v8, %v578_v36  ;;  %1526 = vrot.lane.b32.xlu1 %v1523_v29, %s3019_s7  ;;  %v3938_v63 = vmul.f32 %v3768_v43, %v3617_v52  ;;  %v3940_v59 = vpop.permute.xlu0 %985  ;;  %v662_v36 = vrot.slane %v3823_v40, 3  ;;  %v613_v14 = vrot.slane %v605_v61, 2  ;;  %v3960_v8 = vld [vmem:[#allocation3 + $0x8] sm:$0xff] }
 0x17b   : > { %v596_v33 = vsel %vm574_vm7, %v5174_v9, %v595_v38  ;;  %v583_v62 = vadd.f32 %v579_v23, %v565_v37  ;;  %v623_v38 = vmul.f32 %v3920_v31, %v3568_v32  ;;  %v3945_v26 = vpop.permute.xlu1 %924  ;;  %v5175_v25 = vrot.slane %v3879_v1, 6 }
 0x17c   : > { %v5176_v37 = vrot.slane %v3766_v3, 5  ;;  %v1564_v29 = vrot.slane %v1557_v21, 5  ;;  %v1578_v40 = vmul.f32 %v3903_v16, %v3666_v18  ;;  %v664_v32 = vsel %vm644_vm9, %v662_v36, %v5125_v34 }
 0x17d   : > { %v1605_v6 = vsel %vm749_vm12, %v1603_v19, %v5175_v25  ;;  %v600_v58 = vadd.f32 %v596_v33, %v583_v62  ;;  %v5124_v61 = vrot.slane %v3901_v12, 4  ;;  %v3964_v9 = vmul.f32 %v3960_v8, %v3606_v46 }
 0x17e   : > { %1608 = vrot.lane.b32.xlu0 %v1605_v6, %s3019_s7  ;;  %v1544_v23 = vsel %vm714_vm11, %v5176_v37, %v1543_v15  ;;  %v3968_v3 = vmul.f32 %v3747_v20, %v3620_v53  ;;  %v669_v15 = vadd.f32 %v664_v32, %v652_v22  ;;  %v680_v18 = vrot.slane %v3827_v5, 4  ;;  %v3976_v33 = vpop.permute.xlu0 %1006 }
 0x17f   : > { %1547 = vrot.lane.b32.xlu1 %v1544_v23, %s3019_s7  ;;  %v3974_v21 = vmul.f32 %v3815_v30, %v3614_v50  ;;  %v5177_v19 = vstv %s3550_s9  ;;  %v5178_v36 = vrot.slane %v3753_v44, 2  ;;  %v630_v6 = vrot.slane %v623_v38, 2  ;;  %v3986_v22 = vpop.permute.xlu1 %945 }
 0x180   : > { %v1618_v62 = vmul.f32 %v3747_v20, %v5177_v19  ;;  %v640_v37 = vmul.f32 %v3903_v16, %v3593_v41  ;;  %v3990_v5 = vmul.f32 %v3815_v30, %v3690_v49  ;;  %v5179_v32 = vrot.slane %v3802_v11, 5 }
 0x181   : > { %v614_v25 = vsel %vm609_vm8, %v5178_v36, %v613_v14  ;;  %v1585_v14 = vrot.slane %v1578_v40, 6  ;;  %v1599_v38 = vmul.f32 %v3920_v31, %v3669_v7  ;;  %v682_v41 = vsel %vm679_vm10, %v680_v18, %v5124_v61 }
 0x182   : > { %v618_v23 = vadd.f32 %v614_v25, %v600_v58  ;;  %1622 = vrot.lane.b32.xlu0 %v1618_v62, %s3020_s15  ;;  %v1565_v44 = vsel %vm714_vm11, %v5179_v32, %v1564_v29  ;;  %v5126_v19 = vrot.slane %v3964_v9, 4  ;;  %v4004_v58 = vmul.f32 %v3768_v43, %v3630_v57  ;;  %v4012_v62 = vpop.permute.xlu0 %1027 }
 0x183   : > { %1568 = vrot.lane.b32.xlu1 %v1565_v44, %s3019_s7  ;;  %v1646_v11 = vmul.f32 %v3747_v20, %v3690_v49  ;;  %v687_v29 = vadd.f32 %v682_v41, %v669_v15  ;;  %v697_v40 = vrot.slane %v3895_v28, 4  ;;  %v658_v7 = vmul.f32 %v3920_v31, %v3596_v42  ;;  %v4020_v44 = vpop.permute.xlu1 %966 }
 0x184   : > { %v5180_v18 = vstv %s3559_s0  ;;  %v5181_v25 = vrot.slane %v3787_v10, 2  ;;  %v648_v61 = vrot.slane %v640_v37, 3  ;;  %v5131_v34 = vrot.slane %v3990_v5, 1 }
 0x185   : > { %v1632_v36 = vmul.f32 %v3768_v43, %v5180_v18  ;;  %v4025_v28 = vmul.f32 %v3960_v8, %v3700_v0  ;;  %v5127_v42 = vrot.slane %v3974_v21, 5  ;;  %v5182_v41 = vrot.slane %v3840_v39, 6 }
 0x186   : > { %v631_v32 = vsel %vm609_vm8, %v5181_v25, %v630_v6  ;;  %v1606_v18 = vrot.slane %v1599_v38, 6  ;;  %v699_v6 = vsel %vm679_vm10, %v697_v40, %v5126_v19  ;;  %v4037_v37 = vmul.f32 %v3960_v8, %v3617_v52  ;;  %v4045_v38 = vpop.permute.xlu0 %1048 }
 0x187   : > { %v635_v15 = vadd.f32 %v631_v32, %v618_v23  ;;  %1636 = vrot.lane.b32.xlu0 %v1632_v36, %s3020_s15  ;;  %v1586_v10 = vsel %vm749_vm12, %v5182_v41, %v1585_v14  ;;  %v1652_v25 = vrot.slane %v1646_v11, 1  ;;  %v1667_v23 = vmul.f32 %v3768_v43, %v3700_v0  ;;  %v4050_v19 = vpop.permute.xlu1 %987 }
 0x188   : > { %1589 = vrot.lane.b32.xlu1 %v1586_v10, %s3019_s7  ;;  %v704_v36 = vadd.f32 %v699_v6, %v687_v29  ;;  %v715_v39 = vrot.slane %v3934_v51, 5  ;;  %v665_v32 = vrot.slane %v658_v7, 3  ;;  %v675_v14 = vmul.f32 %v3903_v16, %v3603_v45 }
 0x189   : > { %v5183_v40 = vrot.slane %v3819_v13, 3  ;;  %v1654_v11 = vsel %vm574_vm7, %v1652_v25, %v5131_v34  ;;  %v5129_v29 = vrot.slane %v4025_v28, 1  ;;  %v4058_v51 = vmul.f32 %v3815_v30, %v3707_v17 }
 0x18a   : > { %v732_v45 = vrot.slane %v3938_v63, 5  ;;  %v4063_v7 = vmul.f32 %v3815_v30, %v3620_v53  ;;  %v717_v6 = vsel %vm714_vm11, %v715_v39, %v5127_v42  ;;  %v5128_v63 = vrot.slane %v4037_v37, 5 }
 0x18b   : > { %v649_v41 = vsel %vm644_vm9, %v5183_v40, %v648_v61  ;;  %1657 = vrot.lane.b32.xlu0 %v1654_v11, %s3020_s15  ;;  %v5184_v61 = vrot.slane %v3879_v1, 6  ;;  %v1673_v25 = vrot.slane %v1667_v23, 1  ;;  %v722_v40 = vadd.f32 %v717_v6, %v704_v36  ;;  %v4085_v39 = vpop.permute.xlu1 %1008 }
 0x18c   : > { %v653_v13 = vadd.f32 %v649_v41, %v635_v15  ;;  %v1688_v15 = vmul.f32 %v3747_v20, %v3707_v17  ;;  %v5185_v41 = vrot.slane %v3861_v56, 3  ;;  %v693_v11 = vmul.f32 %v3920_v31, %v3606_v46 }
 0x18d   : > { %v1607_v10 = vsel %vm749_vm12, %v5184_v61, %v1606_v18  ;;  %v683_v18 = vrot.slane %v675_v14, 4  ;;  %v4083_v61 = vpop.permute.xlu0 %1097  ;;  %v1675_v23 = vsel %vm574_vm7, %v1673_v25, %v5129_v29  ;;  %v5130_v36 = vrot.slane %v4058_v51, 2 }
 0x18e   : > { %1610 = vrot.lane.b32.xlu1 %v1607_v10, %s3019_s7  ;;  %v666_v1 = vsel %vm644_vm9, %v5185_v41, %v665_v32  ;;  %v5186_v10 = vstv %s3550_s9  ;;  %v4096_v56 = vmul.f32 %v3960_v8, %v3710_v4  ;;  %v750_v32 = vrot.slane %v3968_v3, 6  ;;  %s2867_s7 = sld [smem:[#allocation8 + $0xc]] }
 0x18f   : > { %v1619_v42 = vmul.f32 %v3815_v30, %v5186_v10  ;;  %v5132_v46 = vrot.slane %v4063_v7, 6  ;;  %v670_v14 = vadd.f32 %v666_v1, %v653_v13  ;;  %1678 = vrot.lane.b32.xlu0 %v1675_v23, %s3020_s15  ;;  %v1648_v6 = vmul.f32 %v3903_v16, %v3690_v49  ;;  %v4122_v29 = vpop.permute.xlu1 %1029  ;;  %s4562_s9 = sld [smem:[#allocation8 + $0x59]] }
 0x190   : > { %v734_v25 = vsel %vm714_vm11, %v732_v45, %v5128_v63  ;;  %v4108_v41 = vmul.f32 %v3960_v8, %v3630_v57  ;;  %v1694_v3 = vrot.slane %v1688_v15, 2  ;;  %v1709_v13 = vmul.f32 %v3768_v43, %v3710_v4 }
 0x191   : > { %v739_v1 = vadd.f32 %v734_v25, %v722_v40  ;;  %v5187_v23 = vrot.slane %v3901_v12, 4  ;;  %v700_v10 = vrot.slane %v693_v11, 4  ;;  %v710_v45 = vmul.f32 %v3903_v16, %v3614_v50  ;;  %v4118_v63 = vpop.permute.xlu0 %1118 }
 0x192   : > { %1624 = vrot.lane.b32.xlu1 %v1619_v42, %s3020_s15  ;;  %v1696_v42 = vsel %vm609_vm8, %v1694_v3, %v5130_v36  ;;  %v5188_v15 = vstv %s3559_s0  ;;  %v1716_v12 = vrot.slane %v4096_v56, 2  ;;  %v1655_v11 = vrot.slane %v1648_v6, 1  ;;  %s4153_s0 = sld [smem:[#allocation8 + $0x51]] }
 0x193   : > { %v684_v49 = vsel %vm679_vm10, %v5187_v23, %v683_v18  ;;  %v1633_v40 = vmul.f32 %v3960_v8, %v5188_v15  ;;  %v4133_v18 = vmul.f32 %v3815_v30, %v3713_v27  ;;  %1699 = vrot.lane.b32.xlu0 %v1696_v42, %s3020_s15  ;;  %v1669_v25 = vmul.f32 %v3920_v31, %v3700_v0 }
 0x194   : > { %v688_v50 = vadd.f32 %v684_v49, %v670_v14  ;;  %v4139_v23 = vstv %s4069_s17  ;;  %v752_v3 = vsel %vm749_vm12, %v750_v32, %v5132_v46  ;;  %v768_v15 = vrot.slane %v4108_v41, 6  ;;  %s4739_s17 = sld [smem:[#allocation8 + $0x14]] }
 0x195   : > { %v1715_v36 = vrot.slane %v1709_v13, 2  ;;  %v1730_v14 = vmul.f32 %v3747_v20, %v3713_v27  ;;  %v757_v49 = vadd.f32 %v752_v3, %v739_v1  ;;  %v767_v6 = vrot.slane %v4004_v58, 6  ;;  %v4151_v34 = vpop.permute.xlu0 %1139 }
 0x196   : > { %1638 = vrot.lane.b32.xlu1 %v1633_v40, %s3020_s15  ;;  %v718_v42 = vrot.slane %v710_v45, 5  ;;  %v728_v0 = vmul.f32 %v3920_v31, %v3617_v52  ;;  %v5189_v32 = vrot.slane %v3964_v9, 4  ;;  %v4158_v40 = vpop.permute.xlu1 %1050  ;;  %v5133_v58 = vrot.slane %v4133_v18, 3 }
 0x197   : > { %v1717_v13 = vsel %vm609_vm8, %v1715_v36, %v1716_v12  ;;  %v4166_v52 = vmul.f32 %v3960_v8, %v4139_v23  ;;  %v5190_v9 = vrot.slane %v3990_v5, 1  ;;  %v1676_v45 = vrot.slane %v1669_v25, 1 }
 0x198   : > { %v701_v46 = vsel %vm679_vm10, %v5189_v32, %v700_v10  ;;  %1720 = vrot.lane.b32.xlu0 %v1717_v13, %s3020_s15  ;;  %v1690_v3 = vmul.f32 %v3903_v16, %v3707_v17  ;;  %v769_v36 = vsel %vm749_vm12, %v767_v6, %v768_v15  ;;  %v1736_v32 = vrot.slane %v1730_v14, 3 }
 0x199   : > { %v705_v1 = vadd.f32 %v701_v46, %v688_v50  ;;  %v1656_v10 = vsel %vm574_vm7, %v5190_v9, %v1655_v11  ;;  %v1751_v46 = vmul.f32 %v3768_v43, %v4139_v23  ;;  %v774_v50 = vadd.f32 %v769_v36, %v757_v49  ;;  %v4182_v11 = vpop.permute.xlu0 %1160 }
 0x19a   : > { %1659 = vrot.lane.b32.xlu1 %v1656_v10, %s3020_s15  ;;  %v735_v13 = vrot.slane %v728_v0, 5  ;;  %v745_v5 = vmul.f32 %v3903_v16, %v3620_v53  ;;  %v4185_v25 = vstv %s4120_s25  ;;  %v5191_v17 = vrot.slane %v3974_v21, 5  ;;  %v4192_v9 = vpop.permute.xlu1 %1099  ;;  %s3022_s25 = smov 122  }
 0x19b   : > { %v1738_v14 = vsel %vm644_vm9, %v1736_v32, %v5133_v58  ;;  %v1758_v49 = vrot.slane %v4166_v52, 3  ;;  %v4200_v53 = vmul.f32 %v3815_v30, %v4185_v25  ;;  %v5192_v21 = vrot.slane %v4025_v28, 1 }
 0x19c   : > { %v719_v6 = vsel %vm714_vm11, %v5191_v17, %v718_v42  ;;  %1741 = vrot.lane.b32.xlu0 %v1738_v14, %s3020_s15  ;;  %v1697_v10 = vrot.slane %v1690_v3, 2  ;;  %v1711_v36 = vmul.f32 %v3920_v31, %v3710_v4  ;;  %v788_v32 = vadd.f32 %v3464_v47, %v774_v50 }
 0x19d   : > { %v723_v0 = vadd.f32 %v719_v6, %v705_v1  ;;  %v1677_v42 = vsel %vm574_vm7, %v5192_v21, %v1676_v45  ;;  %v1757_v17 = vrot.slane %v1751_v46, 3  ;;  %v1772_v58 = vmul.f32 %v3747_v20, %v4185_v25  ;;  %v4217_v45 = vpop.permute.xlu0 %1181 }
 0x19e   : > { %1680 = vrot.lane.b32.xlu1 %v1677_v42, %s3020_s15  ;;  %v5193_v1 = vrot.slane %v4037_v37, 5  ;;  %v753_v14 = vrot.slane %v745_v5, 6  ;;  %v763_v28 = vmul.f32 %v3920_v31, %v3630_v57  ;;  %v4220_v3 = vstv %s4153_s0  ;;  %v4225_v4 = vpop.permute.xlu1 %1120  ;;  %s4760_s0 = sld [smem:[#allocation8 + $0x45]] }
 0x19f   : > { %v802_v47 = vadd.f32 %v3488_v60, %v788_v32  ;;  %v1759_v37 = vsel %vm644_vm9, %v1757_v17, %v1758_v49  ;;  %v1779_v46 = vrot.slane %v4200_v53, 4  ;;  %v4233_v57 = vmul.f32 %v3960_v8, %v4220_v3 }
 0x1a0   : > { %v736_v6 = vsel %vm714_vm11, %v5193_v1, %v735_v13  ;;  %1762 = vrot.lane.b32.xlu0 %v1759_v37, %s3020_s15  ;;  %v5194_v13 = vrot.slane %v4058_v51, 2  ;;  %v1718_v5 = vrot.slane %v1711_v36, 2  ;;  %v1732_v21 = vmul.f32 %v3903_v16, %v3713_v27 }
 0x1a1   : > { %v740_v50 = vadd.f32 %v736_v6, %v723_v0  ;;  %v823_v42 = vadd.f32 %v3622_v54, %v802_v47  ;;  %v1778_v32 = vrot.slane %v1772_v58, 4  ;;  %v1793_v17 = vmul.f32 %v3768_v43, %v4220_v3  ;;  %v4248_v51 = vpop.permute.xlu0 %1202 }
 0x1a2   : > { %v1698_v60 = vsel %vm609_vm8, %v5194_v13, %v1697_v10  ;;  %v5195_v0 = vrot.slane %v4063_v7, 6  ;;  %v770_v6 = vrot.slane %v763_v28, 6  ;;  %v4251_v10 = vstv %s4187_s28  ;;  %v4256_v54 = vpop.permute.xlu1 %1141  ;;  %s4777_s28 = sld [smem:[#allocation8 + $0x1b]] }
 0x1a3   : > { %1701 = vrot.lane.b32.xlu1 %v1698_v60, %s3020_s15  ;;  %v844_v27 = vadd.f32 %v3660_v55, %v823_v42  ;;  %v1780_v58 = vsel %vm679_vm10, %v1778_v32, %v1779_v46  ;;  %v1800_v7 = vrot.slane %v4233_v57, 4  ;;  %v4264_v36 = vmul.f32 %v3815_v30, %v4251_v10 }
 0x1a4   : > { %v754_v1 = vsel %vm749_vm12, %v5195_v0, %v753_v14  ;;  %1783 = vrot.lane.b32.xlu0 %v1780_v58, %s3020_s15  ;;  %v1719_v55 = vsel %vm609_vm8, %v1716_v12, %v1718_v5  ;;  %v1739_v28 = vrot.slane %v1732_v21, 3  ;;  %v1753_v47 = vmul.f32 %v3920_v31, %v4139_v23  ;;  %v5197_v0 = vld [vmem:[#allocation19_spill] sm:$0xff]  ;;  %v5198_v58 = vld [vmem:[#allocation14_spill] sm:$0xff] }
 0x1a5   : > { %v758_v14 = vadd.f32 %v754_v1, %v740_v50  ;;  %v865_v37 = vadd.f32 %v3704_v2, %v844_v27  ;;  %v1799_v13 = vrot.slane %v1793_v17, 4  ;;  %v1814_v60 = vmul.f32 %v3747_v20, %v4251_v10  ;;  %v4279_v42 = vpop.permute.xlu0 %1223 }
 0x1a6   : > { %v771_v50 = vsel %vm749_vm12, %v768_v15, %v770_v6  ;;  %v4282_v56 = vstv %s4222_s29  ;;  %v4287_v2 = vpop.permute.xlu1 %1162  ;;  %v1821_v5 = vrot.slane %v4264_v36, 5  ;;  %v5196_v21 = vrot.slane %v4133_v18, 3  ;;  %v5199_v18 = vld [vmem:[#allocation21_spill] sm:$0xff]  ;;  %s4796_s29 = sld [smem:[#allocation8 + $0x4c]] }
 0x1a7   : > { %1722 = vrot.lane.b32.xlu1 %v1719_v55, %s3020_s15  ;;  %v886_v12 = vadd.f32 %v3755_v48, %v865_v37  ;;  %v1801_v23 = vsel %vm679_vm10, %v1799_v13, %v1800_v7  ;;  %v4295_v41 = vmul.f32 %v3960_v8, %v4282_v56  ;;  %v775_v15 = vadd.f32 %v771_v50, %v758_v14  ;;  %v5200_v50 = vld [vmem:[#allocation15_spill] sm:$0xff] }
 0x1a8   : > { %1804 = vrot.lane.b32.xlu0 %v1801_v23, %s3020_s15  ;;  %v1740_v48 = vsel %vm644_vm9, %v5196_v21, %v1739_v28  ;;  %v1760_v32 = vrot.slane %v1753_v47, 3  ;;  %v1774_v17 = vmul.f32 %v3903_v16, %v4185_v25  ;;  %v1820_v6 = vrot.slane %v1814_v60, 5 }
 0x1a9   : > { %v907_v1 = vadd.f32 %v5197_v0, %v886_v12  ;;  %v1835_v27 = vmul.f32 %v3768_v43, %v4282_v56  ;;  %v789_v14 = vadd.f32 %v5198_v58, %v775_v15  ;;  %v4308_v55 = vpop.permute.xlu0 %1244  ;;  %v1855_v37 = vstv %s4253_s30  ;;  %v5202_v58 = vld [vmem:[#allocation18_spill] sm:$0xff]  ;;  %s4813_s30 = sld [smem:[#allocation8 + $0x22]] }
 0x1aa   : > { %v4312_v28 = vpop.permute.xlu1 %1183  ;;  %v1822_v25 = vsel %vm714_vm11, %v1820_v6, %v1821_v5  ;;  %v1842_v47 = vrot.slane %v4295_v41, 5  ;;  %v4319_v60 = vmul.f32 %v3815_v30, %v1855_v37  ;;  %v1761_v23 = vsel %vm644_vm9, %v1758_v49, %v1760_v32 }
 0x1ab   : > { %1743 = vrot.lane.b32.xlu1 %v1740_v48, %s3020_s15  ;;  %v928_v13 = vadd.f32 %v5199_v18, %v907_v1  ;;  %v803_v12 = vadd.f32 %v5200_v50, %v789_v14  ;;  %v1781_v15 = vrot.slane %v1774_v17, 4  ;;  %v1795_v21 = vmul.f32 %v3920_v31, %v4220_v3  ;;  %v5201_v48 = vld [vmem:[#allocation23_spill] sm:$0xff]  ;;  %v5203_v17 = vld [vmem:[#allocation20_spill] sm:$0xff] }
 0x1ac   : > { %1825 = vrot.lane.b32.xlu0 %v1822_v25, %s3020_s15  ;;  %v1841_v1 = vrot.slane %v1835_v27, 5  ;;  %v1856_v6 = vmul.f32 %v3747_v20, %v1855_v37  ;;  %v1876_v25 = vstv %s4284_s5  ;;  %v1863_v3 = vrot.slane %v4319_v60, 6  ;;  %s4827_s5 = sld [smem:[#allocation8 + $0x53]] }
 0x1ad   : > { %v949_v0 = vadd.f32 %v5201_v48, %v928_v13  ;;  %v824_v18 = vadd.f32 %v5202_v58, %v803_v12  ;;  %v4332_v14 = vpop.permute.xlu0 %1265  ;;  %v4343_v32 = vmul.f32 %v3960_v8, %v1876_v25  ;;  %v1802_v13 = vrot.slane %v1795_v21, 4 }
 0x1ae   : > { %v4336_v50 = vpop.permute.xlu1 %1204  ;;  %v1843_v49 = vsel %vm714_vm11, %v1841_v1, %v1842_v47  ;;  %v1816_v12 = vmul.f32 %v3903_v16, %v4251_v10  ;;  %v1862_v48 = vrot.slane %v1856_v6, 6  ;;  %v5204_v1 = vld [vmem:[#allocation22_spill] sm:$0xff]  ;;  %v5205_v10 = vld [vmem:[#allocation24_spill] sm:$0xff]  ;;  %v1837_v6 = vmul.f32 %v3920_v31, %v4282_v56 }
 0x1af   : > { %1764 = vrot.lane.b32.xlu1 %v1761_v23, %s3020_s15  ;;  %v970_v52 = vadd.f32 %v3897_v24, %v949_v0  ;;  %v845_v27 = vadd.f32 %v5203_v17, %v824_v18  ;;  %v1782_v24 = vsel %vm679_vm10, %v1779_v46, %v1781_v15  ;;  %v1877_v0 = vmul.f32 %v3768_v43, %v1876_v25 }
 0x1b0   : > { %1846 = vrot.lane.b32.xlu0 %v1843_v49, %s3020_s15  ;;  %v1864_v46 = vsel %vm749_vm12, %v1862_v48, %v1863_v3  ;;  %v1803_v21 = vsel %vm679_vm10, %v1800_v7, %v1802_v13  ;;  %v1897_v56 = vstv %s4345_s6  ;;  %v1844_v13 = vrot.slane %v1837_v6, 5  ;;  %s4844_s6 = sld [smem:[#allocation8 + $0x29]] }
 0x1b1   : > { %v991_v23 = vadd.f32 %v3940_v59, %v970_v52  ;;  %v866_v58 = vadd.f32 %v5204_v1, %v845_v27  ;;  %v4358_v18 = vpop.permute.xlu0 %1286  ;;  %v1884_v59 = vrot.slane %v4343_v32, 6  ;;  %v1883_v17 = vrot.slane %v1877_v0, 6 }
 0x1b2   : > { %v4361_v49 = vpop.permute.xlu1 %1225  ;;  %v1898_v0 = vmul.f32 %v3747_v20, %v1897_v56  ;;  %v1925_v1 = vstv %s2867_s7  ;;  %v1946_v6 = vstv %s4381_s10  ;;  %s4861_s7 = sld [smem:[#allocation8 + $0x5a]] }
 0x1b3   : > { %1785 = vrot.lane.b32.xlu1 %v1782_v24, %s3020_s15  ;;  %v1012_v53 = vadd.f32 %v3976_v33, %v991_v23  ;;  %v887_v15 = vadd.f32 %v5205_v10, %v866_v58  ;;  %v1823_v33 = vrot.slane %v1816_v12, 5  ;;  %v1885_v7 = vsel %vm749_vm12, %v1883_v17, %v1884_v59  ;;  %s2892_s10 = sld [smem:[#allocation8 + $0x61]] }
 0x1b4   : > { %1867 = vrot.lane.b32.xlu0 %v1864_v46, %s3020_s15  ;;  %v1858_v12 = vmul.f32 %v3903_v16, %v1855_v37  ;;  %v1879_v10 = vmul.f32 %v3920_v31, %v1876_v25  ;;  %v4428_v25 = vmul.f32 %v3960_v8, %v1946_v6 }
 0x1b5   : > { %v1033_v52 = vadd.f32 %v4012_v62, %v1012_v53  ;;  %v908_v27 = vadd.f32 %v3907_v35, %v887_v15  ;;  %v4379_v24 = vpop.permute.xlu0 %1307  ;;  %v1824_v35 = vsel %vm714_vm11, %v1821_v5, %v1823_v33  ;;  %v1911_v5 = vstv %s4367_s8  ;;  %s4878_s8 = sld [smem:[#allocation8 + $0x30]] }
 0x1b6   : > { %v4384_v57 = vpop.permute.xlu1 %1246  ;;  %v4408_v53 = vmul.f32 %v3815_v30, %v1925_v1  ;;  %v1865_v46 = vrot.slane %v1858_v12, 6  ;;  %v1926_v15 = vmul.f32 %v3747_v20, %v1925_v1  ;;  %v1967_v12 = vstv %s4401_s11  ;;  %s2456_s11 = sld [smem:[#allocation7]] }
 0x1b7   : > { %1806 = vrot.lane.b32.xlu1 %v1803_v21, %s3020_s15  ;;  %v1054_v23 = vadd.f32 %v4045_v38, %v1033_v52  ;;  %v929_v62 = vadd.f32 %v3945_v26, %v908_v27  ;;  %v5206_v26 = vld [vmem:[#allocation12_spill] sm:$0xff]  ;;  %v5207_v52 = vld [vmem:[#allocation13_spill] sm:$0xff] }
 0x1b8   : > { %1888 = vrot.lane.b32.xlu0 %v1885_v7, %s3020_s15  ;;  %v1932_v7 = vrot.slane %v1926_v15, 1 }
 0x1b9   : > { %v950_v38 = vadd.f32 %v3986_v22, %v929_v62  ;;  %v4398_v48 = vpop.permute.xlu0 %1328  ;;  %v1068_v58 = vadd.f32 %v5206_v26, %v1054_v23  ;;  %v1845_v22 = vsel %vm714_vm11, %v1842_v47, %v1844_v13  ;;  %v1933_v47 = vrot.slane %v4408_v53, 1 }
 0x1ba   : > { %v4404_v36 = vpop.permute.xlu1 %1267  ;;  %v1886_v23 = vrot.slane %v1879_v10, 6  ;;  %v1947_v62 = vmul.f32 %v3768_v43, %v1946_v6 }
 0x1bb   : > { %1827 = vrot.lane.b32.xlu1 %v1824_v35, %s3020_s15  ;;  %v971_v37 = vadd.f32 %v4020_v44, %v950_v38  ;;  %v1912_v44 = vmul.f32 %v3768_v43, %v1911_v5  ;;  %v1082_v41 = vadd.f32 %v5207_v52, %v1068_v58  ;;  %v1934_v60 = vsel %vm574_vm7, %v1932_v7, %v1933_v47 }
 0x1bc   : > { %1902 = vrot.lane.b32.xlu0 %v1898_v0, %s3021_s12  ;;  %v4449_v0 = vmul.f32 %v3815_v30, %v1967_v12  ;;  %v1968_v58 = vmul.f32 %v3747_v20, %v1967_v12 }
 0x1bd   : > { %v992_v21 = vadd.f32 %v4050_v19, %v971_v37  ;;  %v4419_v33 = vpop.permute.xlu0 %1342  ;;  %v1866_v19 = vsel %vm749_vm12, %v1863_v3, %v1865_v46  ;;  %v1954_v3 = vrot.slane %v4428_v25, 1  ;;  %v1988_v46 = vstv %s2870_s13  ;;  %s3025_s13 = smov 32  }
 0x1be   : > { %v4424_v17 = vpop.permute.xlu1 %1288  ;;  %v4471_v15 = vmul.f32 %v3960_v8, %v1988_v46 }
 0x1bf   : > { %1848 = vrot.lane.b32.xlu1 %v1845_v22, %s3020_s15  ;;  %v1013_v27 = vadd.f32 %v4085_v39, %v992_v21  ;;  %v1103_v39 = vadd.f32 %v4083_v61, %v1082_v41  ;;  %v1953_v61 = vrot.slane %v1947_v62, 1  ;;  %v1899_v22 = vmul.f32 %v3815_v30, %v1897_v56  ;;  %v5208_v21 = vld [vmem:[#allocation16_spill] sm:$0xff] }
 0x1c0   : > { %1916 = vrot.lane.b32.xlu0 %v1912_v44, %s3021_s12  ;;  %v1928_v56 = vmul.f32 %v3903_v16, %v1925_v1  ;;  %v1989_v41 = vmul.f32 %v3768_v43, %v1988_v46  ;;  %v1996_v1 = vrot.slane %v4471_v15, 2  ;;  %v4621_v15 = vstv %s4562_s9  ;;  %s3003_s9 = smov 0  }
 0x1c1   : > { %v1034_v35 = vadd.f32 %v4122_v29, %v1013_v27  ;;  %v4438_v13 = vpop.permute.xlu0 %1356  ;;  %v1887_v29 = vsel %vm749_vm12, %v1884_v59, %v1886_v23  ;;  %v1955_v32 = vsel %vm574_vm7, %v1953_v61, %v1954_v3  ;;  %v1975_v59 = vrot.slane %v4449_v0, 2 }
 0x1c2   : > { %v4442_v38 = vpop.permute.xlu1 %1309  ;;  %v2009_v23 = vstv %s2871_s18  ;;  %s3026_s18 = smov 64  }
 0x1c3   : > { %1869 = vrot.lane.b32.xlu1 %v1866_v19, %s3020_s15  ;;  %v1055_v26 = vadd.f32 %v4158_v40, %v1034_v35  ;;  %v1124_v40 = vadd.f32 %v4118_v63, %v1103_v39  ;;  %v1974_v63 = vrot.slane %v1968_v58, 2  ;;  %v1913_v19 = vmul.f32 %v3960_v8, %v1911_v5  ;;  %v5209_v39 = vld [vmem:[#allocation17_spill] sm:$0xff] }
 0x1c4   : > { %1937 = vrot.lane.b32.xlu0 %v1934_v60, %s3021_s12  ;;  %v4492_v35 = vmul.f32 %v3815_v30, %v2009_v23  ;;  %v1935_v5 = vrot.slane %v1928_v56, 1  ;;  %v2010_v61 = vmul.f32 %v3747_v20, %v2009_v23 }
 0x1c5   : > { %v4458_v37 = vpop.permute.xlu0 %1377  ;;  %v1069_v44 = vadd.f32 %v5208_v21, %v1055_v26  ;;  %v1145_v52 = vadd.f32 %v4151_v34, %v1124_v40  ;;  %v1976_v34 = vsel %vm609_vm8, %v1974_v63, %v1975_v59  ;;  %v1949_v26 = vmul.f32 %v3920_v31, %v1946_v6 }
 0x1c6   : > { %v4464_v10 = vpop.permute.xlu1 %1330  ;;  %v2017_v6 = vrot.slane %v4492_v35, 3  ;;  %v2135_v35 = vstv %s4591_s2 }
 0x1c7   : > { %1890 = vrot.lane.b32.xlu1 %v1887_v29, %s3020_s15  ;;  %v1166_v7 = vadd.f32 %v4182_v11, %v1145_v52  ;;  %v1083_v60 = vadd.f32 %v5209_v39, %v1069_v44  ;;  %v1995_v29 = vrot.slane %v1989_v41, 2  ;;  %v1956_v56 = vrot.slane %v1949_v26, 1  ;;  %s4719_s15 = sld [smem:[#allocation8 + $0x3e]] }
 0x1c8   : > { %1958 = vrot.lane.b32.xlu0 %v1955_v32, %s3021_s12  ;;  %v1970_v52 = vmul.f32 %v3903_v16, %v1967_v12  ;;  %v2016_v41 = vrot.slane %v2010_v61, 3 }
 0x1c9   : > { %v4479_v27 = vpop.permute.xlu0 %1398  ;;  %v1187_v11 = vadd.f32 %v4217_v45, %v1166_v7  ;;  %v1997_v45 = vsel %vm609_vm8, %v1995_v29, %v1996_v1  ;;  %v1104_v44 = vadd.f32 %v4192_v9, %v1083_v60  ;;  %v4531_v9 = vstv %s4482_s26  ;;  %s3028_s26 = smov 80  }
 0x1ca   : > { %v4485_v62 = vpop.permute.xlu1 %1344  ;;  %v1977_v60 = vrot.slane %v1970_v52, 2  ;;  %v2052_v29 = vmul.f32 %v3747_v20, %v4531_v9 }
 0x1cb   : > { %1904 = vrot.lane.b32.xlu1 %v1899_v22, %s3021_s12  ;;  %v4503_v22 = vstv %s4461_s21  ;;  %v1208_v40 = vadd.f32 %v4248_v51, %v1187_v11  ;;  %v1936_v51 = vsel %vm574_vm7, %v1933_v47, %v1935_v5  ;;  %v1125_v39 = vadd.f32 %v4225_v4, %v1104_v44  ;;  %s3027_s21 = smov 48  }
 0x1cc   : > { %1979 = vrot.lane.b32.xlu0 %v1976_v34, %s3021_s12  ;;  %v4516_v21 = vmul.f32 %v3960_v8, %v4503_v22  ;;  %v4544_v34 = vmul.f32 %v3815_v30, %v4531_v9  ;;  %v1991_v5 = vmul.f32 %v3920_v31, %v1988_v46  ;;  %v2012_v44 = vmul.f32 %v3903_v16, %v2009_v23 }
 0x1cd   : > { %v4500_v58 = vpop.permute.xlu0 %1419  ;;  %v1229_v63 = vadd.f32 %v4279_v42, %v1208_v40  ;;  %v2018_v42 = vsel %vm644_vm9, %v2016_v41, %v2017_v6  ;;  %v1146_v61 = vadd.f32 %v4256_v54, %v1125_v39  ;;  %v4560_v40 = vstv %s4505_s4  ;;  %s3029_s4 = smov 96  }
 0x1ce   : > { %v4508_v32 = vpop.permute.xlu1 %1358  ;;  %v2038_v12 = vrot.slane %v4516_v21, 3  ;;  %v2059_v46 = vrot.slane %v4544_v34, 4  ;;  %v4573_v20 = vmul.f32 %v3960_v8, %v4560_v40  ;;  %v2073_v52 = vmul.f32 %v3768_v43, %v4560_v40 }
 0x1cf   : > { %1918 = vrot.lane.b32.xlu1 %v1913_v19, %s3021_s12  ;;  %v2031_v19 = vmul.f32 %v3768_v43, %v4503_v22  ;;  %v1250_v53 = vadd.f32 %v4308_v55, %v1229_v63  ;;  %v1957_v55 = vsel %vm574_vm7, %v1954_v3, %v1956_v56  ;;  %v1167_v54 = vadd.f32 %v4287_v2, %v1146_v61 }
 0x1d0   : > { %2000 = vrot.lane.b32.xlu0 %v1997_v45, %s3021_s12  ;;  %v1998_v45 = vrot.slane %v1991_v5, 2  ;;  %v2058_v56 = vrot.slane %v2052_v29, 4  ;;  %v4589_v41 = vstv %s4533_s16  ;;  %v2080_v23 = vrot.slane %v4573_v20, 4  ;;  %s3030_s16 = smov 112  }
 0x1d1   : > { %v4528_v7 = vpop.permute.xlu0 %1440  ;;  %v1271_v26 = vadd.f32 %v4332_v14, %v1250_v53  ;;  %v2037_v11 = vrot.slane %v2031_v19, 3  ;;  %v1188_v63 = vadd.f32 %v4312_v28, %v1167_v54  ;;  %v4602_v43 = vmul.f32 %v3815_v30, %v4589_v41 }
 0x1d2   : > { %v4536_v47 = vpop.permute.xlu1 %1379  ;;  %v2019_v19 = vrot.slane %v2012_v44, 3  ;;  %v2033_v53 = vmul.f32 %v3920_v31, %v4503_v22  ;;  %v2079_v39 = vrot.slane %v2073_v52, 4  ;;  %v2054_v29 = vmul.f32 %v3903_v16, %v4531_v9  ;;  %v4658_v44 = vld [vmem:[#allocation2 + $0x8] sm:$0xff] }
 0x1d3   : > { %1939 = vrot.lane.b32.xlu1 %v1936_v51, %s3021_s12  ;;  %v1292_v25 = vadd.f32 %v4358_v18, %v1271_v26  ;;  %v2039_v14 = vsel %vm644_vm9, %v2037_v11, %v2038_v12  ;;  %v1978_v18 = vsel %vm609_vm8, %v1975_v59, %v1977_v60  ;;  %v1209_v28 = vadd.f32 %v4336_v50, %v1188_v63 }
 0x1d4   : > { %2021 = vrot.lane.b32.xlu0 %v2018_v42, %s3021_s12  ;;  %v2101_v5 = vrot.slane %v4602_v43, 5  ;;  %v2040_v11 = vrot.slane %v2033_v53, 3  ;;  %v2075_v52 = vmul.f32 %v3920_v31, %v4560_v40 }
 0x1d5   : > { %v4557_v4 = vpop.permute.xlu0 %1461  ;;  %v1313_v51 = vadd.f32 %v4379_v24, %v1292_v25  ;;  %v2060_v24 = vsel %vm679_vm10, %v2058_v56, %v2059_v46  ;;  %v1230_v50 = vadd.f32 %v4361_v49, %v1209_v28  ;;  %v4634_v49 = vmul.f32 %v3960_v8, %v4621_v15 }
 0x1d6   : > { %v4565_v3 = vpop.permute.xlu1 %1400  ;;  %v2061_v56 = vrot.slane %v2054_v29, 4  ;;  %v2177_v29 = vstv %s4685_s20 }
 0x1d7   : > { %1960 = vrot.lane.b32.xlu1 %v1957_v55, %s3021_s12  ;;  %v1334_v0 = vadd.f32 %v4398_v48, %v1313_v51  ;;  %v1999_v48 = vsel %vm609_vm8, %v1996_v1, %v1998_v45  ;;  %v4613_v55 = vld [vmem:[#allocation2] sm:$0xff]  ;;  %v1251_v26 = vadd.f32 %v4384_v57, %v1230_v50  ;;  %v2122_v9 = vrot.slane %v4634_v49, 5 }
 0x1d8   : > { %2042 = vrot.lane.b32.xlu0 %v2039_v14, %s3021_s12  ;;  %v2094_v30 = vmul.f32 %v4613_v55, %v4589_v41  ;;  %v4645_v14 = vld [vmem:[#allocation3] sm:$0xff]  ;;  %v4661_v51 = vmul.f32 %v4658_v44, %v2135_v35 }
 0x1d9   : > { %v4586_v2 = vpop.permute.xlu0 %1482  ;;  %v1348_v42 = vadd.f32 %v4419_v33, %v1334_v0  ;;  %v2081_v33 = vsel %vm679_vm10, %v2079_v39, %v2080_v23  ;;  %v2115_v57 = vmul.f32 %v4645_v14, %v4621_v15  ;;  %v1272_v54 = vadd.f32 %v4404_v36, %v1251_v26 }
 0x1da   : > { %v4594_v59 = vpop.permute.xlu1 %1421  ;;  %v2100_v25 = vrot.slane %v2094_v30, 5  ;;  %v2143_v40 = vrot.slane %v4661_v51, 6 }
 0x1db   : > { %1981 = vrot.lane.b32.xlu1 %v1978_v18, %s3021_s12  ;;  %v1362_v1 = vadd.f32 %v4438_v13, %v1348_v42  ;;  %v2020_v13 = vsel %vm644_vm9, %v2017_v6, %v2019_v19  ;;  %v1293_v36 = vadd.f32 %v4424_v17, %v1272_v54  ;;  %v2121_v0 = vrot.slane %v2115_v57, 5 }
 0x1dc   : > { %2063 = vrot.lane.b32.xlu0 %v2060_v24, %s3021_s12  ;;  %v2136_v24 = vmul.f32 %v4613_v55, %v2135_v35  ;;  %v2096_v42 = vmul.f32 %v3903_v16, %v4589_v41  ;;  %v2117_v41 = vmul.f32 %v3920_v31, %v4621_v15  ;;  %v4730_v15 = vld [vmem:[#allocation2 + $0x10] sm:$0x3f] }
 0x1dd   : > { %v4618_v60 = vpop.permute.xlu0 %1503  ;;  %v1383_v61 = vadd.f32 %v4458_v37, %v1362_v1  ;;  %v2102_v37 = vsel %vm714_vm11, %v2100_v25, %v2101_v5  ;;  %v1314_v28 = vadd.f32 %v4442_v38, %v1293_v36  ;;  %v2062_v38 = vsel %vm679_vm10, %v2059_v46, %v2061_v56 }
 0x1de   : > { %v4626_v22 = vpop.permute.xlu1 %1442 }
 0x1df   : > { %2002 = vrot.lane.b32.xlu1 %v1999_v48, %s3021_s12  ;;  %v1404_v6 = vadd.f32 %v4479_v27, %v1383_v61  ;;  %v2041_v27 = vsel %vm644_vm9, %v2038_v12, %v2040_v11  ;;  %v2156_v48 = vstv %s4623_s19  ;;  %v2123_v12 = vsel %vm714_vm11, %v2121_v0, %v2122_v9 }
 0x1e0   : > { %2084 = vrot.lane.b32.xlu0 %v2081_v33, %s3021_s12  ;;  %v1335_v53 = vadd.f32 %v4464_v10, %v1314_v28  ;;  %v2157_v30 = vmul.f32 %v4645_v14, %v2156_v48  ;;  %v2138_v61 = vmul.f32 %v4730_v15, %v2135_v35  ;;  %v2226_v28 = vstv %s4719_s15 }
 0x1e1   : > { %v1525_v18 = vpop.permute.xlu0 %1524  ;;  %v1425_v63 = vadd.f32 %v4500_v58, %v1404_v6  ;;  %v4683_v58 = vmul.f32 %v3960_v8, %v2156_v48  ;;  %v2142_v8 = vrot.slane %v2136_v24, 6  ;;  %v2191_v6 = vstv %s4707_s23 }
 0x1e2   : > { %v4652_v45 = vpop.permute.xlu1 %1463  ;;  %v1349_v50 = vadd.f32 %v4485_v62, %v1335_v53  ;;  %v2163_v26 = vrot.slane %v2157_v30, 6  ;;  %v2145_v36 = vrot.slane %v2138_v61, 6  ;;  %v2192_v24 = vmul.f32 %v4645_v14, %v2191_v6 }
 0x1e3   : > { %2023 = vrot.lane.b32.xlu1 %v2020_v13, %s3021_s12  ;;  %v1446_v19 = vadd.f32 %v4528_v7, %v1425_v63  ;;  %v2082_v7 = vrot.slane %v2075_v52, 4  ;;  %v2144_v16 = vsel %vm749_vm12, %v2142_v8, %v2143_v40  ;;  %v2247_v30 = vstv %s4739_s17 }
 0x1e4   : > { %2105 = vrot.lane.b32.xlu0 %v2102_v37, %s3021_s12  ;;  %v1363_v46 = vadd.f32 %v4508_v32, %v1349_v50  ;;  %v2289_v61 = vstv %s4777_s28 }
 0x1e5   : > { %v1546_v17 = vpop.permute.xlu0 %1545  ;;  %v1467_v39 = vadd.f32 %v4557_v4, %v1446_v19  ;;  %v2164_v4 = vrot.slane %v4683_v58, 6  ;;  %v2083_v62 = vsel %vm679_vm10, %v2080_v23, %v2082_v7 }
 0x1e6   : > { %v4676_v21 = vpop.permute.xlu1 %1484  ;;  %v1384_v13 = vadd.f32 %v4536_v47, %v1363_v46  ;;  %v2248_v46 = vmul.f32 %v4613_v55, %v2247_v30 }
 0x1e7   : > { %2044 = vrot.lane.b32.xlu1 %v2041_v27, %s3021_s12  ;;  %v1488_v34 = vadd.f32 %v4586_v2, %v1467_v39  ;;  %v2103_v2 = vrot.slane %v2096_v42, 5  ;;  %v2165_v23 = vsel %vm749_vm12, %v2163_v26, %v2164_v4  ;;  %v4750_v27 = vld [vmem:[#allocation3 + $0x10] sm:$0x3f]  ;;  %v2227_v42 = vmul.f32 %v4645_v14, %v2226_v28 }
 0x1e8   : > { %2126 = vrot.lane.b32.xlu0 %v2123_v12, %s3021_s12  ;;  %v1405_v31 = vadd.f32 %v4565_v3, %v1384_v13  ;;  %v2178_v3 = vmul.f32 %v4613_v55, %v2177_v29  ;;  %v2159_v56 = vmul.f32 %v4750_v27, %v2156_v48  ;;  %v4763_v48 = vld [vmem:[#allocation3 + $0x8] sm:$0xff] }
 0x1e9   : > { %v1567_v10 = vpop.permute.xlu0 %1566  ;;  %v1509_v33 = vadd.f32 %v4618_v60, %v1488_v34  ;;  %v2104_v47 = vsel %vm714_vm11, %v2101_v5, %v2103_v2  ;;  %v2124_v60 = vrot.slane %v2117_v41, 5  ;;  %v4766_v19 = vmul.f32 %v4763_v48, %v2226_v28 }
 0x1ea   : > { %v4701_v1 = vpop.permute.xlu1 %1505  ;;  %v1426_v57 = vadd.f32 %v4594_v59, %v1405_v31  ;;  %v2166_v53 = vrot.slane %v2159_v56, 6  ;;  %v2179_v41 = vmul.f32 %v4658_v44, %v2177_v29 }
 0x1eb   : > { %2065 = vrot.lane.b32.xlu1 %v2062_v38, %s3021_s12  ;;  %v1530_v32 = vadd.f32 %v1525_v18, %v1509_v33  ;;  %v2205_v18 = vstv %s4698_s22  ;;  %v2125_v59 = vsel %vm714_vm11, %v2122_v9, %v2124_v60  ;;  %v2268_v33 = vstv %s4760_s0 }
 0x1ec   : > { %2147 = vrot.lane.b32.xlu0 %v2144_v16, %s3021_s12  ;;  %v4743_v37 = vmul.f32 %v4658_v44, %v2205_v18  ;;  %v1447_v35 = vadd.f32 %v4626_v22, %v1426_v57  ;;  %v2206_v63 = vmul.f32 %v4613_v55, %v2205_v18  ;;  %v2233_v16 = vrot.slane %v2227_v42, 1 }
 0x1ed   : > { %v1588_v11 = vpop.permute.xlu0 %1587  ;;  %v1551_v25 = vadd.f32 %v1546_v17, %v1530_v32  ;;  %v2269_v29 = vmul.f32 %v4645_v14, %v2268_v33  ;;  %v2193_v60 = vmul.f32 %v4763_v48, %v2191_v6  ;;  %v2229_v6 = vmul.f32 %v4750_v27, %v2226_v28 }
 0x1ee   : > { %v1527_v20 = vpop.permute.xlu1 %1526  ;;  %v1468_v0 = vadd.f32 %v4652_v45, %v1447_v35  ;;  %v2213_v17 = vrot.slane %v4743_v37, 1  ;;  %v2146_v45 = vsel %vm749_vm12, %v2143_v40, %v2145_v36  ;;  %v2212_v7 = vrot.slane %v2206_v63, 1 }
 0x1ef   : > { %2086 = vrot.lane.b32.xlu1 %v2083_v62, %s3021_s12  ;;  %v1572_v43 = vadd.f32 %v1567_v10, %v1551_v25  ;;  %v2234_v40 = vrot.slane %v4766_v19, 1  ;;  %v4784_v10 = vmul.f32 %v4658_v44, %v2247_v30  ;;  %v2275_v35 = vrot.slane %v2269_v29, 2 }
 0x1f0   : > { %2168 = vrot.lane.b32.xlu0 %v2165_v23, %s3021_s12  ;;  %v1489_v12 = vadd.f32 %v4676_v21, %v1468_v0  ;;  %v2214_v51 = vsel %vm574_vm7, %v2212_v7, %v2213_v17  ;;  %v2254_v23 = vrot.slane %v2248_v46, 2  ;;  %v2331_v42 = vstv %s4813_s30 }
 0x1f1   : > { %v1609_v54 = vpop.permute.xlu0 %1608  ;;  %v1593_v52 = vadd.f32 %v1588_v11, %v1572_v43  ;;  %v2235_v58 = vsel %vm574_vm7, %v2233_v16, %v2234_v40  ;;  %v4803_v11 = vmul.f32 %v4763_v48, %v2268_v33  ;;  %v2332_v16 = vmul.f32 %v4613_v55, %v2331_v42 }
 0x1f2   : > { %v1548_v5 = vpop.permute.xlu1 %1547  ;;  %v1510_v39 = vadd.f32 %v4701_v1, %v1489_v12  ;;  %v2167_v1 = vsel %vm749_vm12, %v2164_v4, %v2166_v53  ;;  %v2255_v4 = vrot.slane %v4784_v10, 2  ;;  %v2236_v12 = vrot.slane %v2229_v6, 1 }
 0x1f3   : > { %2107 = vrot.lane.b32.xlu1 %v2104_v47, %s3021_s12  ;;  %v1614_v49 = vadd.f32 %v1609_v54, %v1593_v52  ;;  %v2310_v52 = vstv %s4796_s29 }
 0x1f4   : > { %2182 = vrot.lane.b32.xlu0 %v2178_v3, %s3022_s25  ;;  %v1531_v34 = vadd.f32 %v1527_v20, %v1510_v39  ;;  %v2208_v20 = vmul.f32 %v4730_v15, %v2205_v18  ;;  %v2256_v54 = vsel %vm609_vm8, %v2254_v23, %v2255_v4  ;;  %v2276_v3 = vrot.slane %v4803_v11, 2 }
 0x1f5   : > { %v1623_v22 = vpop.permute.xlu0 %1622  ;;  %v4820_v18 = vmul.f32 %v4658_v44, %v2289_v61  ;;  %v4834_v28 = vmul.f32 %v4763_v48, %v2310_v52 }
 0x1f6   : > { %v1569_v9 = vpop.permute.xlu1 %1568  ;;  %v1628_v38 = vadd.f32 %v1623_v22, %v1614_v49  ;;  %v1552_v62 = vadd.f32 %v1548_v5, %v1531_v34  ;;  %v2215_v5 = vrot.slane %v2208_v20, 1  ;;  %v2277_v22 = vsel %vm609_vm8, %v2275_v35, %v2276_v3 }
 0x1f7   : > { %2128 = vrot.lane.b32.xlu1 %v2125_v59, %s3021_s12  ;;  %v2290_v59 = vmul.f32 %v4613_v55, %v2289_v61  ;;  %v2271_v34 = vmul.f32 %v4750_v27, %v2268_v33  ;;  %v2338_v20 = vrot.slane %v2332_v16, 4 }
 0x1f8   : > { %2196 = vrot.lane.b32.xlu0 %v2192_v24, %s3022_s25  ;;  %v1573_v32 = vadd.f32 %v1569_v9, %v1552_v62  ;;  %v2297_v24 = vrot.slane %v4820_v18, 3  ;;  %v2216_v9 = vsel %vm574_vm7, %v2213_v17, %v2215_v5  ;;  %v2318_v17 = vrot.slane %v4834_v28, 3 }
 0x1f9   : > { %v1637_v8 = vpop.permute.xlu0 %1636  ;;  %v2296_v53 = vrot.slane %v2290_v59, 3  ;;  %v2352_v62 = vstv %s4827_s5  ;;  %v2394_v59 = vstv %s4861_s7 }
 0x1fa   : > { %v1642_v21 = vadd.f32 %v1637_v8, %v1628_v38  ;;  %v1590_v50 = vpop.permute.xlu1 %1589  ;;  %v2311_v38 = vmul.f32 %v4645_v14, %v2310_v52  ;;  %v4868_v33 = vmul.f32 %v4763_v48, %v2352_v62  ;;  %v2353_v23 = vmul.f32 %v4645_v14, %v2352_v62 }
 0x1fb   : > { %2149 = vrot.lane.b32.xlu1 %v2146_v45, %s3021_s12  ;;  %v1594_v31 = vadd.f32 %v1590_v50, %v1573_v32  ;;  %v2250_v45 = vmul.f32 %v4730_v15, %v2247_v30  ;;  %v2298_v37 = vsel %vm644_vm9, %v2296_v53, %v2297_v24  ;;  %v4851_v30 = vmul.f32 %v4658_v44, %v2331_v42 }
 0x1fc   : > { %2217 = vrot.lane.b32.xlu0 %v2214_v51, %s3022_s25  ;;  %v2237_v50 = vsel %vm574_vm7, %v2234_v40, %v2236_v12  ;;  %v2292_v32 = vmul.f32 %v4730_v15, %v2289_v61  ;;  %v2359_v5 = vrot.slane %v2353_v23, 4  ;;  %v2395_v12 = vmul.f32 %v4645_v14, %v2394_v59 }
 0x1fd   : > { %v1658_v2 = vpop.permute.xlu0 %1657  ;;  %v2257_v51 = vrot.slane %v2250_v45, 2  ;;  %v2339_v40 = vrot.slane %v4851_v30, 4  ;;  %v2415_v53 = vstv %s4878_s8 }
 0x1fe   : > { %v1663_v26 = vadd.f32 %v1658_v2, %v1642_v21  ;;  %v2417_v18 = vmul.f32 %v4658_v44, %v2415_v53 }
 0x1ff   : > { %2170 = vrot.lane.b32.xlu1 %v2167_v1, %s3021_s12  ;;  %v2317_v1 = vrot.slane %v2311_v38, 3  ;;  %v2340_v10 = vsel %vm679_vm10, %v2338_v20, %v2339_v40  ;;  %s3024_s12 = smov 16  }
 0x200   : > { %v1611_v13 = vpop.permute.xlu1 %1610  ;;  %2238 = vrot.lane.b32.xlu0 %v2235_v58, %s3022_s25  ;;  %v2278_v58 = vrot.slane %v2271_v34, 2 }
 0x201   : > { %v1679_v47 = vpop.permute.xlu0 %1678  ;;  %v1615_v43 = vadd.f32 %v1611_v13, %v1594_v31  ;;  %v2319_v19 = vsel %vm644_vm9, %v2317_v1, %v2318_v17  ;;  %v2258_v13 = vsel %vm609_vm8, %v2255_v4, %v2257_v51  ;;  %v2373_v31 = vstv %s4844_s6 }
 0x202   : > { %v1684_v25 = vadd.f32 %v1679_v47, %v1663_v26  ;;  %v2360_v4 = vrot.slane %v4868_v33, 4  ;;  %v4885_v61 = vmul.f32 %v4658_v44, %v2373_v31  ;;  %v2374_v6 = vmul.f32 %v4613_v55, %v2373_v31 }
 0x203   : > { %2184 = vrot.lane.b32.xlu1 %v2179_v41, %s3022_s25  ;;  %v2416_v51 = vmul.f32 %v4613_v55, %v2415_v53  ;;  %v2436_v1 = vstv %s2892_s10 }
 0x204   : > { %v1625_v57 = vpop.permute.xlu1 %1624  ;;  %2259 = vrot.lane.b32.xlu0 %v2256_v54, %s3022_s25  ;;  %v2299_v54 = vrot.slane %v2292_v32, 3  ;;  %v2381_v11 = vrot.slane %v4885_v61, 5 }
 0x205   : > { %v1629_v36 = vadd.f32 %v1625_v57, %v1615_v43  ;;  %v1700_v56 = vpop.permute.xlu0 %1699  ;;  %v2279_v57 = vsel %vm609_vm8, %v2276_v3, %v2278_v58  ;;  %v2313_v43 = vmul.f32 %v4750_v27, %v2310_v52  ;;  %v2396_v3 = vmul.f32 %v4763_v48, %v2394_v59 }
 0x206   : > { %v1705_v63 = vadd.f32 %v1700_v56, %v1684_v25  ;;  %v2300_v52 = vsel %vm644_vm9, %v2297_v24, %v2299_v54  ;;  %v2422_v55 = vrot.slane %v2416_v51, 6  ;;  %v2439_v54 = vmul.f32 %v4750_v27, %v2436_v1 }
 0x207   : > { %2198 = vrot.lane.b32.xlu1 %v2193_v60, %s3022_s25 }
 0x208   : > { %v1639_v0 = vpop.permute.xlu1 %1638  ;;  %2280 = vrot.lane.b32.xlu0 %v2277_v22, %s3022_s25  ;;  %v2320_v22 = vrot.slane %v2313_v43, 3 }
 0x209   : > { %v1643_v49 = vadd.f32 %v1639_v0, %v1629_v36 }
 0x20a   : > { %v1721_v7 = vpop.permute.xlu0 %1720  ;;  %v2321_v24 = vsel %vm644_vm9, %v2318_v17, %v2320_v22 }
 0x20b   : > { %2219 = vrot.lane.b32.xlu1 %v2216_v9, %s3022_s25  ;;  %v1726_v39 = vadd.f32 %v1721_v7, %v1705_v63  ;;  %v2361_v63 = vsel %vm679_vm10, %v2359_v5, %v2360_v4  ;;  %v2380_v9 = vrot.slane %v2374_v6, 5 }
 0x20c   : > { %v1660_v8 = vpop.permute.xlu1 %1659  ;;  %2301 = vrot.lane.b32.xlu0 %v2298_v37, %s3022_s25 }
 0x20d   : > { %v1664_v21 = vadd.f32 %v1660_v8, %v1643_v49  ;;  %v2334_v49 = vmul.f32 %v4730_v15, %v2331_v42  ;;  %v2402_v8 = vrot.slane %v2396_v3, 5 }
 0x20e   : > { %v1742_v46 = vpop.permute.xlu0 %1741 }
 0x20f   : > { %2240 = vrot.lane.b32.xlu1 %v2237_v50, %s3022_s25  ;;  %v1747_v2 = vadd.f32 %v1742_v46, %v1726_v39  ;;  %v2382_v39 = vsel %vm714_vm11, %v2380_v9, %v2381_v11  ;;  %v2341_v42 = vrot.slane %v2334_v49, 4  ;;  %v2401_v50 = vrot.slane %v2395_v12, 5 }
 0x210   : > { %v1681_v41 = vpop.permute.xlu1 %1680  ;;  %2322 = vrot.lane.b32.xlu0 %v2319_v19, %s3022_s25  ;;  %v2423_v46 = vrot.slane %v2417_v18, 6  ;;  %v2437_v19 = vmul.f32 %v4645_v14, %v2436_v1 }
 0x211   : > { %v1685_v26 = vadd.f32 %v1681_v41, %v1664_v21  ;;  %v2355_v21 = vmul.f32 %v4750_v27, %v2352_v62  ;;  %v2403_v44 = vsel %vm714_vm11, %v2401_v50, %v2402_v8  ;;  %v2342_v17 = vsel %vm679_vm10, %v2339_v40, %v2341_v42 }
 0x212   : > { %v1763_v29 = vpop.permute.xlu0 %1762  ;;  %v2376_v41 = vmul.f32 %v4730_v15, %v2373_v31  ;;  %v2397_v40 = vmul.f32 %v4750_v27, %v2394_v59  ;;  %v2443_v20 = vrot.slane %v2437_v19, 6 }
 0x213   : > { %2261 = vrot.lane.b32.xlu1 %v2258_v13, %s3022_s25  ;;  %v1768_v47 = vadd.f32 %v1763_v29, %v1747_v2  ;;  %v2438_v2 = vmul.f32 %v4763_v48, %v2436_v1  ;;  %v2362_v62 = vrot.slane %v2355_v21, 4  ;;  %v2424_v13 = vsel %vm749_vm12, %v2422_v55, %v2423_v46 }
 0x214   : > { %2343 = vrot.lane.b32.xlu0 %v2340_v10, %s3022_s25  ;;  %v2383_v32 = vrot.slane %v2376_v41, 5  ;;  %v2418_v10 = vmul.f32 %v4730_v15, %v2415_v53 }
 0x215   : > { %v1702_v60 = vpop.permute.xlu1 %1701  ;;  %v2444_v48 = vrot.slane %v2438_v2, 6  ;;  %v2363_v30 = vsel %vm679_vm10, %v2360_v4, %v2362_v62 }
 0x216   : > { %v1706_v25 = vadd.f32 %v1702_v60, %v1685_v26  ;;  %v1784_v35 = vpop.permute.xlu0 %1783  ;;  %v2404_v60 = vrot.slane %v2397_v40, 5 }
 0x217   : > { %2282 = vrot.lane.b32.xlu1 %v2279_v57, %s3022_s25  ;;  %v1789_v36 = vadd.f32 %v1784_v35, %v1768_v47  ;;  %v2445_v14 = vsel %vm749_vm12, %v2443_v20, %v2444_v48  ;;  %v2384_v47 = vsel %vm714_vm11, %v2381_v11, %v2383_v32  ;;  %v2425_v57 = vrot.slane %v2418_v10, 6 }
 0x218   : > { %2364 = vrot.lane.b32.xlu0 %v2361_v63, %s3022_s25  ;;  %v2446_v35 = vrot.slane %v2439_v54, 6 }
 0x219   : > { %v1723_v56 = vpop.permute.xlu1 %1722  ;;  %v2426_v6 = vsel %vm749_vm12, %v2423_v46, %v2425_v57 }
 0x21a   : > { %v1727_v0 = vadd.f32 %v1723_v56, %v1706_v25  ;;  %v1805_v45 = vpop.permute.xlu0 %1804  ;;  %v2405_v25 = vsel %vm714_vm11, %v2402_v8, %v2404_v60 }
 0x21b   : > { %2303 = vrot.lane.b32.xlu1 %v2300_v52, %s3022_s25  ;;  %v4906_v38 = vadd.f32 %v1805_v45, %v1789_v36  ;;  %v2447_v36 = vsel %vm749_vm12, %v2444_v48, %v2446_v35 }
 0x21c   : > { %2385 = vrot.lane.b32.xlu0 %v2382_v39, %s3022_s25 }
 0x21d   : > { %v1744_v7 = vpop.permute.xlu1 %1743 }
 0x21e   : > { %v1748_v37 = vadd.f32 %v1744_v7, %v1727_v0  ;;  %v4917_v34 = vpop.permute.xlu0 %1825 }
 0x21f   : > { %2324 = vrot.lane.b32.xlu1 %v2321_v24, %s3022_s25  ;;  %v1831_v21 = vadd.f32 %v4917_v34, %v4906_v38 }
 0x220   : > { %2406 = vrot.lane.b32.xlu0 %v2403_v44, %s3022_s25 }
 0x221   : > { %v1765_v16 = vpop.permute.xlu1 %1764 }
 0x222   : > { %v1769_v28 = vadd.f32 %v1765_v16, %v1748_v37  ;;  %v1847_v33 = vpop.permute.xlu0 %1846 }
 0x223   : > { %2345 = vrot.lane.b32.xlu1 %v2342_v17, %s3022_s25  ;;  %v1852_v51 = vadd.f32 %v1847_v33, %v1831_v21 }
 0x224   : > { %2427 = vrot.lane.b32.xlu0 %v2424_v13, %s3022_s25 }
 0x225   : > { %v1786_v26 = vpop.permute.xlu1 %1785 }
 0x226   : > { %v1790_v58 = vadd.f32 %v1786_v26, %v1769_v28  ;;  %v1868_v23 = vpop.permute.xlu0 %1867 }
 0x227   : > { %2366 = vrot.lane.b32.xlu1 %v2363_v30, %s3022_s25  ;;  %v1873_v16 = vadd.f32 %v1868_v23, %v1852_v51 }
 0x228   : > { %2448 = vrot.lane.b32.xlu0 %v2445_v14, %s3022_s25 }
 0x229   : > { %v1807_v29 = vpop.permute.xlu1 %1806 }
 0x22a   : > { %v1811_v31 = vadd.f32 %v1807_v29, %v1790_v58  ;;  %v1889_v4 = vpop.permute.xlu0 %1888 }
 0x22b   : > { %2387 = vrot.lane.b32.xlu1 %v2384_v47, %s3022_s25  ;;  %v1894_v46 = vadd.f32 %v1889_v4, %v1873_v16 }
 0x22d   : > { %v1828_v61 = vpop.permute.xlu1 %1827 }
 0x22e   : > { %v1903_v43 = vpop.permute.xlu0 %1902  ;;  %v1832_v19 = vadd.f32 %v1828_v61, %v1811_v31 }
 0x22f   : > { %2408 = vrot.lane.b32.xlu1 %v2405_v25, %s3022_s25  ;;  %v1908_v28 = vadd.f32 %v1903_v43, %v1894_v46 }
 0x231   : > { %v1849_v5 = vpop.permute.xlu1 %1848 }
 0x232   : > { %v1917_v59 = vpop.permute.xlu0 %1916  ;;  %v1853_v58 = vadd.f32 %v1849_v5, %v1832_v19 }
 0x233   : > { %2429 = vrot.lane.b32.xlu1 %v2426_v6, %s3022_s25  ;;  %v1922_v62 = vadd.f32 %v1917_v59, %v1908_v28 }
 0x235   : > { %v1870_v15 = vpop.permute.xlu1 %1869 }
 0x236   : > { %v1938_v56 = vpop.permute.xlu0 %1937  ;;  %v1874_v32 = vadd.f32 %v1870_v15, %v1853_v58 }
 0x237   : > { %2450 = vrot.lane.b32.xlu1 %v2447_v36, %s3022_s25  ;;  %v1943_v55 = vadd.f32 %v1938_v56, %v1922_v62 }
 0x239   : > { %v1891_v63 = vpop.permute.xlu1 %1890 }
 0x23a   : > { %v1959_v11 = vpop.permute.xlu0 %1958  ;;  %v1895_v40 = vadd.f32 %v1891_v63, %v1874_v32 }
 0x23b   : > { %v1964_v13 = vadd.f32 %v1959_v11, %v1943_v55 }
 0x23d   : > { %v1905_v3 = vpop.permute.xlu1 %1904 }
 0x23e   : > { %v1980_v27 = vpop.permute.xlu0 %1979  ;;  %v1909_v23 = vadd.f32 %v1905_v3, %v1895_v40 }
 0x23f   : > { %v1985_v30 = vadd.f32 %v1980_v27, %v1964_v13 }
 0x241   : > { %v1919_v0 = vpop.permute.xlu1 %1918 }
 0x242   : > { %v2001_v52 = vpop.permute.xlu0 %2000  ;;  %v1923_v60 = vadd.f32 %v1919_v0, %v1909_v23 }
 0x243   : > { %v2006_v34 = vadd.f32 %v2001_v52, %v1985_v30 }
 0x245   : > { %v1940_v22 = vpop.permute.xlu1 %1939 }
 0x246   : > { %v2022_v49 = vpop.permute.xlu0 %2021  ;;  %v1944_v4 = vadd.f32 %v1940_v22, %v1923_v60 }
 0x247   : > { %v2027_v20 = vadd.f32 %v2022_v49, %v2006_v34 }
 0x249   : > { %v1961_v9 = vpop.permute.xlu1 %1960 }
 0x24a   : > { %v2043_v12 = vpop.permute.xlu0 %2042  ;;  %v1965_v57 = vadd.f32 %v1961_v9, %v1944_v4 }
 0x24b   : > { %v2048_v14 = vadd.f32 %v2043_v12, %v2027_v20 }
 0x24d   : > { %v1982_v45 = vpop.permute.xlu1 %1981 }
 0x24e   : > { %v2064_v53 = vpop.permute.xlu0 %2063  ;;  %v1986_v43 = vadd.f32 %v1982_v45, %v1965_v57 }
 0x24f   : > { %v2069_v10 = vadd.f32 %v2064_v53, %v2048_v14 }
 0x251   : > { %v2003_v7 = vpop.permute.xlu1 %2002 }
 0x252   : > { %v2085_v39 = vpop.permute.xlu0 %2084  ;;  %v2007_v59 = vadd.f32 %v2003_v7, %v1986_v43 }
 0x253   : > { %v2090_v31 = vadd.f32 %v2085_v39, %v2069_v10 }
 0x255   : > { %v2024_v8 = vpop.permute.xlu1 %2023 }
 0x256   : > { %v2106_v18 = vpop.permute.xlu0 %2105  ;;  %v2028_v36 = vadd.f32 %v2024_v8, %v2007_v59 }
 0x257   : > { %v2111_v54 = vadd.f32 %v2106_v18, %v2090_v31 }
 0x259   : > { %v2045_v37 = vpop.permute.xlu1 %2044 }
 0x25a   : > { %v2127_v24 = vpop.permute.xlu0 %2126  ;;  %v2049_v3 = vadd.f32 %v2045_v37, %v2028_v36 }
 0x25b   : > { %v2132_v6 = vadd.f32 %v2127_v24, %v2111_v54 }
 0x25d   : > { %v2066_v42 = vpop.permute.xlu1 %2065 }
 0x25e   : > { %v2148_v50 = vpop.permute.xlu0 %2147  ;;  %v2070_v0 = vadd.f32 %v2066_v42, %v2049_v3 }
 0x25f   : > { %v2153_v15 = vadd.f32 %v2148_v50, %v2132_v6 }
 0x261   : > { %v2087_v1 = vpop.permute.xlu1 %2086 }
 0x262   : > { %v2169_v44 = vpop.permute.xlu0 %2168  ;;  %v2091_v12 = vadd.f32 %v2087_v1, %v2070_v0 }
 0x263   : > { %v2174_v63 = vadd.f32 %v2169_v44, %v2153_v15  ;;  %v3023_v15 = vmov 1966171168  }
 0x264   : > { %v2477_v36 = vunpack.c.l.s4 %v3023_v15 }
 0x265   : > { %v2108_v2 = vpop.permute.xlu1 %2107 }
 0x266   : > { %v2183_v17 = vpop.permute.xlu0 %2182  ;;  %v2112_v9 = vadd.f32 %v2108_v2, %v2091_v12 }
 0x267   : > { %v2188_v27 = vadd.f32 %v2183_v17, %v2174_v63  ;;  %v5210_v63 = vlaneseq }
 0x269   : > { %v2129_v41 = vpop.permute.xlu1 %2128  ;;  %vm4949_vm13 = vcmp.lt.s32.totalorder %v5210_v63, 16  ;;  %vm4958_vm14 = vcmp.ge.s32.totalorder %v5210_v63, 16  ;;  %vm4963_vm15 = vcmp.lt.s32.totalorder %v5210_v63, 32  ;;  %vm4972_vm1 = vcmp.ge.s32.totalorder %v5210_v63, 32 }
 0x26a   : > { %v2197_v26 = vpop.permute.xlu0 %2196  ;;  %v2133_v24 = vadd.f32 %v2129_v41, %v2112_v9  ;;  %vm2503_vm0 = vmand %vm4958_vm14, %vm4963_vm15  ;;  %vm4977_vm2 = vcmp.lt.s32.totalorder %v5210_v63, 48  ;;  %vm4996_vm5 = vcmp.ge.s32.totalorder %v5210_v63, 48  ;;  %vm5001_vm6 = vcmp.lt.s32.totalorder %v5210_v63, 64 }
 0x26b   : > { %v2202_v22 = vadd.f32 %v2197_v26, %v2188_v27  ;;  %vm5135_vm4 = vmand %vm4972_vm1, %vm4977_vm2  ;;  %vm5006_vm7 = vcmp.ge.s32.totalorder %v5210_v63, 64  ;;  %vm5011_vm8 = vcmp.lt.s32.totalorder %v5210_v63, 80  ;;  %vm5024_vm11 = vcmp.ge.s32.totalorder %v5210_v63, 80 }
 0x26c   : > { %vm5134_vm9 = vmand %vm4996_vm5, %vm5001_vm6  ;;  %vm5029_vm12 = vcmp.lt.s32.totalorder %v5210_v63, 96 }
 0x26d   : > { %v2150_v48 = vpop.permute.xlu1 %2149  ;;  %vm5136_vm10 = vmand %vm5006_vm7, %vm5011_vm8 }
 0x26e   : > { %v2218_v38 = vpop.permute.xlu0 %2217  ;;  %v2154_v7 = vadd.f32 %v2150_v48, %v2133_v24  ;;  %vm5237_vm14 = vmand %vm4972_vm1, %vm4977_vm2 }
 0x26f   : > { %v2223_v53 = vadd.f32 %v2218_v38, %v2202_v22  ;;  %vm5242_vm2 = vmand %vm4996_vm5, %vm5001_vm6 }
 0x271   : > { %v2171_v33 = vpop.permute.xlu1 %2170 }
 0x272   : > { %v2239_v29 = vpop.permute.xlu0 %2238  ;;  %v2175_v16 = vadd.f32 %v2171_v33, %v2154_v7  ;;  %v2457_v33 = vstv %s2456_s11 }
 0x273   : > { %v2244_v45 = vadd.f32 %v2239_v29, %v2223_v53 }
 0x275   : > { %v2185_v47 = vpop.permute.xlu1 %2184 }
 0x276   : > { %v2260_v25 = vpop.permute.xlu0 %2259  ;;  %v2189_v37 = vadd.f32 %v2185_v47, %v2175_v16 }
 0x277   : > { %v2265_v21 = vadd.f32 %v2260_v25, %v2244_v45 }
 0x279   : > { %v2199_v61 = vpop.permute.xlu1 %2198 }
 0x27a   : > { %v2281_v5 = vpop.permute.xlu0 %2280  ;;  %v2203_v17 = vadd.f32 %v2199_v61, %v2189_v37 }
 0x27b   : > { %v2286_v8 = vadd.f32 %v2281_v5, %v2265_v21 }
 0x27d   : > { %v2220_v35 = vpop.permute.xlu1 %2219 }
 0x27e   : > { %v2302_v56 = vpop.permute.xlu0 %2301  ;;  %v2224_v1 = vadd.f32 %v2220_v35, %v2203_v17 }
 0x27f   : > { %v2307_v44 = vadd.f32 %v2302_v56, %v2286_v8  ;;  %v2478_v56 = vunpack.c.0.s8 %v2477_v36 }
 0x281   : > { %v2241_v11 = vpop.permute.xlu1 %2240 }
 0x282   : > { %v2323_v52 = vpop.permute.xlu0 %2322  ;;  %v2245_v26 = vadd.f32 %v2241_v11, %v2224_v1  ;;  %v2480_v11 = vshrl.u32 %v5210_v63, 7 }
 0x283   : > { %v2328_v42 = vadd.f32 %v2323_v52, %v2307_v44 }
 0x284   : > { %v2481_v27 = vsub.s32 %v2478_v56, %v2480_v11 }
 0x285   : > { %v2262_v49 = vpop.permute.xlu1 %2261 }
 0x286   : > { %v2344_v39 = vpop.permute.xlu0 %2343  ;;  %v2266_v13 = vadd.f32 %v2262_v49, %v2245_v26 }
 0x287   : > { %v2349_v62 = vadd.f32 %v2344_v39, %v2328_v42 }
 0x289   : > { %v2283_v18 = vpop.permute.xlu1 %2282 }
 0x28a   : > { %v2365_v50 = vpop.permute.xlu0 %2364  ;;  %v2287_v32 = vadd.f32 %v2283_v18, %v2266_v13 }
 0x28b   : > { %v2370_v2 = vadd.f32 %v2365_v50, %v2349_v62 }
 0x28d   : > { %v2304_v51 = vpop.permute.xlu1 %2303 }
 0x28e   : > { %v2386_v46 = vpop.permute.xlu0 %2385  ;;  %v2308_v34 = vadd.f32 %v2304_v51, %v2287_v32 }
 0x28f   : > { %v2391_v41 = vadd.f32 %v2386_v46, %v2370_v2 }
 0x291   : > { %v2325_v28 = vpop.permute.xlu1 %2324 }
 0x292   : > { %v2407_v55 = vpop.permute.xlu0 %2406  ;;  %v2329_v29 = vadd.f32 %v2325_v28, %v2308_v34 }
 0x293   : > { %v2412_v58 = vadd.f32 %v2407_v55, %v2391_v41 }
 0x295   : > { %v2346_v19 = vpop.permute.xlu1 %2345 }
 0x296   : > { %v2428_v48 = vpop.permute.xlu0 %2427  ;;  %v2350_v47 = vadd.f32 %v2346_v19, %v2329_v29 }
 0x297   : > { %v2433_v38 = vadd.f32 %v2428_v48, %v2412_v58 }
 0x299   : > { %v2367_v30 = vpop.permute.xlu1 %2366 }
 0x29a   : > { %v2449_v40 = vpop.permute.xlu0 %2448  ;;  %v2371_v4 = vadd.f32 %v2367_v30, %v2350_v47 }
 0x29b   : > { %v2454_v20 = vadd.f32 %v2449_v40, %v2433_v38 }
 0x29d   : > { %v2388_v23 = vpop.permute.xlu1 %2387  ;;  %v2458_v14 = vadd.f32 %v2457_v33, %v2454_v20 }
 0x29e   : > { %v2392_v25 = vadd.f32 %v2388_v23, %v2371_v4 }
 0x29f   : > { %v2893_v60 = vmul.f32 -1.442695, %v2458_v14 }
 0x2a1   : > { %v2409_v10 = vpop.permute.xlu1 %2408  ;;  %2952 = vpow2.f32 %v2893_v60 }
 0x2a2   : > { %v2413_v61 = vadd.f32 %v2409_v10, %v2392_v25 }
 0x2a5   : > { %v2430_v31 = vpop.permute.xlu1 %2429 }
 0x2a6   : > { %v2434_v57 = vadd.f32 %v2430_v31, %v2413_v61 }
 0x2a9   : > { %v2451_v54 = vpop.permute.xlu1 %2450 }
 0x2aa   : > { %v2455_v43 = vadd.f32 %v2451_v54, %v2434_v57 }
 0x2ac   : > { %v2459_v5 = vadd.f32 %v2457_v33, %v2455_v43 }
 0x2ae   : > { %v2894_v6 = vmul.f32 -1.442695, %v2459_v5  ;;  %v2953_v35 = vpop.eup %2952 }
 0x2af   : > { %v2466_v59 = vadd.f32 1.0, %v2953_v35 }
 0x2b0   : > { %2954 = vpow2.f32 %v2894_v6 }
 0x2b1   : > { %2956 = vrcp.f32 %v2466_v59 }
 0x2bd   : > { %v2955_v3 = vpop.eup %2954 }
 0x2be   : > { %v2467_v0 = vadd.f32 1.0, %v2955_v3  ;;  %v2957_v22 = vpop.eup %2956 }
 0x2bf   : > { %v2482_v49 = vrot.slane %v2957_v22, %v2481_v27  ;;  %2474 = vst.msk [vmem:[#allocation6] sm:$0x1] %vm4949_vm13, %v2957_v22  ;;  %v2521_v39 = vcombine.high %v2957_v22, %v2957_v22 }
 0x2c0   : > { %2958 = vrcp.f32 %v2467_v0 }
 0x2c1   : > { %v2483_v12 = vcombine.high %v2482_v49, %v2482_v49  ;;  %v2490_v9 = vrot.slane %v2482_v49, %v2481_v27  ;;  %v2528_v18 = vrot.slane %v2521_v39, %v2481_v27 }
 0x2c3   : > { %v2497_v53 = vrot.slane %v2483_v12, %v2481_v27  ;;  %v2505_v45 = vcombine.high %v2490_v9, %v2490_v9  ;;  %v2535_v21 = vrot.slane %v2528_v18, %v2481_v27  ;;  %v2543_v51 = vcombine.high %v2528_v18, %v2528_v18 }
 0x2c5   : > { %2498 = vrot.lane.b32.xlu0 %v2497_v53, %s3024_s12  ;;  %v2513_v8 = vcombine.high %v2497_v53, %v2497_v53  ;;  %v2550_v46 = vrot.slane %v2543_v51, %v2481_v27  ;;  %v2558_v17 = vcombine.high %v2535_v21, %v2535_v21 }
 0x2c7   : > { %v2566_v1 = vcombine.high %v2550_v46, %v2550_v46 }
 0x2c9   : > { %2506 = vrot.lane.b32.xlu0 %v2505_v45, %s3025_s13 }
 0x2cd   : > { %v2959_v24 = vpop.eup %2958  ;;  %2536 = vrot.lane.b32.xlu0 %v2535_v21, %s3026_s18 }
 0x2ce   : > { %v2582_v7 = vrot.slane %v2959_v24, %v2481_v27  ;;  %2574 = vst.msk [vmem:[#allocation6 + $0x1] sm:$0x1] %vm4949_vm13, %v2959_v24  ;;  %v2612_v37 = vcombine.high %v2959_v24, %v2959_v24  ;;  %vm2556_vm13 = vmand %vm5024_vm11, %vm5029_vm12 }
 0x2d0   : > { %v2583_v50 = vcombine.high %v2582_v7, %v2582_v7  ;;  %v2590_v44 = vrot.slane %v2582_v7, %v2481_v27  ;;  %v2619_v28 = vrot.slane %v2612_v37, %v2481_v27 }
 0x2d1   : > { %2514 = vrot.lane.b32.xlu0 %v2513_v8, %s3027_s21 }
 0x2d2   : > { %v2597_v16 = vrot.slane %v2583_v50, %v2481_v27  ;;  %v2602_v42 = vcombine.high %v2590_v44, %v2590_v44  ;;  %v2626_v62 = vrot.slane %v2619_v28, %v2481_v27  ;;  %v2631_v2 = vcombine.high %v2619_v28, %v2619_v28 }
 0x2d4   : > { %2598 = vrot.lane.b32.xlu1 %v2597_v16, %s3024_s12  ;;  %v2607_v55 = vcombine.high %v2597_v16, %v2597_v16  ;;  %v2638_v19 = vrot.slane %v2631_v2, %v2481_v27  ;;  %v2643_v26 = vcombine.high %v2626_v62, %v2626_v62 }
 0x2d5   : > { %2551 = vrot.lane.b32.xlu0 %v2550_v46, %s3028_s26 }
 0x2d6   : > { %v2648_v41 = vcombine.high %v2638_v19, %v2638_v19 }
 0x2d8   : > { %2603 = vrot.lane.b32.xlu1 %v2602_v42, %s3025_s13 }
 0x2d9   : > { %2559 = vrot.lane.b32.xlu0 %v2558_v17, %s3029_s4 }
 0x2dc   : > { %2627 = vrot.lane.b32.xlu1 %v2626_v62, %s3026_s18 }
 0x2dd   : > { %2567 = vrot.lane.b32.xlu0 %v2566_v1, %s3030_s16 }
 0x2e0   : > { %2608 = vrot.lane.b32.xlu1 %v2607_v55, %s3027_s21 }
 0x2e4   : > { %2639 = vrot.lane.b32.xlu1 %v2638_v19, %s3028_s26 }
 0x2e8   : > { %2644 = vrot.lane.b32.xlu1 %v2643_v26, %s3029_s4 }
 0x2ec   : > { %2649 = vrot.lane.b32.xlu1 %v2648_v41, %s3030_s16 }
 0x337   : > { %v2499_v32 = vpop.permute.xlu0 %2498 }
 0x338   : > { %2504 = vst.msk [vmem:[#allocation6] sm:$0x1] %vm2503_vm0, %v2499_v32 }
 0x33b   : > { %v2507_v38 = vpop.permute.xlu0 %2506 }
 0x33c   : > { %2512 = vst.msk [vmem:[#allocation6] sm:$0x1] %vm5135_vm4, %v2507_v38  ;;  %vm5058_vm4 = vcmp.lt.s32.totalorder %v5210_v63, 112 }
 0x33f   : > { %v2537_v40 = vpop.permute.xlu0 %2536 }
 0x343   : > { %v2515_v47 = vpop.permute.xlu0 %2514 }
 0x344   : > { %2520 = vst.msk [vmem:[#allocation6] sm:$0x1] %vm5134_vm9, %v2515_v47  ;;  %vm5053_vm9 = vcmp.ge.s32.totalorder %v5210_v63, 96 }
 0x345   : > { %2542 = vst.msk [vmem:[#allocation6] sm:$0x1] %vm5136_vm10, %v2537_v40  ;;  %vm2564_vm15 = vmand %vm5053_vm9, %vm5058_vm4  ;;  %vm5082_vm10 = vcmp.lt.s32.totalorder %v5210_v63, 128 }
 0x346   : > { %v2599_v60 = vpop.permute.xlu1 %2598  ;;  %vm5243_vm4 = vmand %vm5006_vm7, %vm5011_vm8 }
 0x347   : > { %2601 = vst.msk [vmem:[#allocation6 + $0x1] sm:$0x1] %vm2503_vm0, %v2599_v60  ;;  %v2552_v25 = vpop.permute.xlu0 %2551  ;;  %vm5077_vm0 = vcmp.ge.s32.totalorder %v5210_v63, 112 }
 0x348   : > { %2557 = vst.msk [vmem:[#allocation6] sm:$0x1] %vm2556_vm13, %v2552_v25  ;;  %vm2572_vm1 = vmand %vm5077_vm0, %vm5082_vm10 }
 0x34a   : > { %v2604_v31 = vpop.permute.xlu1 %2603 }
 0x34b   : > { %2606 = vst.msk [vmem:[#allocation6 + $0x1] sm:$0x1] %vm5237_vm14, %v2604_v31  ;;  %v2560_v54 = vpop.permute.xlu0 %2559 }
 0x34c   : > { %2565 = vst.msk [vmem:[#allocation6] sm:$0x1] %vm2564_vm15, %v2560_v54 }
 0x34e   : > { %v2628_v43 = vpop.permute.xlu1 %2627 }
 0x34f   : > { %v2568_v5 = vpop.permute.xlu0 %2567 }
 0x350   : > { %2573 = vst.msk [vmem:[#allocation6] sm:$0x1] %vm2572_vm1, %v2568_v5 }
 0x352   : > { %v2609_v6 = vpop.permute.xlu1 %2608 }
 0x353   : > { %2611 = vst.msk [vmem:[#allocation6 + $0x1] sm:$0x1] %vm5242_vm2, %v2609_v6 }
 0x354   : > { %2630 = vst.msk [vmem:[#allocation6 + $0x1] sm:$0x1] %vm5243_vm4, %v2628_v43 }
 0x356   : > { %v2640_v35 = vpop.permute.xlu1 %2639 }
 0x357   : > { %2642 = vst.msk [vmem:[#allocation6 + $0x1] sm:$0x1] %vm2556_vm13, %v2640_v35 }
 0x35a   : > { %v2645_v59 = vpop.permute.xlu1 %2644 }
 0x35b   : > { %2647 = vst.msk [vmem:[#allocation6 + $0x1] sm:$0x1] %vm2564_vm15, %v2645_v59 }
 0x35e   : > { %v2650_v15 = vpop.permute.xlu1 %2649 }
 0x35f   : > { %2652 = vst.msk [vmem:[#allocation6 + $0x1] sm:$0x1] %vm2572_vm1, %v2650_v15 }
 0x366   : > { %v2653_v36 = vld [vmem:[#allocation6] sm:$0x3] }
 0x367 LB: >> { %s2660_s2 = sshra.s32 %s3005_s9, 2  ;;  %s2663_s19 = sand.u32 3, %s3005_s9  ;;  %s3005_s9 = sphi %s3003_s9, %s2659_s9  }
 0x368   : >> { %s2901_s20 = sshll.u32 %s2660_s2, 3  ;;  %s2659_s9 = sadd.s32 1, %s3005_s9  }
 0x369   : >> { %s2666_s22 = sadd.s32 %s2901_s20, %s2663_s19  ;;  %p2656_p1 = scmp.ge.s32.totalorder %s2659_s9, 4  }
 0x36a   : >> { %s2667_s23 = scalar_lea.vmem %s3087_s24, %s2666_s22  ;;  %s2670_s15 = scalar_lea.vmem %s3092_s27, %s2666_s22 }
 0x36b   : >> { %v2668_v56 = vld [vmem:[%s2667_s23] ss:$4 sm:$0x3]  ;;  %2658 = sbr.rel (!%p2656_p1) target bundleno = 871 (0x367), region = 79 }
 0x36c   : >> { %v2669_v63 = vmul.f32 %v2668_v56, %v2653_v36 }
 0x36e   : >> { %2671 = vst.msk [vmem:[%s2670_s15] ss:$4 sm:$0x3] %vm3099_vm3, %v2669_v63 }
 0x370 PF: > { %s15_s14 = sadd.s32 1, %s3001_s14  }
 0x371   : > { %p12_p2 = scmp.ge.s32.totalorder %s15_s14, 4  }
 0x373   :  { %14 = sbr.rel (!%p12_p2) target bundleno = 4 (0x4), region = 90 }
 0x378   :  { %2693 = vsyncpa [#allocation9], 1 }
 0x379   :  { %2695 = vsyncpa [#allocation9 + $0x1], 1 }

</bundles_post_ra>
